<compile_context>
chip_gen: v6e
topology: v6e:2x2x1
jax: 0.10.0
libtpu: 0.0.40
codegen_flags: <defaults>
</compile_context>

<pallas_src>
import jax
import jax.numpy as jnp
from jax.experimental import pallas as pl
from jax.experimental.pallas import tpu as pltpu

EPS = 1e-5

# ---- scaled-down dimensions (architecture identical to the PyTorch module) ----
B = 8          # batch
D_IN = 640     # stands in for 23316
H1 = 512       # stands in for 2048
H2 = 256       # stands in for 1024
LATENT = 128   # stands in for 512


def _bn_train_fast(h, gamma, beta):
    """BatchNorm1d (training mode, biased variance) in single-pass scale/shift form.

    All math in fp32. Reductions are over the batch (sublane) axis; rsqrt goes to
    the EUP, leaving only one mul + one add per element on the VALU.
    """
    inv_n = 1.0 / h.shape[0]
    mean = jnp.sum(h, axis=0, keepdims=True) * inv_n
    mean_sq = jnp.sum(h * h, axis=0, keepdims=True) * inv_n
    var = jnp.maximum(mean_sq - mean * mean, 0.0)
    scale = gamma * jax.lax.rsqrt(var + EPS)
    shift = beta - mean * scale
    return h * scale + shift


def autoencoder_kernel(x_ref,
                       w1, w2, w3,
                       g1, be1, g2, be2, g3, be3,
                       g4, be4, g5, be5, b6,
                       w4_hbm, w5_hbm, w6_hbm,
                       enc_ref, dec_ref,
                       w4_v, w5_v, w6_v, dma_sem):
    # Kick off decoder-weight DMA (HBM -> VMEM) so it overlaps encoder compute.
    cp4 = pltpu.make_async_copy(w4_hbm, w4_v, dma_sem.at[0])
    cp5 = pltpu.make_async_copy(w5_hbm, w5_v, dma_sem.at[1])
    cp6 = pltpu.make_async_copy(w6_hbm, w6_v, dma_sem.at[2])
    cp4.start()
    cp5.start()
    cp6.start()

    x = x_ref[...]

    # ---------------- encoder ----------------
    # Linear biases are omitted: the following training-mode BN cancels them exactly.
    h = jnp.dot(x.astype(jnp.bfloat16), w1[...], preferred_element_type=jnp.float32)
    h = jnp.maximum(_bn_train_fast(h, g1[...], be1[...]), 0.0)

    h = jnp.dot(h.astype(jnp.bfloat16), w2[...], preferred_element_type=jnp.float32)
    h = jnp.maximum(_bn_train_fast(h, g2[...], be2[...]), 0.0)

    h = jnp.dot(h.astype(jnp.bfloat16), w3[...], preferred_element_type=jnp.float32)
    enc = _bn_train_fast(h, g3[...], be3[...])      # no ReLU after the last encoder BN
    enc_ref[...] = enc.astype(enc_ref.dtype)

    # ---------------- decoder ----------------
    cp4.wait()
    d = jnp.dot(enc.astype(jnp.bfloat16), w4_v[...], preferred_element_type=jnp.float32)
    d = jnp.maximum(_bn_train_fast(d, g4[...], be4[...]), 0.0)

    cp5.wait()
    d = jnp.dot(d.astype(jnp.bfloat16), w5_v[...], preferred_element_type=jnp.float32)
    d = jnp.maximum(_bn_train_fast(d, g5[...], be5[...]), 0.0)

    cp6.wait()
    d = jnp.dot(d.astype(jnp.bfloat16), w6_v[...], preferred_element_type=jnp.float32) + b6[...]
    dec_ref[...] = jax.nn.sigmoid(d).astype(dec_ref.dtype)


def autoencoder_forward(x, params):
    """Runs the fused autoencoder kernel. Returns (encoded, decoded)."""
    b, d_in = x.shape
    h1 = params["w1"].shape[1]
    h2 = params["w2"].shape[1]
    latent = params["w3"].shape[1]

    vmem = pl.BlockSpec(memory_space=pltpu.MemorySpace.VMEM)
    hbm = pl.BlockSpec(memory_space=pl.ANY)

    flat = [
        x,
        params["w1"], params["w2"], params["w3"],
        params["g1"], params["be1"], params["g2"], params["be2"],
        params["g3"], params["be3"], params["g4"], params["be4"],
        params["g5"], params["be5"], params["b6"],
        params["w4"], params["w5"], params["w6"],
    ]
    in_specs = [vmem] * 15 + [hbm] * 3

    return pl.pallas_call(
        autoencoder_kernel,
        out_shape=(
            jax.ShapeDtypeStruct((b, latent), jnp.float32),
            jax.ShapeDtypeStruct((b, d_in), jnp.float32),
        ),
        in_specs=in_specs,
        out_specs=(vmem, vmem),
        scratch_shapes=[
            pltpu.VMEM((latent, h2), jnp.bfloat16),   # w4 landing buffer
            pltpu.VMEM((h2, h1), jnp.bfloat16),       # w5 landing buffer
            pltpu.VMEM((h1, d_in), jnp.bfloat16),     # w6 landing buffer
            pltpu.SemaphoreType.DMA((3,)),
        ],
        compiler_params=pltpu.CompilerParams(vmem_limit_bytes=32 << 20),
    )(*flat)


# ------------------------- parameter construction -------------------------
def _linear_params(key, fan_in, fan_out):
    """torch.nn.Linear-style init U(-1/sqrt(fan_in), 1/sqrt(fan_in)); weight stored (in, out)."""
    kw, kb = jax.random.split(key)
    bound = 1.0 / jnp.sqrt(jnp.float32(fan_in))
    w = jax.random.uniform(kw, (fan_in, fan_out), jnp.float32, -bound, bound)
    b = jax.random.uniform(kb, (1, fan_out), jnp.float32, -bound, bound)
    return w, b


def make_params(key):
    dims = [(D_IN, H1), (H1, H2), (H2, LATENT),      # encoder linears
            (LATENT, H2), (H2, H1), (H1, D_IN)]      # decoder linears
    keys = jax.random.split(key, len(dims))
    params = {}
    for i, ((fi, fo), k) in enumerate(zip(dims, keys), start=1):
        w, b = _linear_params(k, fi, fo)
        params[f"w{i}_f32"] = w                       # exact fp32 weights (reference)
        params[f"w{i}"] = w.astype(jnp.bfloat16)      # bf16 weights (kernel matmul operands)
        params[f"b{i}"] = b
    # BatchNorm affine params (gamma=1, beta=0, torch defaults) for the 5 BN layers.
    bn_dims = [H1, H2, LATENT, H2, H1]
    for i, fo in enumerate(bn_dims, start=1):
        params[f"g{i}"] = jnp.ones((1, fo), jnp.float32)
        params[f"be{i}"] = jnp.zeros((1, fo), jnp.float32)
    return params


# ------------------------- pure-JAX references -------------------------
def _bn_ref(h, gamma, beta):
    mean = jnp.mean(h, axis=0, keepdims=True)
    var = jnp.mean((h - mean) ** 2, axis=0, keepdims=True)
    return (h - mean) * jax.lax.rsqrt(var + EPS) * gamma + beta


def reference_forward(x, p, *, bf16_matmul=True):
    """Faithful module reference (includes all Linear biases, two-pass BN).

    bf16_matmul=True mirrors the kernel's matmul precision; False is the exact
    fp32 PyTorch-equivalent forward.
    """
    dt = jnp.bfloat16 if bf16_matmul else jnp.float32
    wgt = lambda i: p[f"w{i}"] if bf16_matmul else p[f"w{i}_f32"]

    def mm(a, i):
        return jnp.dot(a.astype(dt), wgt(i).astype(dt), preferred_element_type=jnp.float32)

    h = mm(x, 1) + p["b1"]
    h = jnp.maximum(_bn_ref(h, p["g1"], p["be1"]), 0.0)
    h = mm(h, 2) + p["b2"]
    h = jnp.maximum(_bn_ref(h, p["g2"], p["be2"]), 0.0)
    h = mm(h, 3) + p["b3"]
    enc = _bn_ref(h, p["g3"], p["be3"])
    d = mm(enc, 4) + p["b4"]
    d = jnp.maximum(_bn_ref(d, p["g4"], p["be4"]), 0.0)
    d = mm(d, 5) + p["b5"]
    d = jnp.maximum(_bn_ref(d, p["g5"], p["be5"]), 0.0)
    d = mm(d, 6) + p["b6"]
    return enc, jax.nn.sigmoid(d)


if __name__ == "__main__":
    key = jax.random.PRNGKey(0)
    k_x, k_p = jax.random.split(key)

    x = jax.random.uniform(k_x, (B, D_IN), jnp.float32)   # sigmoid-target-style input
    params = make_params(k_p)

    encoded, decoded = autoencoder_forward(x, params)
    jax.block_until_ready((encoded, decoded))

    assert encoded.shape == (B, LATENT) and decoded.shape == (B, D_IN)

    # Tight check vs. a reference using the same bf16 matmul precision (validates the
    # BN restructuring + bias cancellation + fused kernel).
    enc_ref, dec_ref = reference_forward(x, params, bf16_matmul=True)
    assert jnp.allclose(encoded, enc_ref, atol=5e-4, rtol=5e-4)
    assert jnp.allclose(decoded, dec_ref, atol=5e-4, rtol=5e-4)

    # Loose sanity check vs. the exact fp32 module forward (quantization error budget
    # for bf16 matmul operands).
    enc_f32, dec_f32 = reference_forward(x, params, bf16_matmul=False)
    assert float(jnp.max(jnp.abs(encoded - enc_f32))) < 0.3
    assert float(jnp.max(jnp.abs(decoded - dec_f32))) < 0.1

    print("KERNEL_OK")
</pallas_src>

<mosaic_0001>
module attributes {stable_mosaic.version = 11 : i64} {
  func.func @autoencoder_kernel(%arg0: memref<8x640xf32, #tpu.memory_space<vmem>>, %arg1: memref<640x512xbf16, #tpu.memory_space<vmem>>, %arg2: memref<512x256xbf16, #tpu.memory_space<vmem>>, %arg3: memref<256x128xbf16, #tpu.memory_space<vmem>>, %arg4: memref<1x512xf32, #tpu.memory_space<vmem>>, %arg5: memref<1x512xf32, #tpu.memory_space<vmem>>, %arg6: memref<1x256xf32, #tpu.memory_space<vmem>>, %arg7: memref<1x256xf32, #tpu.memory_space<vmem>>, %arg8: memref<1x128xf32, #tpu.memory_space<vmem>>, %arg9: memref<1x128xf32, #tpu.memory_space<vmem>>, %arg10: memref<1x256xf32, #tpu.memory_space<vmem>>, %arg11: memref<1x256xf32, #tpu.memory_space<vmem>>, %arg12: memref<1x512xf32, #tpu.memory_space<vmem>>, %arg13: memref<1x512xf32, #tpu.memory_space<vmem>>, %arg14: memref<1x640xf32, #tpu.memory_space<vmem>>, %arg15: memref<128x256xbf16, #tpu.memory_space<any>>, %arg16: memref<256x512xbf16, #tpu.memory_space<any>>, %arg17: memref<512x640xbf16, #tpu.memory_space<any>>, %arg18: memref<8x128xf32, #tpu.memory_space<vmem>>, %arg19: memref<8x640xf32, #tpu.memory_space<vmem>>, %arg20: memref<128x256xbf16, #tpu.memory_space<vmem>>, %arg21: memref<256x512xbf16, #tpu.memory_space<vmem>>, %arg22: memref<512x640xbf16, #tpu.memory_space<vmem>>, %arg23: memref<3x!tpu.dma_semaphore, #tpu.memory_space<semaphore_mem>>) attributes {dimension_semantics = [], scalar_prefetch = 0 : i64, scratch_operands = 4 : i64, tpu.core_type = #tpu.core_type<tc>} {
    %c0_i32 = arith.constant 0 : i32
    %0 = tpu.memref_slice %arg23[%c0_i32] : memref<3x!tpu.dma_semaphore, #tpu.memory_space<semaphore_mem>> -> memref<1x!tpu.dma_semaphore, #tpu.memory_space<semaphore_mem>>
    %1 = tpu.memref_squeeze %0 : memref<1x!tpu.dma_semaphore, #tpu.memory_space<semaphore_mem>> -> memref<!tpu.dma_semaphore, #tpu.memory_space<semaphore_mem>>
    tpu.enqueue_dma source(%arg15 : memref<128x256xbf16, #tpu.memory_space<any>>) target(%arg20 : memref<128x256xbf16, #tpu.memory_space<vmem>>) target_semaphore(%1 : memref<!tpu.dma_semaphore, #tpu.memory_space<semaphore_mem>>)
    %c1_i32 = arith.constant 1 : i32
    %2 = tpu.memref_slice %arg23[%c1_i32] : memref<3x!tpu.dma_semaphore, #tpu.memory_space<semaphore_mem>> -> memref<1x!tpu.dma_semaphore, #tpu.memory_space<semaphore_mem>>
    %3 = tpu.memref_squeeze %2 : memref<1x!tpu.dma_semaphore, #tpu.memory_space<semaphore_mem>> -> memref<!tpu.dma_semaphore, #tpu.memory_space<semaphore_mem>>
    tpu.enqueue_dma source(%arg16 : memref<256x512xbf16, #tpu.memory_space<any>>) target(%arg21 : memref<256x512xbf16, #tpu.memory_space<vmem>>) target_semaphore(%3 : memref<!tpu.dma_semaphore, #tpu.memory_space<semaphore_mem>>)
    %c2_i32 = arith.constant 2 : i32
    %4 = tpu.memref_slice %arg23[%c2_i32] : memref<3x!tpu.dma_semaphore, #tpu.memory_space<semaphore_mem>> -> memref<1x!tpu.dma_semaphore, #tpu.memory_space<semaphore_mem>>
    %5 = tpu.memref_squeeze %4 : memref<1x!tpu.dma_semaphore, #tpu.memory_space<semaphore_mem>> -> memref<!tpu.dma_semaphore, #tpu.memory_space<semaphore_mem>>
    tpu.enqueue_dma source(%arg17 : memref<512x640xbf16, #tpu.memory_space<any>>) target(%arg22 : memref<512x640xbf16, #tpu.memory_space<vmem>>) target_semaphore(%5 : memref<!tpu.dma_semaphore, #tpu.memory_space<semaphore_mem>>)
    %c0 = arith.constant 0 : index
    %c0_0 = arith.constant 0 : index
    %6 = vector.load %arg0[%c0, %c0_0] : memref<8x640xf32, #tpu.memory_space<vmem>>, vector<8x640xf32>
    %7 = arith.truncf %6 : vector<8x640xf32> to vector<8x640xbf16>
    %c0_1 = arith.constant 0 : index
    %c0_2 = arith.constant 0 : index
    %8 = vector.load %arg1[%c0_1, %c0_2] : memref<640x512xbf16, #tpu.memory_space<vmem>>, vector<640x512xbf16>
    %cst = arith.constant dense<0.000000e+00> : vector<8x512xf32>
    %9 = tpu.matmul %7, %8, %cst {dimension_numbers = #tpu.dot_dimension_numbers<[1], [0], [0], [1], [0, 0, 1, 1], [], []>} : vector<8x640xbf16>, vector<640x512xbf16>, vector<8x512xf32> -> vector<8x512xf32>
    %c0_3 = arith.constant 0 : index
    %c0_4 = arith.constant 0 : index
    %10 = vector.load %arg4[%c0_3, %c0_4] : memref<1x512xf32, #tpu.memory_space<vmem>>, vector<1x512xf32>
    %c0_5 = arith.constant 0 : index
    %c0_6 = arith.constant 0 : index
    %11 = vector.load %arg5[%c0_5, %c0_6] : memref<1x512xf32, #tpu.memory_space<vmem>>, vector<1x512xf32>
    %cst_7 = arith.constant dense<0.000000e+00> : vector<512xf32>
    %12 = vector.multi_reduction <add>, %9, %cst_7 [0] : vector<8x512xf32> to vector<512xf32>
    %13 = vector.shape_cast %12 : vector<512xf32> to vector<1x512xf32>
    %cst_8 = arith.constant 1.250000e-01 : f32
    %14 = vector.broadcast %cst_8 : f32 to vector<1x512xf32>
    %15 = arith.mulf %13, %14 : vector<1x512xf32>
    %16 = arith.mulf %9, %9 : vector<8x512xf32>
    %cst_9 = arith.constant dense<0.000000e+00> : vector<512xf32>
    %17 = vector.multi_reduction <add>, %16, %cst_9 [0] : vector<8x512xf32> to vector<512xf32>
    %18 = vector.shape_cast %17 : vector<512xf32> to vector<1x512xf32>
    %cst_10 = arith.constant 1.250000e-01 : f32
    %19 = vector.broadcast %cst_10 : f32 to vector<1x512xf32>
    %20 = arith.mulf %18, %19 : vector<1x512xf32>
    %21 = arith.mulf %15, %15 : vector<1x512xf32>
    %22 = arith.subf %20, %21 : vector<1x512xf32>
    %cst_11 = arith.constant 0.000000e+00 : f32
    %23 = vector.broadcast %cst_11 : f32 to vector<1x512xf32>
    %24 = arith.maximumf %22, %23 : vector<1x512xf32>
    %cst_12 = arith.constant 9.99999974E-6 : f32
    %25 = vector.broadcast %cst_12 : f32 to vector<1x512xf32>
    %26 = arith.addf %24, %25 : vector<1x512xf32>
    %27 = math.rsqrt %26 : vector<1x512xf32>
    %28 = arith.mulf %10, %27 : vector<1x512xf32>
    %29 = arith.mulf %15, %28 : vector<1x512xf32>
    %30 = arith.subf %11, %29 : vector<1x512xf32>
    %31 = vector.broadcast %28 : vector<1x512xf32> to vector<8x512xf32>
    %32 = arith.mulf %9, %31 : vector<8x512xf32>
    %33 = vector.broadcast %30 : vector<1x512xf32> to vector<8x512xf32>
    %34 = arith.addf %32, %33 : vector<8x512xf32>
    %cst_13 = arith.constant 0.000000e+00 : f32
    %35 = vector.broadcast %cst_13 : f32 to vector<8x512xf32>
    %36 = arith.maximumf %34, %35 : vector<8x512xf32>
    %37 = arith.truncf %36 : vector<8x512xf32> to vector<8x512xbf16>
    %c0_14 = arith.constant 0 : index
    %c0_15 = arith.constant 0 : index
    %38 = vector.load %arg2[%c0_14, %c0_15] : memref<512x256xbf16, #tpu.memory_space<vmem>>, vector<512x256xbf16>
    %cst_16 = arith.constant dense<0.000000e+00> : vector<8x256xf32>
    %39 = tpu.matmul %37, %38, %cst_16 {dimension_numbers = #tpu.dot_dimension_numbers<[1], [0], [0], [1], [0, 0, 1, 1], [], []>} : vector<8x512xbf16>, vector<512x256xbf16>, vector<8x256xf32> -> vector<8x256xf32>
    %c0_17 = arith.constant 0 : index
    %c0_18 = arith.constant 0 : index
    %40 = vector.load %arg6[%c0_17, %c0_18] : memref<1x256xf32, #tpu.memory_space<vmem>>, vector<1x256xf32>
    %c0_19 = arith.constant 0 : index
    %c0_20 = arith.constant 0 : index
    %41 = vector.load %arg7[%c0_19, %c0_20] : memref<1x256xf32, #tpu.memory_space<vmem>>, vector<1x256xf32>
    %cst_21 = arith.constant dense<0.000000e+00> : vector<256xf32>
    %42 = vector.multi_reduction <add>, %39, %cst_21 [0] : vector<8x256xf32> to vector<256xf32>
    %43 = vector.shape_cast %42 : vector<256xf32> to vector<1x256xf32>
    %cst_22 = arith.constant 1.250000e-01 : f32
    %44 = vector.broadcast %cst_22 : f32 to vector<1x256xf32>
    %45 = arith.mulf %43, %44 : vector<1x256xf32>
    %46 = arith.mulf %39, %39 : vector<8x256xf32>
    %cst_23 = arith.constant dense<0.000000e+00> : vector<256xf32>
    %47 = vector.multi_reduction <add>, %46, %cst_23 [0] : vector<8x256xf32> to vector<256xf32>
    %48 = vector.shape_cast %47 : vector<256xf32> to vector<1x256xf32>
    %cst_24 = arith.constant 1.250000e-01 : f32
    %49 = vector.broadcast %cst_24 : f32 to vector<1x256xf32>
    %50 = arith.mulf %48, %49 : vector<1x256xf32>
    %51 = arith.mulf %45, %45 : vector<1x256xf32>
    %52 = arith.subf %50, %51 : vector<1x256xf32>
    %cst_25 = arith.constant 0.000000e+00 : f32
    %53 = vector.broadcast %cst_25 : f32 to vector<1x256xf32>
    %54 = arith.maximumf %52, %53 : vector<1x256xf32>
    %cst_26 = arith.constant 9.99999974E-6 : f32
    %55 = vector.broadcast %cst_26 : f32 to vector<1x256xf32>
    %56 = arith.addf %54, %55 : vector<1x256xf32>
    %57 = math.rsqrt %56 : vector<1x256xf32>
    %58 = arith.mulf %40, %57 : vector<1x256xf32>
    %59 = arith.mulf %45, %58 : vector<1x256xf32>
    %60 = arith.subf %41, %59 : vector<1x256xf32>
    %61 = vector.broadcast %58 : vector<1x256xf32> to vector<8x256xf32>
    %62 = arith.mulf %39, %61 : vector<8x256xf32>
    %63 = vector.broadcast %60 : vector<1x256xf32> to vector<8x256xf32>
    %64 = arith.addf %62, %63 : vector<8x256xf32>
    %cst_27 = arith.constant 0.000000e+00 : f32
    %65 = vector.broadcast %cst_27 : f32 to vector<8x256xf32>
    %66 = arith.maximumf %64, %65 : vector<8x256xf32>
    %67 = arith.truncf %66 : vector<8x256xf32> to vector<8x256xbf16>
    %c0_28 = arith.constant 0 : index
    %c0_29 = arith.constant 0 : index
    %68 = vector.load %arg3[%c0_28, %c0_29] : memref<256x128xbf16, #tpu.memory_space<vmem>>, vector<256x128xbf16>
    %cst_30 = arith.constant dense<0.000000e+00> : vector<8x128xf32>
    %69 = tpu.matmul %67, %68, %cst_30 {dimension_numbers = #tpu.dot_dimension_numbers<[1], [0], [0], [1], [0, 0, 1, 1], [], []>} : vector<8x256xbf16>, vector<256x128xbf16>, vector<8x128xf32> -> vector<8x128xf32>
    %c0_31 = arith.constant 0 : index
    %c0_32 = arith.constant 0 : index
    %70 = vector.load %arg8[%c0_31, %c0_32] : memref<1x128xf32, #tpu.memory_space<vmem>>, vector<1x128xf32>
    %c0_33 = arith.constant 0 : index
    %c0_34 = arith.constant 0 : index
    %71 = vector.load %arg9[%c0_33, %c0_34] : memref<1x128xf32, #tpu.memory_space<vmem>>, vector<1x128xf32>
    %cst_35 = arith.constant dense<0.000000e+00> : vector<128xf32>
    %72 = vector.multi_reduction <add>, %69, %cst_35 [0] : vector<8x128xf32> to vector<128xf32>
    %73 = vector.shape_cast %72 : vector<128xf32> to vector<1x128xf32>
    %cst_36 = arith.constant 1.250000e-01 : f32
    %74 = vector.broadcast %cst_36 : f32 to vector<1x128xf32>
    %75 = arith.mulf %73, %74 : vector<1x128xf32>
    %76 = arith.mulf %69, %69 : vector<8x128xf32>
    %cst_37 = arith.constant dense<0.000000e+00> : vector<128xf32>
    %77 = vector.multi_reduction <add>, %76, %cst_37 [0] : vector<8x128xf32> to vector<128xf32>
    %78 = vector.shape_cast %77 : vector<128xf32> to vector<1x128xf32>
    %cst_38 = arith.constant 1.250000e-01 : f32
    %79 = vector.broadcast %cst_38 : f32 to vector<1x128xf32>
    %80 = arith.mulf %78, %79 : vector<1x128xf32>
    %81 = arith.mulf %75, %75 : vector<1x128xf32>
    %82 = arith.subf %80, %81 : vector<1x128xf32>
    %cst_39 = arith.constant 0.000000e+00 : f32
    %83 = vector.broadcast %cst_39 : f32 to vector<1x128xf32>
    %84 = arith.maximumf %82, %83 : vector<1x128xf32>
    %cst_40 = arith.constant 9.99999974E-6 : f32
    %85 = vector.broadcast %cst_40 : f32 to vector<1x128xf32>
    %86 = arith.addf %84, %85 : vector<1x128xf32>
    %87 = math.rsqrt %86 : vector<1x128xf32>
    %88 = arith.mulf %70, %87 : vector<1x128xf32>
    %89 = arith.mulf %75, %88 : vector<1x128xf32>
    %90 = arith.subf %71, %89 : vector<1x128xf32>
    %91 = vector.broadcast %88 : vector<1x128xf32> to vector<8x128xf32>
    %92 = arith.mulf %69, %91 : vector<8x128xf32>
    %93 = vector.broadcast %90 : vector<1x128xf32> to vector<8x128xf32>
    %94 = arith.addf %92, %93 : vector<8x128xf32>
    %c0_41 = arith.constant 0 : index
    %c0_42 = arith.constant 0 : index
    %95 = vector.load %arg18[%c0_41, %c0_42] : memref<8x128xf32, #tpu.memory_space<vmem>>, vector<8x128xf32>
    tpu.vector_store %arg18[%c0_41, %c0_42], %94 {strides = array<i32>} : memref<8x128xf32, #tpu.memory_space<vmem>>, vector<8x128xf32>,
    %c0_i32_43 = arith.constant 0 : i32
    %96 = tpu.memref_slice %arg23[%c0_i32_43] : memref<3x!tpu.dma_semaphore, #tpu.memory_space<semaphore_mem>> -> memref<1x!tpu.dma_semaphore, #tpu.memory_space<semaphore_mem>>
    %97 = tpu.memref_squeeze %96 : memref<1x!tpu.dma_semaphore, #tpu.memory_space<semaphore_mem>> -> memref<!tpu.dma_semaphore, #tpu.memory_space<semaphore_mem>>
    tpu.wait_dma2 semaphore(%97 : memref<!tpu.dma_semaphore, #tpu.memory_space<semaphore_mem>>) src(%arg15 : memref<128x256xbf16, #tpu.memory_space<any>>) dst(%arg20 : memref<128x256xbf16, #tpu.memory_space<vmem>>)
    %98 = arith.truncf %94 : vector<8x128xf32> to vector<8x128xbf16>
    %c0_44 = arith.constant 0 : index
    %c0_45 = arith.constant 0 : index
    %99 = vector.load %arg20[%c0_44, %c0_45] : memref<128x256xbf16, #tpu.memory_space<vmem>>, vector<128x256xbf16>
    %cst_46 = arith.constant dense<0.000000e+00> : vector<8x256xf32>
    %100 = tpu.matmul %98, %99, %cst_46 {dimension_numbers = #tpu.dot_dimension_numbers<[1], [0], [0], [1], [0, 0, 1, 1], [], []>} : vector<8x128xbf16>, vector<128x256xbf16>, vector<8x256xf32> -> vector<8x256xf32>
    %c0_47 = arith.constant 0 : index
    %c0_48 = arith.constant 0 : index
    %101 = vector.load %arg10[%c0_47, %c0_48] : memref<1x256xf32, #tpu.memory_space<vmem>>, vector<1x256xf32>
    %c0_49 = arith.constant 0 : index
    %c0_50 = arith.constant 0 : index
    %102 = vector.load %arg11[%c0_49, %c0_50] : memref<1x256xf32, #tpu.memory_space<vmem>>, vector<1x256xf32>
    %cst_51 = arith.constant dense<0.000000e+00> : vector<256xf32>
    %103 = vector.multi_reduction <add>, %100, %cst_51 [0] : vector<8x256xf32> to vector<256xf32>
    %104 = vector.shape_cast %103 : vector<256xf32> to vector<1x256xf32>
    %cst_52 = arith.constant 1.250000e-01 : f32
    %105 = vector.broadcast %cst_52 : f32 to vector<1x256xf32>
    %106 = arith.mulf %104, %105 : vector<1x256xf32>
    %107 = arith.mulf %100, %100 : vector<8x256xf32>
    %cst_53 = arith.constant dense<0.000000e+00> : vector<256xf32>
    %108 = vector.multi_reduction <add>, %107, %cst_53 [0] : vector<8x256xf32> to vector<256xf32>
    %109 = vector.shape_cast %108 : vector<256xf32> to vector<1x256xf32>
    %cst_54 = arith.constant 1.250000e-01 : f32
    %110 = vector.broadcast %cst_54 : f32 to vector<1x256xf32>
    %111 = arith.mulf %109, %110 : vector<1x256xf32>
    %112 = arith.mulf %106, %106 : vector<1x256xf32>
    %113 = arith.subf %111, %112 : vector<1x256xf32>
    %cst_55 = arith.constant 0.000000e+00 : f32
    %114 = vector.broadcast %cst_55 : f32 to vector<1x256xf32>
    %115 = arith.maximumf %113, %114 : vector<1x256xf32>
    %cst_56 = arith.constant 9.99999974E-6 : f32
    %116 = vector.broadcast %cst_56 : f32 to vector<1x256xf32>
    %117 = arith.addf %115, %116 : vector<1x256xf32>
    %118 = math.rsqrt %117 : vector<1x256xf32>
    %119 = arith.mulf %101, %118 : vector<1x256xf32>
    %120 = arith.mulf %106, %119 : vector<1x256xf32>
    %121 = arith.subf %102, %120 : vector<1x256xf32>
    %122 = vector.broadcast %119 : vector<1x256xf32> to vector<8x256xf32>
    %123 = arith.mulf %100, %122 : vector<8x256xf32>
    %124 = vector.broadcast %121 : vector<1x256xf32> to vector<8x256xf32>
    %125 = arith.addf %123, %124 : vector<8x256xf32>
    %cst_57 = arith.constant 0.000000e+00 : f32
    %126 = vector.broadcast %cst_57 : f32 to vector<8x256xf32>
    %127 = arith.maximumf %125, %126 : vector<8x256xf32>
    %c1_i32_58 = arith.constant 1 : i32
    %128 = tpu.memref_slice %arg23[%c1_i32_58] : memref<3x!tpu.dma_semaphore, #tpu.memory_space<semaphore_mem>> -> memref<1x!tpu.dma_semaphore, #tpu.memory_space<semaphore_mem>>
    %129 = tpu.memref_squeeze %128 : memref<1x!tpu.dma_semaphore, #tpu.memory_space<semaphore_mem>> -> memref<!tpu.dma_semaphore, #tpu.memory_space<semaphore_mem>>
    tpu.wait_dma2 semaphore(%129 : memref<!tpu.dma_semaphore, #tpu.memory_space<semaphore_mem>>) src(%arg16 : memref<256x512xbf16, #tpu.memory_space<any>>) dst(%arg21 : memref<256x512xbf16, #tpu.memory_space<vmem>>)
    %130 = arith.truncf %127 : vector<8x256xf32> to vector<8x256xbf16>
    %c0_59 = arith.constant 0 : index
    %c0_60 = arith.constant 0 : index
    %131 = vector.load %arg21[%c0_59, %c0_60] : memref<256x512xbf16, #tpu.memory_space<vmem>>, vector<256x512xbf16>
    %cst_61 = arith.constant dense<0.000000e+00> : vector<8x512xf32>
    %132 = tpu.matmul %130, %131, %cst_61 {dimension_numbers = #tpu.dot_dimension_numbers<[1], [0], [0], [1], [0, 0, 1, 1], [], []>} : vector<8x256xbf16>, vector<256x512xbf16>, vector<8x512xf32> -> vector<8x512xf32>
    %c0_62 = arith.constant 0 : index
    %c0_63 = arith.constant 0 : index
    %133 = vector.load %arg12[%c0_62, %c0_63] : memref<1x512xf32, #tpu.memory_space<vmem>>, vector<1x512xf32>
    %c0_64 = arith.constant 0 : index
    %c0_65 = arith.constant 0 : index
    %134 = vector.load %arg13[%c0_64, %c0_65] : memref<1x512xf32, #tpu.memory_space<vmem>>, vector<1x512xf32>
    %cst_66 = arith.constant dense<0.000000e+00> : vector<512xf32>
    %135 = vector.multi_reduction <add>, %132, %cst_66 [0] : vector<8x512xf32> to vector<512xf32>
    %136 = vector.shape_cast %135 : vector<512xf32> to vector<1x512xf32>
    %cst_67 = arith.constant 1.250000e-01 : f32
    %137 = vector.broadcast %cst_67 : f32 to vector<1x512xf32>
    %138 = arith.mulf %136, %137 : vector<1x512xf32>
    %139 = arith.mulf %132, %132 : vector<8x512xf32>
    %cst_68 = arith.constant dense<0.000000e+00> : vector<512xf32>
    %140 = vector.multi_reduction <add>, %139, %cst_68 [0] : vector<8x512xf32> to vector<512xf32>
    %141 = vector.shape_cast %140 : vector<512xf32> to vector<1x512xf32>
    %cst_69 = arith.constant 1.250000e-01 : f32
    %142 = vector.broadcast %cst_69 : f32 to vector<1x512xf32>
    %143 = arith.mulf %141, %142 : vector<1x512xf32>
    %144 = arith.mulf %138, %138 : vector<1x512xf32>
    %145 = arith.subf %143, %144 : vector<1x512xf32>
    %cst_70 = arith.constant 0.000000e+00 : f32
    %146 = vector.broadcast %cst_70 : f32 to vector<1x512xf32>
    %147 = arith.maximumf %145, %146 : vector<1x512xf32>
    %cst_71 = arith.constant 9.99999974E-6 : f32
    %148 = vector.broadcast %cst_71 : f32 to vector<1x512xf32>
    %149 = arith.addf %147, %148 : vector<1x512xf32>
    %150 = math.rsqrt %149 : vector<1x512xf32>
    %151 = arith.mulf %133, %150 : vector<1x512xf32>
    %152 = arith.mulf %138, %151 : vector<1x512xf32>
    %153 = arith.subf %134, %152 : vector<1x512xf32>
    %154 = vector.broadcast %151 : vector<1x512xf32> to vector<8x512xf32>
    %155 = arith.mulf %132, %154 : vector<8x512xf32>
    %156 = vector.broadcast %153 : vector<1x512xf32> to vector<8x512xf32>
    %157 = arith.addf %155, %156 : vector<8x512xf32>
    %cst_72 = arith.constant 0.000000e+00 : f32
    %158 = vector.broadcast %cst_72 : f32 to vector<8x512xf32>
    %159 = arith.maximumf %157, %158 : vector<8x512xf32>
    %c2_i32_73 = arith.constant 2 : i32
    %160 = tpu.memref_slice %arg23[%c2_i32_73] : memref<3x!tpu.dma_semaphore, #tpu.memory_space<semaphore_mem>> -> memref<1x!tpu.dma_semaphore, #tpu.memory_space<semaphore_mem>>
    %161 = tpu.memref_squeeze %160 : memref<1x!tpu.dma_semaphore, #tpu.memory_space<semaphore_mem>> -> memref<!tpu.dma_semaphore, #tpu.memory_space<semaphore_mem>>
    tpu.wait_dma2 semaphore(%161 : memref<!tpu.dma_semaphore, #tpu.memory_space<semaphore_mem>>) src(%arg17 : memref<512x640xbf16, #tpu.memory_space<any>>) dst(%arg22 : memref<512x640xbf16, #tpu.memory_space<vmem>>)
    %162 = arith.truncf %159 : vector<8x512xf32> to vector<8x512xbf16>
    %c0_74 = arith.constant 0 : index
    %c0_75 = arith.constant 0 : index
    %163 = vector.load %arg22[%c0_74, %c0_75] : memref<512x640xbf16, #tpu.memory_space<vmem>>, vector<512x640xbf16>
    %cst_76 = arith.constant dense<0.000000e+00> : vector<8x640xf32>
    %164 = tpu.matmul %162, %163, %cst_76 {dimension_numbers = #tpu.dot_dimension_numbers<[1], [0], [0], [1], [0, 0, 1, 1], [], []>} : vector<8x512xbf16>, vector<512x640xbf16>, vector<8x640xf32> -> vector<8x640xf32>
    %c0_77 = arith.constant 0 : index
    %c0_78 = arith.constant 0 : index
    %165 = vector.load %arg14[%c0_77, %c0_78] : memref<1x640xf32, #tpu.memory_space<vmem>>, vector<1x640xf32>
    %166 = vector.broadcast %165 : vector<1x640xf32> to vector<8x640xf32>
    %167 = arith.addf %164, %166 : vector<8x640xf32>
    %168 = arith.negf %167 : vector<8x640xf32>
    %169 = math.exp %168 : vector<8x640xf32>
    %cst_79 = arith.constant 1.000000e+00 : f32
    %170 = vector.broadcast %cst_79 : f32 to vector<8x640xf32>
    %171 = arith.addf %170, %169 : vector<8x640xf32>
    %172 = arith.divf %170, %171 : vector<8x640xf32>
    %c0_80 = arith.constant 0 : index
    %c0_81 = arith.constant 0 : index
    %173 = vector.load %arg19[%c0_80, %c0_81] : memref<8x640xf32, #tpu.memory_space<vmem>>, vector<8x640xf32>
    tpu.vector_store %arg19[%c0_80, %c0_81], %172 {strides = array<i32>} : memref<8x640xf32, #tpu.memory_space<vmem>>, vector<8x640xf32>,
    return
  }
}

</mosaic_0001>

<bundles_post_ra>
// kernel: tpu_custom_call.1
= control target key start
LH: loop header
LB: loop body
LE: loop exit
PB: predicated region body
PF: predicated region fallthrough
CT: control target
= control target key end

     0   :  { %s6745_s0 = inlined_call_operand.hbm [shape: f32[8,640], index: 0, kind: input, shape index: {}]   ;;  %s6746_s1 = inlined_call_operand.hbm [shape: bf16[640,512], index: 1, kind: input, shape index: {}]   ;;  %s6747_s2 = inlined_call_operand.hbm [shape: bf16[512,256], index: 2, kind: input, shape index: {}]   ;;  %s6748_s3 = inlined_call_operand.hbm [shape: bf16[256,128], index: 3, kind: input, shape index: {}]   ;;  %s6749_s4 = inlined_call_operand.vmem [shape: f32[1,512], index: 4, kind: input, shape index: {}]   ;;  %s6750_s5 = inlined_call_operand.hbm [shape: f32[1,512], index: 5, kind: input, shape index: {}]   ;;  %s6751_s6 = inlined_call_operand.hbm [shape: f32[1,256], index: 6, kind: input, shape index: {}]   ;;  %s6752_s7 = inlined_call_operand.hbm [shape: f32[1,256], index: 7, kind: input, shape index: {}]   ;;  %s6753_s8 = inlined_call_operand.vmem [shape: f32[1,128], index: 8, kind: input, shape index: {}]   ;;  %s6754_s9 = inlined_call_operand.hbm [shape: f32[1,128], index: 9, kind: input, shape index: {}]   ;;  %s6755_s10 = inlined_call_operand.hbm [shape: f32[1,256], index: 10, kind: input, shape index: {}]   ;;  %s6756_s11 = inlined_call_operand.vmem [shape: f32[1,256], index: 11, kind: input, shape index: {}]   ;;  %s6757_s12 = inlined_call_operand.vmem [shape: f32[1,512], index: 12, kind: input, shape index: {}]   ;;  %s6758_s13 = inlined_call_operand.vmem [shape: f32[1,512], index: 13, kind: input, shape index: {}]   ;;  %s6759_s14 = inlined_call_operand.vmem [shape: f32[1,640], index: 14, kind: input, shape index: {}]   ;;  %s6760_s15 = inlined_call_operand.hbm [shape: bf16[128,256], index: 15, kind: input, shape index: {}]   ;;  %s6761_s16 = inlined_call_operand.hbm [shape: bf16[256,512], index: 16, kind: input, shape index: {}]   ;;  %s6762_s17 = inlined_call_operand.hbm [shape: bf16[512,640], index: 17, kind: input, shape index: {}]   ;;  %s6763_s18 = inlined_call_operand.hbm [shape: f32[8,128], index: 18, kind: output, shape index: {0}]   ;;  %s6764_s19 = inlined_call_operand.hbm [shape: f32[8,640], index: 19, kind: output, shape index: {1}]  }
   0x1   :  { %6765 = sst [smem:[#allocation42_spill]] %s6745_s0 }
   0x2   :  { %6766 = sst [smem:[#allocation43_spill]] %s6746_s1 }
   0x3   :  { %6767 = sst [smem:[#allocation44_spill]] %s6747_s2 }
   0x4   :  { %6768 = sst [smem:[#allocation45_spill]] %s6748_s3 }
   0x5   :  { %6769 = sst [smem:[#allocation46_spill]] %s6764_s19 }
   0x6   :  { %25 = vsyncpa [#allocation7], 0 }
   0x7   :  { %26 = vsyncpa [#allocation10], 0 }
   0x8   :  { %27 = vsyncpa [#allocation13], 0 }
   0x9   :  { %28 = vsyncpa [#allocation16], 0 }
   0xa   :  { %29 = vsyncpa [#allocation19], 0 }
   0xb   :  { %30 = vsyncpa [#allocation8], 0 }
   0xc   :  { %31 = vsyncpa [#allocation23], 0  ;;  %s6342_s0 = smov [#allocation9]  }
   0xd   :  { %s47_s30 = sshll.u32 %s6342_s0, 4  ;;  %s48_s30 = int_to_ptr.vmem [resolvable:$true] %s47_s30 }
   0xe   :  { %s6050_s20 = scalar_lea.vmem %s48_s30, 20480  ;;  %p6055_p1 = scmp.lt.s32.totalorder %s48_s30, %s48_s30 }
   0xf   :  { %p6051_p0 = scmp.ne.s32.totalorder %s48_s30, %s6050_s20  ;;  %p6056_p2 = scmp.lt.s32.totalorder %s6050_s20, %s6050_s20 }
  0x11   :  { %p6057_p3 = por %p6056_p2, %p6055_p1 }
  0x13   :  { %p6058_p4 = pnand %p6057_p3, %p6051_p0 }
  0x15   :  { %6061 = shalt.err (!%p6058_p4)
}
  0x16   :  { %s6343_s21 = smov 256   ;;  %s6344_s1 = smov 16  }
  0x17   :  { %s6770_s23 = sld [smem:[#allocation43_spill]]  ;;  %s6345_s24 = smov [#allocation12]  }
  0x18   :  { %s71_s25 = sshll.u32 %s6345_s24, 4  ;;  %s72_s25 = int_to_ptr.vmem [resolvable:$true] %s71_s25 }
  0x19   :  { %s6070_s3 = scalar_lea.vmem %s72_s25, 2048  ;;  %p6075_p6 = scmp.lt.s32.totalorder %s72_s25, %s72_s25 }
  0x1a   :  { %p6071_p5 = scmp.ne.s32.totalorder %s72_s25, %s6070_s3  ;;  %p6076_p7 = scmp.lt.s32.totalorder %s6070_s3, %s6070_s3 }
  0x1c   :  { %p6077_p8 = por %p6076_p7, %p6075_p6 }
  0x1d   :  { %53 = dma.hbm_to_vmem [thread:$0]  %s6770_s23, 20480, %s48_s30, [#allocation10], %s6343_s21, %s6343_s21, %s6344_s1  }
  0x1e   :  { %p6078_p9 = pnand %p6077_p8, %p6071_p5 }
  0x20   :  { %6081 = shalt.err (!%p6078_p9)
}
  0x21   :  { %s6346_s26 = smov 64   ;;  %s6347_s27 = smov 4  }
  0x22   :  { %s6771_s0 = sld [smem:[#allocation45_spill]]  ;;  %s6348_s20 = smov [#allocation15]  }
  0x23   :  { %s96_s19 = sshll.u32 %s6348_s20, 4  ;;  %s6349_s22 = smov [#allocation18]   ;;  %s97_s19 = int_to_ptr.vmem [resolvable:$true] %s96_s19 }
  0x24   :  { %s118_s30 = sshll.u32 %s6349_s22, 4  ;;  %s6090_s21 = scalar_lea.vmem %s97_s19, 32  ;;  %s119_s30 = int_to_ptr.vmem [resolvable:$true] %s118_s30 }
  0x25   :  { %p6091_p10 = scmp.ne.s32.totalorder %s97_s19, %s6090_s21  ;;  %p6095_p11 = scmp.lt.s32.totalorder %s97_s19, %s97_s19 }
  0x26   :  { %p6096_p12 = scmp.lt.s32.totalorder %s6090_s21, %s6090_s21 }
  0x28   :  { %77 = dma.hbm_to_vmem [thread:$0]  %s6771_s0, 2048, %s72_s25, [#allocation13], %s6346_s26, %s6346_s26, %s6347_s27  }
  0x29   :  { %p6097_p13 = por %p6096_p12, %p6095_p11 }
  0x2b   :  { %p6098_p0 = pnand %p6097_p13, %p6091_p10 }
  0x2d   :  { %6101 = shalt.err (!%p6098_p0)
}
  0x2e   :  { %99 = dma.hbm_to_vmem [thread:$0]  %s6751_s6, 32, %s97_s19, [#allocation16]  }
  0x2f   :  { %s6110_s23 = scalar_lea.vmem %s119_s30, 16  ;;  %s6114_s24 = scalar_lea.vmem %s119_s30, 32 }
  0x30   :  { %p6111_p1 = scmp.ne.s32.totalorder %s119_s30, %s6110_s23  ;;  %p6115_p2 = scmp.lt.s32.totalorder %s119_s30, %s119_s30 }
  0x31   :  { %p6116_p3 = scmp.lt.s32.totalorder %s6114_s24, %s6110_s23 }
  0x33   :  { %p6117_p4 = por %p6116_p3, %p6115_p2 }
  0x35   :  { %p6118_p5 = pnand %p6117_p4, %p6111_p1 }
  0x37   :  { %6121 = shalt.err (!%p6118_p5)
}
  0x38   :  { %121 = dma.hbm_to_vmem [thread:$0]  %s6754_s9, 16, %s119_s30, [#allocation19]  }
  0x39   :  { %s6350_s26 = smov [#allocation6]   ;;  %s6351_s28 = smov [#allocation11]  }
  0x3a   :  { %s38_s27 = sshll.u32 %s6350_s26, 4  ;;  %s59_s29 = sshll.u32 %s6351_s28, 4  ;;  %s39_s27 = int_to_ptr.vmem [resolvable:$true] %s38_s27  ;;  %s60_s29 = int_to_ptr.vmem [resolvable:$true] %s59_s29 }
  0x3b   :  { %s6130_s0 = scalar_lea.vmem %s39_s27, 640  ;;  %p6135_p7 = scmp.lt.s32.totalorder %s39_s27, %s39_s27 }
  0x3c   :  { %p6131_p6 = scmp.ne.s32.totalorder %s39_s27, %s6130_s0  ;;  %p6136_p8 = scmp.lt.s32.totalorder %s6130_s0, %s6130_s0 }
  0x3e   :  { %p6137_p9 = por %p6136_p8, %p6135_p7 }
  0x40   :  { %p6138_p10 = pnand %p6137_p9, %p6131_p6 }
  0x42   :  { %6141 = shalt.err (!%p6138_p10)
}
  0x43   :  { %s6772_s20 = sld [smem:[#allocation42_spill]]  ;;  %s6150_s22 = scalar_lea.vmem %s60_s29, 8192 }
  0x44   :  { %p6151_p11 = scmp.ne.s32.totalorder %s60_s29, %s6150_s22  ;;  %p6155_p12 = scmp.lt.s32.totalorder %s60_s29, %s60_s29 }
  0x45   :  { %p6156_p13 = scmp.lt.s32.totalorder %s6150_s22, %s6150_s22 }
  0x47   :  { %p6157_p0 = por %p6156_p13, %p6155_p12 }
  0x49   :  { %41 = dma.hbm_to_vmem [thread:$0]  %s6772_s20, 640, %s39_s27, [#allocation7]  }
  0x4a   :  { %p6158_p1 = pnand %p6157_p0, %p6151_p11 }
  0x4c   :  { %6161 = shalt.err (!%p6158_p1)
}
  0x4d   :  { %s6352_s9 = smov 128   ;;  %s6353_s30 = smov 8  }
  0x4e   :  { %s6773_s2 = sld [smem:[#allocation44_spill]]  ;;  %s6354_s23 = smov [#allocation14]  }
  0x4f   :  { %s86_s24 = sshll.u32 %s6354_s23, 4  ;;  %s6355_s25 = smov [#allocation17]   ;;  %s87_s24 = int_to_ptr.vmem [resolvable:$true] %s86_s24 }
  0x50   :  { %s106_s3 = sshll.u32 %s6355_s25, 4  ;;  %s6170_s26 = scalar_lea.vmem %s87_s24, 64  ;;  %s107_s3 = int_to_ptr.vmem [resolvable:$true] %s106_s3 }
  0x51   :  { %p6171_p2 = scmp.ne.s32.totalorder %s87_s24, %s6170_s26  ;;  %p6175_p3 = scmp.lt.s32.totalorder %s87_s24, %s87_s24 }
  0x52   :  { %p6176_p4 = scmp.lt.s32.totalorder %s6170_s26, %s6170_s26 }
  0x54   :  { %65 = dma.hbm_to_vmem [thread:$0]  %s6773_s2, 8192, %s60_s29, [#allocation10], %s6352_s9, %s6352_s9, %s6353_s30  }
  0x55   :  { %p6177_p5 = por %p6176_p4, %p6175_p3 }
  0x57   :  { %p6178_p6 = pnand %p6177_p5, %p6171_p2 }
  0x59   :  { %6181 = shalt.err (!%p6178_p6)
}
  0x5a   :  { %89 = dma.hbm_to_vmem [thread:$0]  %s6750_s5, 64, %s87_s24, [#allocation13]  }
  0x5b   :  { %s6190_s0 = scalar_lea.vmem %s107_s3, 32  ;;  %p6195_p8 = scmp.lt.s32.totalorder %s107_s3, %s107_s3 }
  0x5c   :  { %p6191_p7 = scmp.ne.s32.totalorder %s107_s3, %s6190_s0  ;;  %p6196_p9 = scmp.lt.s32.totalorder %s6190_s0, %s6190_s0 }
  0x5e   :  { %p6197_p10 = por %p6196_p9, %p6195_p8 }
  0x60   :  { %p6198_p11 = pnand %p6197_p10, %p6191_p7 }
  0x62   :  { %6201 = shalt.err (!%p6198_p11)
}
  0x63   :  { %109 = dma.hbm_to_vmem [thread:$0]  %s6752_s7, 32, %s107_s3, [#allocation16]  }
  0x64   :  { %s6356_s19 = smov [#allocation20]  }
  0x65   :  { %s128_s20 = sshll.u32 %s6356_s19, 4  ;;  %s129_s20 = int_to_ptr.vmem [resolvable:$true] %s128_s20 }
  0x66   :  { %s6210_s22 = scalar_lea.vmem %s129_s20, 32  ;;  %p6215_p13 = scmp.lt.s32.totalorder %s129_s20, %s129_s20 }
  0x67   :  { %p6211_p12 = scmp.ne.s32.totalorder %s129_s20, %s6210_s22  ;;  %p6216_p0 = scmp.lt.s32.totalorder %s6210_s22, %s6210_s22 }
  0x69   :  { %p6217_p1 = por %p6216_p0, %p6215_p13 }
  0x6b   :  { %p6218_p2 = pnand %p6217_p1, %p6211_p12 }
  0x6d   :  { %6221 = shalt.err (!%p6218_p2)
}
  0x6e   :  { %131 = dma.hbm_to_vmem [thread:$0]  %s6755_s10, 32, %s129_s20, [#allocation19]  }
  0x6f   :  { %6322 = dma.done.wait [#allocation7], 640  }
  0x70   :  { %6323 = vsyncadd [#allocation7], 4294966656 }
  0x71   :  { %6324 = dma.done.wait [#allocation10], 28672  }
  0x72   :  { %6325 = vsyncadd [#allocation10], 4294938624 }
  0x73   :  { %6326 = dma.done.wait [#allocation13], 2112  }
  0x74   :  { %6327 = vsyncadd [#allocation13], 4294965184 }
  0x75   :  { %6328 = dma.done.wait [#allocation16], 64  }
  0x76   :  { %6329 = vsyncadd [#allocation16], 4294967232 }
  0x77   :  { %6330 = dma.done.wait [#allocation19], 48  }
  0x78   :  { %6331 = vsyncadd [#allocation19], 4294967248  ;;  %v5300_v0 = vld [vmem:[#allocation9 + $0xe4] ss:$16 sps:$4 sm:$0xff]   ;;  %v5304_v2 = vld [vmem:[#allocation9 + $0xe0] ss:$16 sps:$4 sm:$0xff]  }
  0x79   :  { %v5302_v1 = vld [vmem:[#allocation9 + $0x2e4] ss:$16 sps:$4 sm:$0xff]   ;;  %1173 = vmatprep.subr.bf16.mxu0 %v5300_v0  ;;  %v5305_v3 = vld [vmem:[#allocation9 + $0x2e0] ss:$16 sps:$4 sm:$0xff]   ;;  %s6360_s21 = smov [#allocation3]  }
  0x7a   :  { %1214 = vmatprep.subr.bf16.mxu1 %v5302_v1  ;;  %v5306_v4 = vld [vmem:[#allocation9 + $0xc4] ss:$16 sps:$4 sm:$0xff]   ;;  %1174 = vmatpush1.bf16.msra.mxu0 %v5304_v2  ;;  %v5310_v6 = vld [vmem:[#allocation9 + $0xc0] ss:$16 sps:$4 sm:$0xff]   ;;  %s187_s1 = sshll.u32 %s6360_s21, 4  ;;  %s188_s1 = int_to_ptr.vmem [resolvable:$true] %s187_s1 }
  0x7b   :  { %1215 = vmatpush1.bf16.msra.mxu1 %v5305_v3  ;;  %v5308_v5 = vld [vmem:[#allocation9 + $0x2c4] ss:$16 sps:$4 sm:$0xff]   ;;  %1175 = vmatprep.subr.bf16.mxu0 %v5306_v4  ;;  %v5311_v7 = vld [vmem:[#allocation9 + $0x2c0] ss:$16 sps:$4 sm:$0xff]   ;;  %v203_v4 = vld [vmem:[#allocation6] sm:$0xff] }
  0x7c   :  { %1216 = vmatprep.subr.bf16.mxu1 %v5308_v5  ;;  %v5312_v8 = vld [vmem:[#allocation9 + $0xa4] ss:$16 sps:$4 sm:$0xff]   ;;  %v5316_v10 = vld [vmem:[#allocation9 + $0xa0] ss:$16 sps:$4 sm:$0xff]   ;;  %v205_v5 = vld [vmem:[#allocation6 + $0x10] sm:$0xff] }
  0x7d   :  { %v5314_v9 = vld [vmem:[#allocation9 + $0x2a4] ss:$16 sps:$4 sm:$0xff]   ;;  %v5317_v11 = vld [vmem:[#allocation9 + $0x2a0] ss:$16 sps:$4 sm:$0xff]  }
  0x7e   :  { %1176 = vmatpush1.bf16.msra.mxu0 %v5310_v6  ;;  %v5318_v12 = vld [vmem:[#allocation9 + $0x84] ss:$16 sps:$4 sm:$0xff]   ;;  %v5322_v14 = vld [vmem:[#allocation9 + $0x80] ss:$16 sps:$4 sm:$0xff]  }
  0x7f   :  { %1217 = vmatpush1.bf16.msra.mxu1 %v5311_v7  ;;  %1177 = vmatprep.subr.bf16.mxu0 %v5312_v8  ;;  %v5320_v13 = vld [vmem:[#allocation9 + $0x284] ss:$16 sps:$4 sm:$0xff]   ;;  %v5323_v15 = vld [vmem:[#allocation9 + $0x280] ss:$16 sps:$4 sm:$0xff]   ;;  %v5401_v7 = vld [vmem:[#allocation9 + $0xec] ss:$16 sps:$4 sm:$0xff]   ;;  %v6497_v8 = vpack.c.bf16 %v203_v4, %v203_v4 }
  0x80   :  { %1218 = vmatprep.subr.bf16.mxu1 %v5314_v9  ;;  %v5324_v16 = vld [vmem:[#allocation9 + $0x64] ss:$16 sps:$4 sm:$0xff]   ;;  %v5328_v18 = vld [vmem:[#allocation9 + $0x60] ss:$16 sps:$4 sm:$0xff]   ;;  %v6499_v9 = vpack.c.bf16 %v205_v5, %v205_v5  ;;  %v5485_v4 = vld [vmem:[#allocation9 + $0x22c] ss:$16 sps:$4 sm:$0xff]  }
  0x81   :  { %v5326_v17 = vld [vmem:[#allocation9 + $0x264] ss:$16 sps:$4 sm:$0xff]   ;;  %v5329_v19 = vld [vmem:[#allocation9 + $0x260] ss:$16 sps:$4 sm:$0xff]   ;;  %v5480_v5 = vld [vmem:[#allocation9 + $0x128] ss:$16 sps:$4 sm:$0xff]  }
  0x82   :  { %1178 = vmatpush1.bf16.msra.mxu0 %v5316_v10  ;;  %v5330_v20 = vld [vmem:[#allocation9 + $0x44] ss:$16 sps:$4 sm:$0xff]   ;;  %v5334_v22 = vld [vmem:[#allocation9 + $0x40] ss:$16 sps:$4 sm:$0xff]  }
  0x83   :  { %1219 = vmatpush1.bf16.msra.mxu1 %v5317_v11  ;;  %1179 = vmatprep.subr.bf16.mxu0 %v5318_v12  ;;  %v5332_v21 = vld [vmem:[#allocation9 + $0x244] ss:$16 sps:$4 sm:$0xff]   ;;  %v5335_v23 = vld [vmem:[#allocation9 + $0x240] ss:$16 sps:$4 sm:$0xff]   ;;  %v5399_v11 = vld [vmem:[#allocation9 + $0xe8] ss:$16 sps:$4 sm:$0xff]  }
  0x84   :  { %1220 = vmatprep.subr.bf16.mxu1 %v5320_v13  ;;  %v5336_v24 = vld [vmem:[#allocation9 + $0x24] ss:$16 sps:$4 sm:$0xff]   ;;  %v5340_v26 = vld [vmem:[#allocation9 + $0x20] ss:$16 sps:$4 sm:$0xff]   ;;  %v5407_v13 = vld [vmem:[#allocation9 + $0xcc] ss:$16 sps:$4 sm:$0xff]  }
  0x85   :  { %v5338_v25 = vld [vmem:[#allocation9 + $0x224] ss:$16 sps:$4 sm:$0xff]   ;;  %v5341_v27 = vld [vmem:[#allocation9 + $0x220] ss:$16 sps:$4 sm:$0xff]  }
  0x86   :  { %1180 = vmatpush1.bf16.msra.mxu0 %v5322_v14  ;;  %v5342_v28 = vld [vmem:[#allocation9 + $0x4] ss:$16 sps:$4 sm:$0xff]   ;;  %v5346_v30 = vld [vmem:[#allocation9] ss:$16 sps:$4 sm:$0xff]  }
  0x87   :  { %1221 = vmatpush1.bf16.msra.mxu1 %v5323_v15  ;;  %1181 = vmatprep.subr.bf16.mxu0 %v5324_v16  ;;  %v5344_v29 = vld [vmem:[#allocation9 + $0x204] ss:$16 sps:$4 sm:$0xff]   ;;  %v5347_v31 = vld [vmem:[#allocation9 + $0x200] ss:$16 sps:$4 sm:$0xff]   ;;  %v5405_v15 = vld [vmem:[#allocation9 + $0xc8] ss:$16 sps:$4 sm:$0xff]  }
  0x88   :  { %1222 = vmatprep.subr.bf16.mxu1 %v5326_v17  ;;  %v5348_v32 = vld [vmem:[#allocation9 + $0x1e4] ss:$16 sps:$4 sm:$0xff]   ;;  %v5352_v34 = vld [vmem:[#allocation9 + $0x1e0] ss:$16 sps:$4 sm:$0xff]   ;;  %v5413_v17 = vld [vmem:[#allocation9 + $0xac] ss:$16 sps:$4 sm:$0xff]  }
  0x89   :  { %v5350_v33 = vld [vmem:[#allocation9 + $0x3e4] ss:$16 sps:$4 sm:$0xff]   ;;  %v5353_v35 = vld [vmem:[#allocation9 + $0x3e0] ss:$16 sps:$4 sm:$0xff]  }
  0x8a   :  { %1182 = vmatpush1.bf16.msra.mxu0 %v5328_v18  ;;  %v5354_v36 = vld [vmem:[#allocation9 + $0x1c4] ss:$16 sps:$4 sm:$0xff]   ;;  %v5358_v38 = vld [vmem:[#allocation9 + $0x1c0] ss:$16 sps:$4 sm:$0xff]   ;;  %v6357_v18 = vmov 0  }
  0x8b   :  { %1223 = vmatpush1.bf16.msra.mxu1 %v5329_v19  ;;  %1183 = vmatprep.subr.bf16.mxu0 %v5330_v20  ;;  %v5356_v37 = vld [vmem:[#allocation9 + $0x3c4] ss:$16 sps:$4 sm:$0xff]   ;;  %v5359_v39 = vld [vmem:[#allocation9 + $0x3c0] ss:$16 sps:$4 sm:$0xff]   ;;  %v5411_v20 = vld [vmem:[#allocation9 + $0xa8] ss:$16 sps:$4 sm:$0xff]  }
  0x8c   :  { %1224 = vmatprep.subr.bf16.mxu1 %v5332_v21  ;;  %v5360_v40 = vld [vmem:[#allocation9 + $0x1a4] ss:$16 sps:$4 sm:$0xff]   ;;  %v5364_v42 = vld [vmem:[#allocation9 + $0x1a0] ss:$16 sps:$4 sm:$0xff]  }
  0x8d   :  { %v5362_v41 = vld [vmem:[#allocation9 + $0x3a4] ss:$16 sps:$4 sm:$0xff]   ;;  %v5365_v43 = vld [vmem:[#allocation9 + $0x3a0] ss:$16 sps:$4 sm:$0xff]  }
  0x8e   :  { %1184 = vmatpush1.bf16.msra.mxu0 %v5334_v22  ;;  %v5366_v44 = vld [vmem:[#allocation9 + $0x184] ss:$16 sps:$4 sm:$0xff]   ;;  %v5370_v47 = vld [vmem:[#allocation9 + $0x180] ss:$16 sps:$4 sm:$0xff]   ;;  %v5419_v22 = vld [vmem:[#allocation9 + $0x8c] ss:$16 sps:$4 sm:$0xff]  }
  0x8f   :  { %1225 = vmatpush1.bf16.msra.mxu1 %v5335_v23  ;;  %1185 = vmatprep.subr.bf16.mxu0 %v5336_v24  ;;  %v5368_v45 = vld [vmem:[#allocation9 + $0x384] ss:$16 sps:$4 sm:$0xff]   ;;  %v5371_v48 = vld [vmem:[#allocation9 + $0x380] ss:$16 sps:$4 sm:$0xff]   ;;  %v5417_v24 = vld [vmem:[#allocation9 + $0x88] ss:$16 sps:$4 sm:$0xff]  }
  0x90   :  { %1226 = vmatprep.subr.bf16.mxu1 %v5338_v25  ;;  %v204_v46 = vld [vmem:[#allocation6 + $0x8] sm:$0xff]  ;;  %v206_v50 = vld [vmem:[#allocation6 + $0x18] sm:$0xff] }
  0x91   :  { %v6491_v49 = vpack.c.bf16 %v204_v46, %v204_v46  ;;  %v5372_v51 = vld [vmem:[#allocation9 + $0x164] ss:$16 sps:$4 sm:$0xff]   ;;  %v6493_v52 = vpack.c.bf16 %v206_v50, %v206_v50  ;;  %v5376_v54 = vld [vmem:[#allocation9 + $0x160] ss:$16 sps:$4 sm:$0xff]   ;;  %v5447_v46 = vld [vmem:[#allocation9 + $0x2e8] ss:$16 sps:$4 sm:$0xff]  }
  0x92   :  { %1186 = vmatpush1.bf16.msra.mxu0 %v5340_v26  ;;  %v5374_v53 = vld [vmem:[#allocation9 + $0x364] ss:$16 sps:$4 sm:$0xff]   ;;  %v5377_v55 = vld [vmem:[#allocation9 + $0x360] ss:$16 sps:$4 sm:$0xff]   ;;  %v5425_v26 = vld [vmem:[#allocation9 + $0x6c] ss:$16 sps:$4 sm:$0xff]  }
  0x93   :  { %1227 = vmatpush1.bf16.msra.mxu1 %v5341_v27  ;;  %1187 = vmatprep.subr.bf16.mxu0 %v5342_v28  ;;  %v5378_v56 = vld [vmem:[#allocation9 + $0x144] ss:$16 sps:$4 sm:$0xff]   ;;  %v5382_v58 = vld [vmem:[#allocation9 + $0x140] ss:$16 sps:$4 sm:$0xff]   ;;  %v5423_v28 = vld [vmem:[#allocation9 + $0x68] ss:$16 sps:$4 sm:$0xff]  }
  0x94   :  { %1228 = vmatprep.subr.bf16.mxu1 %v5344_v29  ;;  %1205 = vmatprep.mubr.bf16.mxu0 %v6491_v49  ;;  %v5380_v57 = vld [vmem:[#allocation9 + $0x344] ss:$16 sps:$4 sm:$0xff]   ;;  %v5383_v59 = vld [vmem:[#allocation9 + $0x340] ss:$16 sps:$4 sm:$0xff]   ;;  %v5453_v50 = vld [vmem:[#allocation9 + $0x2c8] ss:$16 sps:$4 sm:$0xff]  }
  0x95   :  { %1246 = vmatprep.mubr.bf16.mxu1 %v6493_v52  ;;  %v5384_v60 = vld [vmem:[#allocation9 + $0x124] ss:$16 sps:$4 sm:$0xff]   ;;  %v5388_v62 = vld [vmem:[#allocation9 + $0x120] ss:$16 sps:$4 sm:$0xff]  }
  0x96   :  { %1188 = vmatpush1.bf16.msra.mxu0 %v5346_v30  ;;  %v5386_v61 = vld [vmem:[#allocation9 + $0x324] ss:$16 sps:$4 sm:$0xff]   ;;  %v5389_v63 = vld [vmem:[#allocation9 + $0x320] ss:$16 sps:$4 sm:$0xff]   ;;  %v5431_v30 = vld [vmem:[#allocation9 + $0x4c] ss:$16 sps:$4 sm:$0xff]  }
  0x97   :  { %1229 = vmatpush1.bf16.msra.mxu1 %v5347_v31  ;;  %1189 = vmatprep.subr.bf16.mxu0 %v5348_v32  ;;  %v5390_v0 = vld [vmem:[#allocation9 + $0x104] ss:$16 sps:$4 sm:$0xff]   ;;  %v5394_v2 = vld [vmem:[#allocation9 + $0x100] ss:$16 sps:$4 sm:$0xff]   ;;  %v5429_v32 = vld [vmem:[#allocation9 + $0x48] ss:$16 sps:$4 sm:$0xff]  }
  0x98   :  { %1230 = vmatprep.subr.bf16.mxu1 %v5350_v33  ;;  %v5392_v1 = vld [vmem:[#allocation9 + $0x304] ss:$16 sps:$4 sm:$0xff]   ;;  %v5395_v3 = vld [vmem:[#allocation9 + $0x300] ss:$16 sps:$4 sm:$0xff]  }
  0x99   :  { %v5398_v6 = vld [vmem:[#allocation9 + $0x4e4] ss:$16 sps:$4 sm:$0xff]   ;;  %v5396_v10 = vld [vmem:[#allocation9 + $0x4e0] ss:$16 sps:$4 sm:$0xff]  }
  0x9a   :  { %1190 = vmatpush2.bf16.msra.mxu0 %v5352_v34  ;;  %v5404_v12 = vld [vmem:[#allocation9 + $0x4c4] ss:$16 sps:$4 sm:$0xff]   ;;  %v5402_v14 = vld [vmem:[#allocation9 + $0x4c0] ss:$16 sps:$4 sm:$0xff]   ;;  %v5437_v34 = vld [vmem:[#allocation9 + $0x2c] ss:$16 sps:$4 sm:$0xff]  }
  0x9b   :  { %1231 = vmatpush2.bf16.msra.mxu1 %v5353_v35  ;;  %1191 = vmatprep.subr.bf16.mxu0 %v5354_v36  ;;  %v5410_v16 = vld [vmem:[#allocation9 + $0x4a4] ss:$16 sps:$4 sm:$0xff]   ;;  %v5408_v19 = vld [vmem:[#allocation9 + $0x4a0] ss:$16 sps:$4 sm:$0xff]   ;;  %v5435_v36 = vld [vmem:[#allocation9 + $0x28] ss:$16 sps:$4 sm:$0xff]  }
  0x9c   :  { %1232 = vmatprep.subr.bf16.mxu1 %v5356_v37  ;;  %v5416_v21 = vld [vmem:[#allocation9 + $0x484] ss:$16 sps:$4 sm:$0xff]   ;;  %v5414_v23 = vld [vmem:[#allocation9 + $0x480] ss:$16 sps:$4 sm:$0xff]  }
  0x9d   :  { %v5422_v25 = vld [vmem:[#allocation9 + $0x464] ss:$16 sps:$4 sm:$0xff]   ;;  %v5420_v27 = vld [vmem:[#allocation9 + $0x460] ss:$16 sps:$4 sm:$0xff]  }
  0x9e   :  { %1192 = vmatpush2.bf16.msra.mxu0 %v5358_v38  ;;  %v5428_v29 = vld [vmem:[#allocation9 + $0x444] ss:$16 sps:$4 sm:$0xff]   ;;  %v5426_v31 = vld [vmem:[#allocation9 + $0x440] ss:$16 sps:$4 sm:$0xff]   ;;  %v5443_v38 = vld [vmem:[#allocation9 + $0xc] ss:$16 sps:$4 sm:$0xff]  }
  0x9f   :  { %1233 = vmatpush2.bf16.msra.mxu1 %v5359_v39  ;;  %1193 = vmatprep.subr.bf16.mxu0 %v5360_v40  ;;  %v5434_v33 = vld [vmem:[#allocation9 + $0x424] ss:$16 sps:$4 sm:$0xff]   ;;  %v5432_v35 = vld [vmem:[#allocation9 + $0x420] ss:$16 sps:$4 sm:$0xff]   ;;  %v5441_v40 = vld [vmem:[#allocation9 + $0x8] ss:$16 sps:$4 sm:$0xff]  }
  0xa0   :  { %1234 = vmatprep.subr.bf16.mxu1 %v5362_v41  ;;  %v5440_v37 = vld [vmem:[#allocation9 + $0x404] ss:$16 sps:$4 sm:$0xff]   ;;  %v5438_v39 = vld [vmem:[#allocation9 + $0x400] ss:$16 sps:$4 sm:$0xff]   ;;  %v207_v41 = vld [vmem:[#allocation6 + $0x20] sm:$0xff] }
  0xa2   :  { %1194 = vmatpush2.bf16.msra.mxu0 %v5364_v42  ;;  %v5446_v42 = vld [vmem:[#allocation9 + $0x1ec] ss:$16 sps:$4 sm:$0xff]  }
  0xa3   :  { %1235 = vmatpush2.bf16.msra.mxu1 %v5365_v43  ;;  %1195 = vmatprep.subr.bf16.mxu0 %v5366_v44  ;;  %v5449_v43 = vld [vmem:[#allocation9 + $0x2ec] ss:$16 sps:$4 sm:$0xff]   ;;  %v6505_v44 = vpack.c.bf16 %v207_v41, %v207_v41 }
  0xa4   :  { %1236 = vmatprep.subr.bf16.mxu1 %v5368_v45  ;;  %v5444_v45 = vld [vmem:[#allocation9 + $0x1e8] ss:$16 sps:$4 sm:$0xff]   ;;  %v5536_v41 = vld [vmem:[#allocation9 + $0x30c] ss:$16 sps:$4 sm:$0xff]  }
  0xa6   :  { %1196 = vmatpush2.bf16.msra.mxu0 %v5370_v47  ;;  %v5452_v47 = vld [vmem:[#allocation9 + $0x1cc] ss:$16 sps:$4 sm:$0xff]  }
  0xa7   :  { %1237 = vmatpush2.bf16.msra.mxu1 %v5371_v48  ;;  %1197 = vmatprep.subr.bf16.mxu0 %v5372_v51  ;;  %v5455_v48 = vld [vmem:[#allocation9 + $0x2cc] ss:$16 sps:$4 sm:$0xff]  }
  0xa8   :  { %1238 = vmatprep.subr.bf16.mxu1 %v5374_v53  ;;  %v5458_v51 = vld [vmem:[#allocation9 + $0x1ac] ss:$16 sps:$4 sm:$0xff]  }
  0xa9   :  { %v5461_v53 = vld [vmem:[#allocation9 + $0x2ac] ss:$16 sps:$4 sm:$0xff]  }
  0xaa   :  { %1198 = vmatpush2.bf16.msra.mxu0 %v5376_v54  ;;  %v5456_v54 = vld [vmem:[#allocation9 + $0x1a8] ss:$16 sps:$4 sm:$0xff]  }
  0xab   :  { %1239 = vmatpush2.bf16.msra.mxu1 %v5377_v55  ;;  %1199 = vmatprep.subr.bf16.mxu0 %v5378_v56  ;;  %v5459_v55 = vld [vmem:[#allocation9 + $0x2a8] ss:$16 sps:$4 sm:$0xff]   ;;  %v5464_v56 = vld [vmem:[#allocation9 + $0x18c] ss:$16 sps:$4 sm:$0xff]  }
  0xac   :  { %1240 = vmatprep.subr.bf16.mxu1 %v5380_v57  ;;  %v5467_v57 = vld [vmem:[#allocation9 + $0x28c] ss:$16 sps:$4 sm:$0xff]  }
  0xae   :  { %1200 = vmatpush2.bf16.msra.mxu0 %v5382_v58  ;;  %v5462_v58 = vld [vmem:[#allocation9 + $0x188] ss:$16 sps:$4 sm:$0xff]  }
  0xaf   :  { %1241 = vmatpush2.bf16.msra.mxu1 %v5383_v59  ;;  %1201 = vmatprep.subr.bf16.mxu0 %v5384_v60  ;;  %v5465_v59 = vld [vmem:[#allocation9 + $0x288] ss:$16 sps:$4 sm:$0xff]   ;;  %v5470_v60 = vld [vmem:[#allocation9 + $0x16c] ss:$16 sps:$4 sm:$0xff]  }
  0xb0   :  { %1242 = vmatprep.subr.bf16.mxu1 %v5386_v61  ;;  %v5473_v61 = vld [vmem:[#allocation9 + $0x26c] ss:$16 sps:$4 sm:$0xff]  }
  0xb2   :  { %1202 = vmatpush2.bf16.msra.mxu0 %v5388_v62  ;;  %v5468_v62 = vld [vmem:[#allocation9 + $0x168] ss:$16 sps:$4 sm:$0xff]  }
  0xb3   :  { %1243 = vmatpush2.bf16.msra.mxu1 %v5389_v63  ;;  %1203 = vmatprep.subr.bf16.mxu0 %v5390_v0  ;;  %v5471_v63 = vld [vmem:[#allocation9 + $0x268] ss:$16 sps:$4 sm:$0xff]   ;;  %v5476_v0 = vld [vmem:[#allocation9 + $0x14c] ss:$16 sps:$4 sm:$0xff]  }
  0xb4   :  { %1244 = vmatprep.subr.bf16.mxu1 %v5392_v1  ;;  %v5474_v1 = vld [vmem:[#allocation9 + $0x148] ss:$16 sps:$4 sm:$0xff]  }
  0xb6   :  { %1204 = vmatpush2.bf16.msra.mxu0 %v5394_v2  ;;  %v5477_v2 = vld [vmem:[#allocation9 + $0x248] ss:$16 sps:$4 sm:$0xff]  }
  0xb7   :  { %1245 = vmatpush2.bf16.msra.mxu1 %v5395_v3  ;;  %1255 = vmatprep.subr.bf16.mxu0 %v5398_v6  ;;  %v5482_v3 = vld [vmem:[#allocation9 + $0x12c] ss:$16 sps:$4 sm:$0xff]   ;;  %v5483_v6 = vld [vmem:[#allocation9 + $0x228] ss:$16 sps:$4 sm:$0xff]  }
  0xb8   :  { %1296 = vmatprep.subr.bf16.mxu1 %v5401_v7  ;;  %v5488_v7 = vld [vmem:[#allocation9 + $0x10c] ss:$16 sps:$4 sm:$0xff]  }
  0xb9   :  { %1206 = vmatmul.mubr.bf16.vlgmr.msra.gmra.mxu0 %v6497_v8 }
  0xba   :  { %1247 = vmatmul.mubr.bf16.vlgmr.msra.gmra.mxu1 %v6499_v9  ;;  %1256 = vmatpush1.bf16.msra.mxu0 %v5396_v10  ;;  %v5491_v10 = vld [vmem:[#allocation9 + $0x20c] ss:$16 sps:$4 sm:$0xff]  }
  0xbb   :  { %1297 = vmatpush1.bf16.msra.mxu1 %v5399_v11  ;;  %1257 = vmatprep.subr.bf16.mxu0 %v5404_v12  ;;  %v5486_v11 = vld [vmem:[#allocation9 + $0x108] ss:$16 sps:$4 sm:$0xff]  }
  0xbc   :  { %1298 = vmatprep.subr.bf16.mxu1 %v5407_v13  ;;  %1287 = vmatprep.mubr.bf16.mxu0 %v6357_v18  ;;  %v5489_v12 = vld [vmem:[#allocation9 + $0x208] ss:$16 sps:$4 sm:$0xff]   ;;  %v5494_v13 = vld [vmem:[#allocation9 + $0x3ec] ss:$16 sps:$4 sm:$0xff]  }
  0xbd   :  { %1328 = vmatprep.mubr.bf16.mxu1 %v6491_v49  ;;  %v5450_v49 = vld [vmem:[#allocation9 + $0x1c8] ss:$16 sps:$4 sm:$0xff]  }
  0xbe   :  { %1258 = vmatpush1.bf16.msra.mxu0 %v5402_v14  ;;  %v5497_v14 = vld [vmem:[#allocation9 + $0x4ec] ss:$16 sps:$4 sm:$0xff]  }
  0xbf   :  { %1299 = vmatpush1.bf16.msra.mxu1 %v5405_v15  ;;  %1259 = vmatprep.subr.bf16.mxu0 %v5410_v16  ;;  %v5492_v15 = vld [vmem:[#allocation9 + $0x3e8] ss:$16 sps:$4 sm:$0xff]  }
  0xc0   :  { %1300 = vmatprep.subr.bf16.mxu1 %v5413_v17  ;;  %v5495_v16 = vld [vmem:[#allocation9 + $0x4e8] ss:$16 sps:$4 sm:$0xff]   ;;  %v5500_v17 = vld [vmem:[#allocation9 + $0x3cc] ss:$16 sps:$4 sm:$0xff]  }
  0xc2   :  { %1260 = vmatpush1.bf16.msra.mxu0 %v5408_v19  ;;  %v5503_v19 = vld [vmem:[#allocation9 + $0x4cc] ss:$16 sps:$4 sm:$0xff]  }
  0xc3   :  { %1301 = vmatpush1.bf16.msra.mxu1 %v5411_v20  ;;  %1261 = vmatprep.subr.bf16.mxu0 %v5416_v21  ;;  %v5498_v20 = vld [vmem:[#allocation9 + $0x3c8] ss:$16 sps:$4 sm:$0xff]  }
  0xc4   :  { %1302 = vmatprep.subr.bf16.mxu1 %v5419_v22  ;;  %v5501_v21 = vld [vmem:[#allocation9 + $0x4c8] ss:$16 sps:$4 sm:$0xff]   ;;  %v5506_v22 = vld [vmem:[#allocation9 + $0x3ac] ss:$16 sps:$4 sm:$0xff]  }
  0xc6   :  { %1262 = vmatpush1.bf16.msra.mxu0 %v5414_v23  ;;  %v5509_v23 = vld [vmem:[#allocation9 + $0x4ac] ss:$16 sps:$4 sm:$0xff]  }
  0xc7   :  { %1303 = vmatpush1.bf16.msra.mxu1 %v5417_v24  ;;  %1263 = vmatprep.subr.bf16.mxu0 %v5422_v25  ;;  %v5504_v24 = vld [vmem:[#allocation9 + $0x3a8] ss:$16 sps:$4 sm:$0xff]  }
  0xc8   :  { %1304 = vmatprep.subr.bf16.mxu1 %v5425_v26  ;;  %v5507_v25 = vld [vmem:[#allocation9 + $0x4a8] ss:$16 sps:$4 sm:$0xff]   ;;  %v5512_v26 = vld [vmem:[#allocation9 + $0x38c] ss:$16 sps:$4 sm:$0xff]  }
  0xca   :  { %1264 = vmatpush1.bf16.msra.mxu0 %v5420_v27  ;;  %v5515_v27 = vld [vmem:[#allocation9 + $0x48c] ss:$16 sps:$4 sm:$0xff]  }
  0xcb   :  { %1305 = vmatpush1.bf16.msra.mxu1 %v5423_v28  ;;  %1265 = vmatprep.subr.bf16.mxu0 %v5428_v29  ;;  %v5510_v28 = vld [vmem:[#allocation9 + $0x388] ss:$16 sps:$4 sm:$0xff]   ;;  %v5518_v29 = vld [vmem:[#allocation9 + $0x36c] ss:$16 sps:$4 sm:$0xff]  }
  0xcc   :  { %1306 = vmatprep.subr.bf16.mxu1 %v5431_v30  ;;  %v5521_v30 = vld [vmem:[#allocation9 + $0x46c] ss:$16 sps:$4 sm:$0xff]  }
  0xce   :  { %1266 = vmatpush1.bf16.msra.mxu0 %v5426_v31  ;;  %v5516_v31 = vld [vmem:[#allocation9 + $0x368] ss:$16 sps:$4 sm:$0xff]  }
  0xcf   :  { %1307 = vmatpush1.bf16.msra.mxu1 %v5429_v32  ;;  %1267 = vmatprep.subr.bf16.mxu0 %v5434_v33  ;;  %v5519_v32 = vld [vmem:[#allocation9 + $0x468] ss:$16 sps:$4 sm:$0xff]   ;;  %v5524_v33 = vld [vmem:[#allocation9 + $0x34c] ss:$16 sps:$4 sm:$0xff]  }
  0xd0   :  { %1308 = vmatprep.subr.bf16.mxu1 %v5437_v34  ;;  %v5527_v34 = vld [vmem:[#allocation9 + $0x44c] ss:$16 sps:$4 sm:$0xff]  }
  0xd2   :  { %1268 = vmatpush1.bf16.msra.mxu0 %v5432_v35  ;;  %v5522_v35 = vld [vmem:[#allocation9 + $0x348] ss:$16 sps:$4 sm:$0xff]  }
  0xd3   :  { %1309 = vmatpush1.bf16.msra.mxu1 %v5435_v36  ;;  %1269 = vmatprep.subr.bf16.mxu0 %v5440_v37  ;;  %v5525_v36 = vld [vmem:[#allocation9 + $0x448] ss:$16 sps:$4 sm:$0xff]   ;;  %v5530_v37 = vld [vmem:[#allocation9 + $0x32c] ss:$16 sps:$4 sm:$0xff]  }
  0xd4   :  { %1310 = vmatprep.subr.bf16.mxu1 %v5443_v38  ;;  %v5533_v38 = vld [vmem:[#allocation9 + $0x42c] ss:$16 sps:$4 sm:$0xff]  }
  0xd6   :  { %1270 = vmatpush1.bf16.msra.mxu0 %v5438_v39  ;;  %v5528_v39 = vld [vmem:[#allocation9 + $0x328] ss:$16 sps:$4 sm:$0xff]  }
  0xd7   :  { %1311 = vmatpush1.bf16.msra.mxu1 %v5441_v40  ;;  %1337 = vmatprep.subr.bf16.mxu0 %v5449_v43  ;;  %v5531_v40 = vld [vmem:[#allocation9 + $0x428] ss:$16 sps:$4 sm:$0xff]  }
  0xd8   :  { %1312 = vmatprep.subr.bf16.mxu1 %v5446_v42  ;;  %v5539_v42 = vld [vmem:[#allocation9 + $0x40c] ss:$16 sps:$4 sm:$0xff]   ;;  %v5534_v43 = vld [vmem:[#allocation9 + $0x308] ss:$16 sps:$4 sm:$0xff]  }
  0xd9   :  { %1288 = vmatmul.mubr.bf16.vlgmr.msra.gmra.mxu0 %v6505_v44 }
  0xda   :  { %1338 = vmatpush1.bf16.msra.mxu0 %v5447_v46  ;;  %1369 = vmatprep.mubr.bf16.mxu0 %v6493_v52  ;;  %v5479_v52 = vld [vmem:[#allocation9 + $0x24c] ss:$16 sps:$4 sm:$0xff]  }
  0xdb   :  { %1313 = vmatpush2.bf16.msra.mxu1 %v5444_v45  ;;  %1339 = vmatprep.subr.bf16.mxu0 %v5455_v48  ;;  %v5537_v45 = vld [vmem:[#allocation9 + $0x408] ss:$16 sps:$4 sm:$0xff]   ;;  %v5542_v46 = vld [vmem:[#allocation11 + $0x74] ss:$8 sps:$4 sm:$0xff]  }
  0xdc   :  { %1314 = vmatprep.subr.bf16.mxu1 %v5452_v47  ;;  %v5545_v47 = vld [vmem:[#allocation11 + $0x174] ss:$8 sps:$4 sm:$0xff]   ;;  %v5540_v48 = vld [vmem:[#allocation11 + $0x70] ss:$8 sps:$4 sm:$0xff]  }
  0xde   :  { %1340 = vmatpush1.bf16.msra.mxu0 %v5453_v50  ;;  %v5548_v50 = vld [vmem:[#allocation11 + $0x64] ss:$8 sps:$4 sm:$0xff]  }
  0xdf   :  { %1315 = vmatpush2.bf16.msra.mxu1 %v5450_v49  ;;  %1341 = vmatprep.subr.bf16.mxu0 %v5461_v53  ;;  %v5543_v49 = vld [vmem:[#allocation11 + $0x170] ss:$8 sps:$4 sm:$0xff]   ;;  %v5546_v53 = vld [vmem:[#allocation11 + $0x60] ss:$8 sps:$4 sm:$0xff]  }
  0xe0   :  { %1316 = vmatprep.subr.bf16.mxu1 %v5458_v51  ;;  %v5551_v51 = vld [vmem:[#allocation11 + $0x164] ss:$8 sps:$4 sm:$0xff]  }
  0xe2   :  { %1342 = vmatpush1.bf16.msra.mxu0 %v5459_v55  ;;  %v5554_v55 = vld [vmem:[#allocation11 + $0x54] ss:$8 sps:$4 sm:$0xff]  }
  0xe3   :  { %1317 = vmatpush2.bf16.msra.mxu1 %v5456_v54  ;;  %1343 = vmatprep.subr.bf16.mxu0 %v5467_v57  ;;  %v5549_v54 = vld [vmem:[#allocation11 + $0x160] ss:$8 sps:$4 sm:$0xff]   ;;  %v5560_v57 = vld [vmem:[#allocation11 + $0x44] ss:$8 sps:$4 sm:$0xff]  }
  0xe4   :  { %1318 = vmatprep.subr.bf16.mxu1 %v5464_v56  ;;  %v5552_v56 = vld [vmem:[#allocation11 + $0x50] ss:$8 sps:$4 sm:$0xff]  }
  0xe6   :  { %1344 = vmatpush1.bf16.msra.mxu0 %v5465_v59  ;;  %v5558_v59 = vld [vmem:[#allocation11 + $0x40] ss:$8 sps:$4 sm:$0xff]  }
  0xe7   :  { %1319 = vmatpush2.bf16.msra.mxu1 %v5462_v58  ;;  %1345 = vmatprep.subr.bf16.mxu0 %v5473_v61  ;;  %v5563_v58 = vld [vmem:[#allocation11 + $0x144] ss:$8 sps:$4 sm:$0xff]   ;;  %v5566_v61 = vld [vmem:[#allocation11 + $0x34] ss:$8 sps:$4 sm:$0xff]  }
  0xe8   :  { %1320 = vmatprep.subr.bf16.mxu1 %v5470_v60  ;;  %v5561_v60 = vld [vmem:[#allocation11 + $0x140] ss:$8 sps:$4 sm:$0xff]  }
  0xea   :  { %1346 = vmatpush1.bf16.msra.mxu0 %v5471_v63  ;;  %v5564_v63 = vld [vmem:[#allocation11 + $0x30] ss:$8 sps:$4 sm:$0xff]  }
  0xeb   :  { %1321 = vmatpush2.bf16.msra.mxu1 %v5468_v62  ;;  %1347 = vmatprep.subr.bf16.mxu0 %v5479_v52  ;;  %v5569_v62 = vld [vmem:[#allocation11 + $0x134] ss:$8 sps:$4 sm:$0xff]   ;;  %v5570_v52 = vld [vmem:[#allocation11 + $0x20] ss:$8 sps:$4 sm:$0xff]  }
  0xec   :  { %1322 = vmatprep.subr.bf16.mxu1 %v5476_v0  ;;  %v5567_v0 = vld [vmem:[#allocation11 + $0x130] ss:$8 sps:$4 sm:$0xff]  }
  0xee   :  { %1348 = vmatpush1.bf16.msra.mxu0 %v5477_v2  ;;  %v5573_v2 = vld [vmem:[#allocation11 + $0x120] ss:$8 sps:$4 sm:$0xff]  }
  0xef   :  { %1323 = vmatpush2.bf16.msra.mxu1 %v5474_v1  ;;  %1349 = vmatprep.subr.bf16.mxu0 %v5485_v4  ;;  %v5572_v1 = vld [vmem:[#allocation11 + $0x24] ss:$8 sps:$4 sm:$0xff]   ;;  %v5578_v4 = vld [vmem:[#allocation11 + $0x14] ss:$8 sps:$4 sm:$0xff]  }
  0xf0   :  { %1324 = vmatprep.subr.bf16.mxu1 %v5482_v3  ;;  %v5575_v3 = vld [vmem:[#allocation11 + $0x124] ss:$8 sps:$4 sm:$0xff]  }
  0xf2   :  { %1350 = vmatpush1.bf16.msra.mxu0 %v5483_v6 }
  0xf3   :  { %1325 = vmatpush2.bf16.msra.mxu1 %v5480_v5  ;;  %1351 = vmatprep.subr.bf16.mxu0 %v5491_v10  ;;  %v5581_v5 = vld [vmem:[#allocation11 + $0x114] ss:$8 sps:$4 sm:$0xff]  }
  0xf4   :  { %1326 = vmatprep.subr.bf16.mxu1 %v5488_v7 }
  0xf6   :  { %1352 = vmatpush1.bf16.msra.mxu0 %v5489_v12  ;;  %v5579_v12 = vld [vmem:[#allocation11 + $0x110] ss:$8 sps:$4 sm:$0xff]  }
  0xf7   :  { %1327 = vmatpush2.bf16.msra.mxu1 %v5486_v11  ;;  %1353 = vmatprep.subr.bf16.mxu0 %v5494_v13  ;;  %v5576_v11 = vld [vmem:[#allocation11 + $0x10] ss:$8 sps:$4 sm:$0xff]  }
  0xf8   :  { %1378 = vmatprep.subr.bf16.mxu1 %v5497_v14 }
  0xfa   :  { %1329 = vmatmul.mubr.bf16.vlgmr.msra.gmra.mxu1 %v6497_v8  ;;  %1354 = vmatpush2.bf16.msra.mxu0 %v5492_v15  ;;  %v5513_v8 = vld [vmem:[#allocation9 + $0x488] ss:$16 sps:$4 sm:$0xff]   ;;  %v5584_v15 = vld [vmem:[#allocation11 + $0x4] ss:$8 sps:$4 sm:$0xff]  }
  0xfb   :  { %1379 = vmatpush1.bf16.msra.mxu1 %v5495_v16  ;;  %1355 = vmatprep.subr.bf16.mxu0 %v5500_v17  ;;  %v5587_v16 = vld [vmem:[#allocation11 + $0x104] ss:$8 sps:$4 sm:$0xff]  }
  0xfc   :  { %1380 = vmatprep.subr.bf16.mxu1 %v5503_v19  ;;  %1410 = vmatprep.mubr.bf16.mxu1 %v6357_v18 }
  0xfe   :  { %1356 = vmatpush2.bf16.msra.mxu0 %v5498_v20 }
  0xff   :  { %1381 = vmatpush1.bf16.msra.mxu1 %v5501_v21  ;;  %1357 = vmatprep.subr.bf16.mxu0 %v5506_v22  ;;  %v5582_v21 = vld [vmem:[#allocation11] ss:$8 sps:$4 sm:$0xff]  }
 0x100   :  { %1382 = vmatprep.subr.bf16.mxu1 %v5509_v23  ;;  %v5585_v22 = vld [vmem:[#allocation11 + $0x100] ss:$8 sps:$4 sm:$0xff]  }
 0x102   :  { %1358 = vmatpush2.bf16.msra.mxu0 %v5504_v24 }
 0x103   :  { %1383 = vmatpush1.bf16.msra.mxu1 %v5507_v25  ;;  %1359 = vmatprep.subr.bf16.mxu0 %v5512_v26  ;;  %v5590_v25 = vld [vmem:[#allocation11 + $0xf4] ss:$8 sps:$4 sm:$0xff]  }
 0x104   :  { %1384 = vmatprep.subr.bf16.mxu1 %v5515_v27  ;;  %v5593_v26 = vld [vmem:[#allocation11 + $0x1f4] ss:$8 sps:$4 sm:$0xff]   ;;  %v5588_v27 = vld [vmem:[#allocation11 + $0xf0] ss:$8 sps:$4 sm:$0xff]  }
 0x106   :  { %1360 = vmatpush2.bf16.msra.mxu0 %v5510_v28  ;;  %v5591_v28 = vld [vmem:[#allocation11 + $0x1f0] ss:$8 sps:$4 sm:$0xff]  }
 0x107   :  { %1385 = vmatpush1.bf16.msra.mxu1 %v5513_v8  ;;  %1361 = vmatprep.subr.bf16.mxu0 %v5518_v29  ;;  %v5596_v8 = vld [vmem:[#allocation11 + $0xe4] ss:$8 sps:$4 sm:$0xff]  }
 0x108   :  { %1386 = vmatprep.subr.bf16.mxu1 %v5521_v30  ;;  %v5599_v29 = vld [vmem:[#allocation11 + $0x1e4] ss:$8 sps:$4 sm:$0xff]   ;;  %v5594_v30 = vld [vmem:[#allocation11 + $0xe0] ss:$8 sps:$4 sm:$0xff]  }
 0x10a   :  { %1362 = vmatpush2.bf16.msra.mxu0 %v5516_v31  ;;  %v5597_v31 = vld [vmem:[#allocation11 + $0x1e0] ss:$8 sps:$4 sm:$0xff]  }
 0x10b   :  { %1387 = vmatpush1.bf16.msra.mxu1 %v5519_v32  ;;  %1363 = vmatprep.subr.bf16.mxu0 %v5524_v33  ;;  %v5602_v32 = vld [vmem:[#allocation11 + $0xd4] ss:$8 sps:$4 sm:$0xff]  }
 0x10c   :  { %1388 = vmatprep.subr.bf16.mxu1 %v5527_v34  ;;  %v5605_v33 = vld [vmem:[#allocation11 + $0x1d4] ss:$8 sps:$4 sm:$0xff]   ;;  %v5600_v34 = vld [vmem:[#allocation11 + $0xd0] ss:$8 sps:$4 sm:$0xff]  }
 0x10e   :  { %1364 = vmatpush2.bf16.msra.mxu0 %v5522_v35  ;;  %v5603_v35 = vld [vmem:[#allocation11 + $0x1d0] ss:$8 sps:$4 sm:$0xff]  }
 0x10f   :  { %1389 = vmatpush1.bf16.msra.mxu1 %v5525_v36  ;;  %1365 = vmatprep.subr.bf16.mxu0 %v5530_v37  ;;  %v5608_v36 = vld [vmem:[#allocation11 + $0xc4] ss:$8 sps:$4 sm:$0xff]  }
 0x110   :  { %1390 = vmatprep.subr.bf16.mxu1 %v5533_v38  ;;  %v5611_v37 = vld [vmem:[#allocation11 + $0x1c4] ss:$8 sps:$4 sm:$0xff]   ;;  %v5606_v38 = vld [vmem:[#allocation11 + $0xc0] ss:$8 sps:$4 sm:$0xff]  }
 0x112   :  { %1366 = vmatpush2.bf16.msra.mxu0 %v5528_v39  ;;  %v5609_v39 = vld [vmem:[#allocation11 + $0x1c0] ss:$8 sps:$4 sm:$0xff]  }
 0x113   :  { %1391 = vmatpush1.bf16.msra.mxu1 %v5531_v40  ;;  %1367 = vmatprep.subr.bf16.mxu0 %v5536_v41  ;;  %v5614_v40 = vld [vmem:[#allocation11 + $0xb4] ss:$8 sps:$4 sm:$0xff]  }
 0x114   :  { %1392 = vmatprep.subr.bf16.mxu1 %v5539_v42  ;;  %v5617_v41 = vld [vmem:[#allocation11 + $0x1b4] ss:$8 sps:$4 sm:$0xff]   ;;  %v5612_v42 = vld [vmem:[#allocation11 + $0xb0] ss:$8 sps:$4 sm:$0xff]  }
 0x116   :  { %1368 = vmatpush2.bf16.msra.mxu0 %v5534_v43  ;;  %v5615_v43 = vld [vmem:[#allocation11 + $0x1b0] ss:$8 sps:$4 sm:$0xff]  }
 0x117   :  { %1393 = vmatpush1.bf16.msra.mxu1 %v5537_v45  ;;  %2007 = vmatprep.subr.bf16.mxu0 %v5542_v46  ;;  %v5620_v45 = vld [vmem:[#allocation11 + $0xa4] ss:$8 sps:$4 sm:$0xff]  }
 0x118   :  { %2048 = vmatprep.subr.bf16.mxu1 %v5545_v47  ;;  %v5623_v46 = vld [vmem:[#allocation11 + $0x1a4] ss:$8 sps:$4 sm:$0xff]   ;;  %v5618_v47 = vld [vmem:[#allocation11 + $0xa0] ss:$8 sps:$4 sm:$0xff]  }
 0x119   :  { %1370 = vmatmul.mubr.bf16.vlgmr.msra.gmra.mxu0 %v6499_v9  ;;  %v5557_v9 = vld [vmem:[#allocation11 + $0x154] ss:$8 sps:$4 sm:$0xff]  }
 0x11a   :  { %1411 = vmatmul.mubr.bf16.vlgmr.msra.gmra.mxu1 %v6505_v44  ;;  %2008 = vmatpush1.bf16.msra.mxu0 %v5540_v48  ;;  %v5555_v44 = vld [vmem:[#allocation11 + $0x150] ss:$8 sps:$4 sm:$0xff]   ;;  %v5621_v48 = vld [vmem:[#allocation11 + $0x1a0] ss:$8 sps:$4 sm:$0xff]  }
 0x11b   :  { %2049 = vmatpush1.bf16.msra.mxu1 %v5543_v49  ;;  %2009 = vmatprep.subr.bf16.mxu0 %v5548_v50  ;;  %v5626_v49 = vld [vmem:[#allocation11 + $0x94] ss:$8 sps:$4 sm:$0xff]  }
 0x11c   :  { %2050 = vmatprep.subr.bf16.mxu1 %v5551_v51  ;;  %v5629_v50 = vld [vmem:[#allocation11 + $0x194] ss:$8 sps:$4 sm:$0xff]  }
 0x11e   :  { %2010 = vmatpush1.bf16.msra.mxu0 %v5546_v53 }
 0x11f   :  { %2051 = vmatpush1.bf16.msra.mxu1 %v5549_v54  ;;  %2011 = vmatprep.subr.bf16.mxu0 %v5554_v55  ;;  %v5624_v54 = vld [vmem:[#allocation11 + $0x90] ss:$8 sps:$4 sm:$0xff]  }
 0x120   :  { %2052 = vmatprep.subr.bf16.mxu1 %v5557_v9  ;;  %v5627_v55 = vld [vmem:[#allocation11 + $0x190] ss:$8 sps:$4 sm:$0xff]  }
 0x122   :  { %2012 = vmatpush1.bf16.msra.mxu0 %v5552_v56  ;;  %v5632_v56 = vld [vmem:[#allocation11 + $0x84] ss:$8 sps:$4 sm:$0xff]  }
 0x123   :  { %2053 = vmatpush1.bf16.msra.mxu1 %v5555_v44  ;;  %2013 = vmatprep.subr.bf16.mxu0 %v5560_v57  ;;  %v5635_v44 = vld [vmem:[#allocation11 + $0x184] ss:$8 sps:$4 sm:$0xff]  }
 0x124   :  { %2054 = vmatprep.subr.bf16.mxu1 %v5563_v58 }
 0x126   :  { %2014 = vmatpush1.bf16.msra.mxu0 %v5558_v59 }
 0x127   :  { %2055 = vmatpush1.bf16.msra.mxu1 %v5561_v60  ;;  %2015 = vmatprep.subr.bf16.mxu0 %v5566_v61 }
 0x128   :  { %2056 = vmatprep.subr.bf16.mxu1 %v5569_v62 }
 0x12a   :  { %2016 = vmatpush1.bf16.msra.mxu0 %v5564_v63 }
 0x12b   :  { %2057 = vmatpush1.bf16.msra.mxu1 %v5567_v0  ;;  %2017 = vmatprep.subr.bf16.mxu0 %v5572_v1  ;;  %v5633_v1 = vld [vmem:[#allocation11 + $0x180] ss:$8 sps:$4 sm:$0xff]  }
 0x12c   :  { %2058 = vmatprep.subr.bf16.mxu1 %v5575_v3 }
 0x12e   :  { %2018 = vmatpush1.bf16.msra.mxu0 %v5570_v52  ;;  %v5630_v52 = vld [vmem:[#allocation11 + $0x80] ss:$8 sps:$4 sm:$0xff]  }
 0x12f   :  { %2059 = vmatpush1.bf16.msra.mxu1 %v5573_v2  ;;  %2019 = vmatprep.subr.bf16.mxu0 %v5578_v4 }
 0x130   :  { %2060 = vmatprep.subr.bf16.mxu1 %v5581_v5 }
 0x132   :  { %2020 = vmatpush1.bf16.msra.mxu0 %v5576_v11 }
 0x133   :  { %2061 = vmatpush1.bf16.msra.mxu1 %v5579_v12  ;;  %2021 = vmatprep.subr.bf16.mxu0 %v5584_v15 }
 0x134   :  { %2062 = vmatprep.subr.bf16.mxu1 %v5587_v16 }
 0x136   :  { %2022 = vmatpush1.bf16.msra.mxu0 %v5582_v21 }
 0x137   :  { %2063 = vmatpush1.bf16.msra.mxu1 %v5585_v22  ;;  %2023 = vmatprep.subr.bf16.mxu0 %v5590_v25 }
 0x138   :  { %2064 = vmatprep.subr.bf16.mxu1 %v5593_v26 }
 0x13a   :  { %2024 = vmatpush2.bf16.msra.mxu0 %v5588_v27 }
 0x13b   :  { %2065 = vmatpush2.bf16.msra.mxu1 %v5591_v28  ;;  %2025 = vmatprep.subr.bf16.mxu0 %v5596_v8 }
 0x13c   :  { %2066 = vmatprep.subr.bf16.mxu1 %v5599_v29 }
 0x13e   :  { %2026 = vmatpush2.bf16.msra.mxu0 %v5594_v30 }
 0x13f   :  { %2067 = vmatpush2.bf16.msra.mxu1 %v5597_v31  ;;  %2027 = vmatprep.subr.bf16.mxu0 %v5602_v32 }
 0x140   :  { %2068 = vmatprep.subr.bf16.mxu1 %v5605_v33 }
 0x142   :  { %2028 = vmatpush2.bf16.msra.mxu0 %v5600_v34 }
 0x143   :  { %2069 = vmatpush2.bf16.msra.mxu1 %v5603_v35  ;;  %2029 = vmatprep.subr.bf16.mxu0 %v5608_v36 }
 0x144   :  { %2070 = vmatprep.subr.bf16.mxu1 %v5611_v37 }
 0x146   :  { %2030 = vmatpush2.bf16.msra.mxu0 %v5606_v38 }
 0x147   :  { %2071 = vmatpush2.bf16.msra.mxu1 %v5609_v39  ;;  %2031 = vmatprep.subr.bf16.mxu0 %v5614_v40 }
 0x148   :  { %2072 = vmatprep.subr.bf16.mxu1 %v5617_v41 }
 0x14a   :  { %2032 = vmatpush2.bf16.msra.mxu0 %v5612_v42 }
 0x14b   :  { %2073 = vmatpush2.bf16.msra.mxu1 %v5615_v43  ;;  %2033 = vmatprep.subr.bf16.mxu0 %v5620_v45 }
 0x14c   :  { %2074 = vmatprep.subr.bf16.mxu1 %v5623_v46 }
 0x14e   :  { %2034 = vmatpush2.bf16.msra.mxu0 %v5618_v47 }
 0x14f   :  { %2075 = vmatpush2.bf16.msra.mxu1 %v5621_v48  ;;  %2035 = vmatprep.subr.bf16.mxu0 %v5626_v49 }
 0x150   :  { %2076 = vmatprep.subr.bf16.mxu1 %v5629_v50 }
 0x152   :  { %2036 = vmatpush2.bf16.msra.mxu0 %v5624_v54 }
 0x153   :  { %2077 = vmatpush2.bf16.msra.mxu1 %v5627_v55  ;;  %2037 = vmatprep.subr.bf16.mxu0 %v5632_v56 }
 0x154   :  { %2078 = vmatprep.subr.bf16.mxu1 %v5635_v44 }
 0x156   :  { %2038 = vmatpush2.bf16.msra.mxu0 %v5630_v52 }
 0x157   :  { %2079 = vmatpush2.bf16.msra.mxu1 %v5633_v1 }
 0x179   :  { %v1207_v6 = vpop.f32.mrf.mxu0 }
 0x17a   :  { %v1248_v7 = vpop.f32.mrf.mxu1 }
 0x17b   :  { %v6513_v10 = vadd.f32 %v1248_v7, %v1207_v6  ;;  %v1209_v13 = vpop.f32.mrf.mxu0 }
 0x17c   :  { %v1250_v14 = vpop.f32.mrf.mxu1 }
 0x17d   :  { %v6515_v17 = vadd.f32 %v1250_v14, %v1209_v13  ;;  %v1211_v19 = vpop.f32.mrf.mxu0 }
 0x17e   :  { %v1252_v20 = vpop.f32.mrf.mxu1 }
 0x17f   :  { %v1212_v23 = vpop.f32.mrf.mxu0 }
 0x180   :  { %v1253_v24 = vpop.f32.mrf.mxu1 }
 0x199   :  { %v1289_v51 = vpop.f32.mrf.mxu0 }
 0x19a   :  { %v6518_v53 = vadd.f32 %v1289_v51, %v6513_v10 }
 0x19b   :  { %v1291_v9 = vpop.f32.mrf.mxu0 }
 0x19c   :  { %v1421_v57 = vrot.slane %v6518_v53, 4  ;;  %v1449_v58 = vmul.f32 %v6518_v53, %v6518_v53  ;;  %v6524_v59 = vadd.f32 %v1291_v9, %v6515_v17 }
 0x19d   :  { %v1293_v60 = vpop.f32.mrf.mxu0 }
 0x19e   :  { %v1422_v61 = vadd.f32 %v1421_v57, %v6518_v53  ;;  %v1453_v62 = vrot.slane %v1449_v58, 4  ;;  %v1427_v63 = vrot.slane %v6524_v59, 4  ;;  %v1450_v0 = vmul.f32 %v6524_v59, %v6524_v59 }
 0x19f   :  { %v1294_v2 = vpop.f32.mrf.mxu0 }
 0x1a0   :  { %v1423_v3 = vrot.slane %v1422_v61, 2  ;;  %v1454_v4 = vadd.f32 %v1453_v62, %v1449_v58  ;;  %v1428_v5 = vadd.f32 %v1427_v63, %v6524_v59  ;;  %v1459_v6 = vrot.slane %v1450_v0, 4 }
 0x1a2   :  { %v1424_v7 = vadd.f32 %v1423_v3, %v1422_v61  ;;  %v1455_v10 = vrot.slane %v1454_v4, 2  ;;  %v1429_v11 = vrot.slane %v1428_v5, 2  ;;  %v1460_v12 = vadd.f32 %v1459_v6, %v1450_v0 }
 0x1a4   :  { %v1425_v13 = vrot.slane %v1424_v7, 1  ;;  %v1456_v14 = vadd.f32 %v1455_v10, %v1454_v4  ;;  %v1430_v15 = vadd.f32 %v1429_v11, %v1428_v5  ;;  %v1461_v16 = vrot.slane %v1460_v12, 2 }
 0x1a6   :  { %v1426_v17 = vadd.f32 %v1425_v13, %v1424_v7  ;;  %v1457_v19 = vrot.slane %v1456_v14, 1  ;;  %v1431_v20 = vrot.slane %v1430_v15, 1  ;;  %v1462_v21 = vadd.f32 %v1461_v16, %v1460_v12 }
 0x1a8   :  { %v6531_v22 = vmul.f32 0.125, %v1426_v17  ;;  %v1458_v23 = vadd.f32 %v1457_v19, %v1456_v14  ;;  %v1432_v24 = vadd.f32 %v1431_v20, %v1430_v15  ;;  %v1463_v25 = vrot.slane %v1462_v21, 1 }
 0x1aa   :  { %v1477_v26 = vmul.f32 0.125, %v1458_v23  ;;  %v1481_v27 = vmul.f32 %v6531_v22, %v6531_v22  ;;  %v1464_v28 = vadd.f32 %v1463_v25, %v1462_v21  ;;  %v6535_v8 = vmul.f32 0.125, %v1432_v24 }
 0x1ac   :  { %v1485_v29 = vsub.f32 %v1477_v26, %v1481_v27  ;;  %v1478_v30 = vmul.f32 0.125, %v1464_v28  ;;  %v1482_v31 = vmul.f32 %v6535_v8, %v6535_v8 }
 0x1ae   :  { %v1489_v32 = vmax.f32 %v1485_v29, 0.0  ;;  %v1486_v33 = vsub.f32 %v1478_v30, %v1482_v31 }
 0x1b0   :  { %v1493_v34 = vadd.f32 1e-05, %v1489_v32  ;;  %v1490_v35 = vmax.f32 %v1486_v33, 0.0 }
 0x1b2   :  { %v1494_v36 = vadd.f32 1e-05, %v1490_v35  ;;  %5652 = vrsqrt.f32 %v1493_v34  ;;  %v6358_v35 = vmov 1966171168  }
 0x1b4   :  { %5654 = vrsqrt.f32 %v1494_v36  ;;  %v1508_v36 = vunpack.c.l.s4 %v6358_v35  ;;  %v5644_v35 = vld [vmem:[#allocation12 + $0x58] sm:$0xff]  }
 0x1ba   :  { %v1330_v37 = vpop.f32.mrf.mxu1 }
 0x1bc   :  { %v1332_v38 = vpop.f32.mrf.mxu1 }
 0x1be   :  { %v1334_v39 = vpop.f32.mrf.mxu1 }
 0x1bf   :  { %v6539_v41 = vpop.eup %5652 }
 0x1c0   :  { %v1335_v40 = vpop.f32.mrf.mxu1 }
 0x1c1   :  { %v6541_v42 = vpop.eup %5654 }
 0x1c2   :  { %v1505_v43 = vcombine.low %v6539_v41, %v6541_v42 }
 0x1d9   :  { %v1371_v45 = vpop.f32.mrf.mxu0 }
 0x1da   :  { %v1412_v46 = vpop.f32.mrf.mxu1  ;;  %v1372_v47 = vadd.f32 %v1371_v45, %v1330_v37  ;;  %v1510_v37 = vlaneseq }
 0x1db   :  { %v1373_v48 = vpop.f32.mrf.mxu0 }
 0x1dc   :  { %v1414_v49 = vpop.f32.mrf.mxu1  ;;  %v6545_v50 = vadd.f32 %v1412_v46, %v1372_v47  ;;  %v1374_v51 = vadd.f32 %v1373_v48, %v1332_v38  ;;  %v1509_v38 = vunpack.c.0.s8 %v1508_v36  ;;  %v6557_v39 = vshrl.u32 %v1510_v37, 7  ;;  %v5645_v36 = vld [vmem:[#allocation12 + $0x18] sm:$0xff]   ;;  %v5646_v37 = vld [vmem:[#allocation12 + $0x50] sm:$0xff]  }
 0x1dd   :  { %v1375_v54 = vpop.f32.mrf.mxu0 }
 0x1de   :  { %v1416_v55 = vpop.f32.mrf.mxu1  ;;  %v1433_v9 = vrot.slane %v6545_v50, 4  ;;  %v1451_v56 = vmul.f32 %v6545_v50, %v6545_v50  ;;  %v6550_v44 = vadd.f32 %v1414_v49, %v1374_v51  ;;  %v6560_v41 = vsub.s32 %v1509_v38, %v6557_v39  ;;  %v1419_v49 = vld [vmem:[%s6749_s4] sm:$0xf]  ;;  %v5647_v38 = vld [vmem:[#allocation12 + $0x10] sm:$0xff]   ;;  %s6359_s4 = smov [#allocation2]  }
 0x1df   :  { %v1376_v57 = vpop.f32.mrf.mxu0  ;;  %v6568_v51 = vsub.s32 0, %v6557_v39  ;;  %v6572_v55 = vsub.s32 1, %v6557_v39  ;;  %s175_s30 = sshll.u32 %s6359_s4, 4  ;;  %s176_s30 = int_to_ptr.vmem [resolvable:$true] %s175_s30 }
 0x1e0   :  { %v1417_v58 = vpop.f32.mrf.mxu1  ;;  %v1434_v60 = vadd.f32 %v1433_v9, %v6545_v50  ;;  %v1465_v61 = vrot.slane %v1451_v56, 4  ;;  %v1439_v62 = vrot.slane %v6550_v44, 4  ;;  %v1452_v63 = vmul.f32 %v6550_v44, %v6550_v44  ;;  %s6230_s2 = scalar_lea.vmem %s176_s30, 2048  ;;  %p6235_p4 = scmp.lt.s32.totalorder %s176_s30, %s176_s30 }
 0x1e1   :  { %v1513_v46 = vrot.slane %v1505_v43, %v6560_v41  ;;  %v6575_v9 = vsub.s32 2, %v6557_v39  ;;  %v6578_v43 = vsub.s32 3, %v6557_v39  ;;  %p6231_p3 = scmp.ne.s32.totalorder %s176_s30, %s6230_s2  ;;  %p6236_p5 = scmp.lt.s32.totalorder %s6230_s2, %s6230_s2 }
 0x1e2   :  { %v1435_v0 = vrot.slane %v1434_v60, 2  ;;  %v1466_v52 = vadd.f32 %v1465_v61, %v1451_v56  ;;  %v1440_v1 = vadd.f32 %v1439_v62, %v6550_v44  ;;  %v1471_v2 = vrot.slane %v1452_v63, 4 }
 0x1e3   :  { %p6237_p6 = por %p6236_p5, %p6235_p4 }
 0x1e4   :  { %v1436_v3 = vadd.f32 %v1435_v0, %v1434_v60  ;;  %v1467_v4 = vrot.slane %v1466_v52, 2  ;;  %v1441_v5 = vrot.slane %v1440_v1, 2  ;;  %v1472_v6 = vadd.f32 %v1471_v2, %v1452_v63 }
 0x1e5   :  { %p6238_p7 = pnand %p6237_p6, %p6231_p3 }
 0x1e6   :  { %v1437_v7 = vrot.slane %v1436_v3, 1  ;;  %v1468_v10 = vadd.f32 %v1467_v4, %v1466_v52  ;;  %v1442_v11 = vadd.f32 %v1441_v5, %v1440_v1  ;;  %v1473_v12 = vrot.slane %v1472_v6, 2 }
 0x1e8   :  { %v1438_v13 = vadd.f32 %v1437_v7, %v1436_v3  ;;  %v1469_v14 = vrot.slane %v1468_v10, 1  ;;  %v1443_v15 = vrot.slane %v1442_v11, 1  ;;  %v1474_v16 = vadd.f32 %v1473_v12, %v1472_v6 }
 0x1ea   :  { %v1447_v17 = vmul.f32 0.125, %v1438_v13  ;;  %v1470_v19 = vadd.f32 %v1469_v14, %v1468_v10  ;;  %v1444_v20 = vadd.f32 %v1443_v15, %v1442_v11  ;;  %v1475_v21 = vrot.slane %v1474_v16, 1  ;;  %v1420_v10 = vld [vmem:[#allocation14] sm:$0xf] }
 0x1ec   :  { %v1479_v23 = vmul.f32 0.125, %v1470_v19  ;;  %v1483_v24 = vmul.f32 %v1447_v17, %v1447_v17  ;;  %v1448_v25 = vmul.f32 0.125, %v1444_v20  ;;  %v1476_v26 = vadd.f32 %v1475_v21, %v1474_v16 }
 0x1ee   :  { %v1487_v27 = vsub.f32 %v1479_v23, %v1483_v24  ;;  %v1480_v28 = vmul.f32 0.125, %v1476_v26  ;;  %v1484_v29 = vmul.f32 %v1448_v25, %v1448_v25 }
 0x1f0   :  { %v1491_v30 = vmax.f32 %v1487_v27, 0.0  ;;  %v1488_v31 = vsub.f32 %v1480_v28, %v1484_v29  ;;  %v5636_v27 = vld [vmem:[#allocation12 + $0x78] sm:$0xff]   ;;  %v5638_v29 = vld [vmem:[#allocation12 + $0x70] sm:$0xff]  }
 0x1f1   :  { %v5637_v28 = vld [vmem:[#allocation12 + $0x38] sm:$0xff]   ;;  %5212 = vmatprep.subr.bf16.mxu0 %v5636_v27 }
 0x1f2   :  { %v1495_v32 = vadd.f32 1e-05, %v1491_v30  ;;  %v1492_v33 = vmax.f32 %v1488_v31, 0.0  ;;  %v5639_v30 = vld [vmem:[#allocation12 + $0x30] sm:$0xff]   ;;  %v5640_v31 = vld [vmem:[#allocation12 + $0x68] sm:$0xff]  }
 0x1f4   :  { %v1496_v34 = vadd.f32 1e-05, %v1492_v33  ;;  %5656 = vrsqrt.f32 %v1495_v32  ;;  %v5641_v32 = vld [vmem:[#allocation12 + $0x28] sm:$0xff]   ;;  %v5642_v33 = vld [vmem:[#allocation12 + $0x60] sm:$0xff]  }
 0x1f6   :  { %5658 = vrsqrt.f32 %v1496_v34  ;;  %v5643_v34 = vld [vmem:[#allocation12 + $0x20] sm:$0xff]  }
 0x201   :  { %v5657_v40 = vpop.eup %5656 }
 0x203   :  { %v5659_v42 = vpop.eup %5658 }
 0x204   :  { %v1506_v45 = vcombine.low %v5657_v40, %v5659_v42  ;;  %v5648_v40 = vld [vmem:[#allocation12 + $0x48] sm:$0xff]  }
 0x205   :  { %v5649_v42 = vld [vmem:[#allocation12 + $0x8] sm:$0xff]  }
 0x206   :  { %v1520_v47 = vrot.slane %v1506_v45, %v6560_v41  ;;  %v5650_v45 = vld [vmem:[#allocation12 + $0x40] sm:$0xff]  }
 0x208   :  { %v1521_v48 = vcombine.low %v1513_v46, %v1520_v47  ;;  %v5651_v46 = vld [vmem:[#allocation12] sm:$0xff]  }
 0x20a   :  { %v1528_v54 = vrot.slane %v1521_v48, %v6560_v41 }
 0x20c   :  { %v1530_v56 = vmul.f32 %v1528_v54, %v1419_v49 }
 0x20e   :  { %v1535_v57 = vrot.slane %v1530_v56, %v6568_v51  ;;  %v1539_v58 = vrot.slane %v1530_v56, %v6572_v55  ;;  %v1543_v60 = vrot.slane %v1530_v56, %v6575_v9  ;;  %v1547_v61 = vrot.slane %v1530_v56, %v6578_v43 }
 0x210   :  { %v1552_v62 = vmul.f32 %v1535_v57, %v6531_v22  ;;  %v1553_v63 = vmul.f32 %v1539_v58, %v6535_v8  ;;  %v1554_v0 = vmul.f32 %v1543_v60, %v1447_v17  ;;  %v1555_v52 = vmul.f32 %v1547_v61, %v1448_v25 }
 0x211   :  { %v1587_v1 = vmul.f32 %v1539_v58, %v6524_v59  ;;  %v1586_v2 = vmul.f32 %v1535_v57, %v6518_v53  ;;  %v1589_v22 = vmul.f32 %v1547_v61, %v6550_v44  ;;  %v1588_v8 = vmul.f32 %v1543_v60, %v6545_v50 }
 0x212   :  { %v1560_v3 = vcombine.low %v1552_v62, %v1553_v63  ;;  %v1561_v4 = vcombine.low %v1554_v0, %v1555_v52 }
 0x214   :  { %v1568_v5 = vrot.slane %v1560_v3, %v6560_v41  ;;  %v1575_v6 = vrot.slane %v1561_v4, %v6560_v41 }
 0x216   :  { %v1576_v7 = vcombine.low %v1568_v5, %v1575_v6 }
 0x218   :  { %v1583_v11 = vrot.slane %v1576_v7, %v6560_v41 }
 0x21a   :  { %v1585_v12 = vsub.f32 %v1420_v10, %v1583_v11 }
 0x21c   :  { %v1598_v13 = vrot.slane %v1585_v12, %v6572_v55  ;;  %v1606_v59 = vrot.slane %v1585_v12, %v6578_v43  ;;  %v1594_v53 = vrot.slane %v1585_v12, %v6568_v51  ;;  %v1602_v14 = vrot.slane %v1585_v12, %v6575_v9 }
 0x21e   :  { %v1612_v15 = vadd.f32 %v1598_v13, %v1587_v1  ;;  %v1614_v16 = vadd.f32 %v1606_v59, %v1589_v22  ;;  %v1611_v17 = vadd.f32 %v1594_v53, %v1586_v2  ;;  %v1613_v19 = vadd.f32 %v1602_v14, %v1588_v8 }
 0x220   :  { %v1616_v20 = vmax.f32 %v1612_v15, 0.0  ;;  %v1618_v21 = vmax.f32 %v1614_v16, 0.0  ;;  %v1615_v23 = vmax.f32 %v1611_v17, 0.0  ;;  %v1617_v24 = vmax.f32 %v1613_v19, 0.0 }
 0x222   :  { %v1620_v25 = vpack.c.bf16 %v1616_v20, %v1616_v20  ;;  %v1622_v44 = vpack.c.bf16 %v1618_v21, %v1618_v21  ;;  %v1619_v26 = vpack.c.bf16 %v1615_v23, %v1615_v23  ;;  %v1621_v50 = vpack.c.bf16 %v1617_v24, %v1617_v24 }
 0x224   :  { %2039 = vmatprep.mubr.bf16.mxu0 %v1620_v25  ;;  %2080 = vmatprep.mubr.bf16.mxu1 %v1622_v44 }
 0x225   :  { %2040 = vmatmul.mubr.bf16.vlgmr.msra.gmra.mxu0 %v1619_v26  ;;  %2081 = vmatmul.mubr.bf16.vlgmr.msra.gmra.mxu1 %v1621_v50 }
 0x226   :  { %5213 = vmatpush3.bf16.msra.mxu0 %v5637_v28 }
 0x227   :  { %5214 = vmatprep.subr.bf16.mxu0 %v5638_v29 }
 0x22a   :  { %5215 = vmatpush3.bf16.msra.mxu0 %v5639_v30 }
 0x22b   :  { %5216 = vmatprep.subr.bf16.mxu0 %v5640_v31 }
 0x22e   :  { %5217 = vmatpush3.bf16.msra.mxu0 %v5641_v32 }
 0x22f   :  { %5218 = vmatprep.subr.bf16.mxu0 %v5642_v33 }
 0x232   :  { %5219 = vmatpush3.bf16.msra.mxu0 %v5643_v34 }
 0x233   :  { %5220 = vmatprep.subr.bf16.mxu0 %v5644_v35 }
 0x236   :  { %5221 = vmatpush3.bf16.msra.mxu0 %v5645_v36 }
 0x237   :  { %5222 = vmatprep.subr.bf16.mxu0 %v5646_v37 }
 0x23a   :  { %5223 = vmatpush3.bf16.msra.mxu0 %v5647_v38  ;;  %v2089_v38 = vld [vmem:[#allocation15] sm:$0x3] }
 0x23b   :  { %5224 = vmatprep.subr.bf16.mxu0 %v5648_v40 }
 0x23e   :  { %5225 = vmatpush3.bf16.msra.mxu0 %v5649_v42 }
 0x23f   :  { %5226 = vmatprep.subr.bf16.mxu0 %v5650_v45 }
 0x242   :  { %5227 = vmatpush3.bf16.msra.mxu0 %v5651_v46 }
 0x2e5   :  { %v2041_v47 = vpop.f32.mrf.mxu0  ;;  %v2082_v48 = vpop.f32.mrf.mxu1 }
 0x2e6   :  { %v6597_v49 = vadd.f32 %v2082_v48, %v2041_v47 }
 0x2e7   :  { %v2043_v54 = vpop.f32.mrf.mxu0  ;;  %v2084_v56 = vpop.f32.mrf.mxu1 }
 0x2e8   :  { %v2091_v57 = vrot.slane %v6597_v49, 4  ;;  %v2105_v58 = vmul.f32 %v6597_v49, %v6597_v49  ;;  %v2085_v60 = vadd.f32 %v2084_v56, %v2043_v54 }
 0x2e9   :  { %v2045_v61 = vpop.f32.mrf.mxu0  ;;  %v2086_v62 = vpop.f32.mrf.mxu1 }
 0x2ea   :  { %v2092_v63 = vadd.f32 %v2091_v57, %v6597_v49  ;;  %v2107_v0 = vrot.slane %v2105_v58, 4  ;;  %v2097_v52 = vrot.slane %v2085_v60, 4  ;;  %v2106_v1 = vmul.f32 %v2085_v60, %v2085_v60  ;;  %v2090_v57 = vld [vmem:[#allocation17] sm:$0x3] }
 0x2eb   :  { %v2046_v2 = vpop.f32.mrf.mxu0  ;;  %v2087_v3 = vpop.f32.mrf.mxu1 }
 0x2ec   :  { %v2093_v4 = vrot.slane %v2092_v63, 2  ;;  %v2108_v5 = vadd.f32 %v2107_v0, %v2105_v58  ;;  %v2098_v6 = vadd.f32 %v2097_v52, %v2085_v60  ;;  %v2113_v7 = vrot.slane %v2106_v1, 4 }
 0x2ee   :  { %v2094_v10 = vadd.f32 %v2093_v4, %v2092_v63  ;;  %v2109_v11 = vrot.slane %v2108_v5, 2  ;;  %v2099_v12 = vrot.slane %v2098_v6, 2  ;;  %v2114_v22 = vadd.f32 %v2113_v7, %v2106_v1 }
 0x2f0   :  { %v2095_v8 = vrot.slane %v2094_v10, 1  ;;  %v2110_v13 = vadd.f32 %v2109_v11, %v2108_v5  ;;  %v2100_v59 = vadd.f32 %v2099_v12, %v2098_v6  ;;  %v2115_v53 = vrot.slane %v2114_v22, 2 }
 0x2f2   :  { %v2096_v14 = vadd.f32 %v2095_v8, %v2094_v10  ;;  %v2111_v15 = vrot.slane %v2110_v13, 1  ;;  %v2101_v16 = vrot.slane %v2100_v59, 1  ;;  %v2116_v17 = vadd.f32 %v2115_v53, %v2114_v22 }
 0x2f4   :  { %v2103_v19 = vmul.f32 0.125, %v2096_v14  ;;  %v2112_v20 = vadd.f32 %v2111_v15, %v2110_v13  ;;  %v2102_v21 = vadd.f32 %v2101_v16, %v2100_v59  ;;  %v2117_v23 = vrot.slane %v2116_v17, 1 }
 0x2f6   :  { %v2119_v24 = vmul.f32 0.125, %v2112_v20  ;;  %v2121_v25 = vmul.f32 %v2103_v19, %v2103_v19  ;;  %v2118_v44 = vadd.f32 %v2117_v23, %v2116_v17  ;;  %v2104_v26 = vmul.f32 0.125, %v2102_v21 }
 0x2f8   :  { %v2123_v50 = vsub.f32 %v2119_v24, %v2121_v25  ;;  %v2120_v27 = vmul.f32 0.125, %v2118_v44  ;;  %v2122_v28 = vmul.f32 %v2104_v26, %v2104_v26 }
 0x2fa   :  { %v2125_v29 = vmax.f32 %v2123_v50, 0.0  ;;  %v2124_v30 = vsub.f32 %v2120_v27, %v2122_v28 }
 0x2fc   :  { %v2127_v31 = vadd.f32 1e-05, %v2125_v29  ;;  %v2126_v32 = vmax.f32 %v2124_v30, 0.0 }
 0x2fe   :  { %v2128_v33 = vadd.f32 1e-05, %v2126_v32  ;;  %5660 = vrsqrt.f32 %v2127_v31 }
 0x300   :  { %5662 = vrsqrt.f32 %v2128_v33 }
 0x30b   :  { %v5661_v34 = vpop.eup %5660 }
 0x30d   :  { %v5663_v35 = vpop.eup %5662 }
 0x30e   :  { %v2133_v36 = vcombine.low %v5661_v34, %v5663_v35 }
 0x310   :  { %v2140_v37 = vrot.slane %v2133_v36, %v6560_v41 }
 0x312   :  { %v2147_v40 = vrot.slane %v2140_v37, %v6560_v41 }
 0x314   :  { %v2149_v42 = vmul.f32 %v2147_v40, %v2089_v38 }
 0x316   :  { %v2154_v45 = vrot.slane %v2149_v42, %v6568_v51  ;;  %v2158_v46 = vrot.slane %v2149_v42, %v6572_v55 }
 0x318   :  { %v2161_v47 = vmul.f32 %v2154_v45, %v2103_v19  ;;  %v2162_v48 = vmul.f32 %v2158_v46, %v2104_v26  ;;  %v2183_v62 = vmul.f32 %v2158_v46, %v2085_v60  ;;  %v2182_v0 = vmul.f32 %v2154_v45, %v6597_v49 }
 0x31a   :  { %v2165_v54 = vcombine.low %v2161_v47, %v2162_v48 }
 0x31c   :  { %v2172_v56 = vrot.slane %v2165_v54, %v6560_v41 }
 0x31e   :  { %v2179_v58 = vrot.slane %v2172_v56, %v6560_v41 }
 0x320   :  { %v2181_v61 = vsub.f32 %v2090_v57, %v2179_v58 }
 0x322   :  { %v2192_v63 = vrot.slane %v2181_v61, %v6572_v55  ;;  %v2188_v52 = vrot.slane %v2181_v61, %v6568_v51 }
 0x324   :  { %v2196_v1 = vadd.f32 %v2192_v63, %v2183_v62  ;;  %v2195_v2 = vadd.f32 %v2188_v52, %v2182_v0 }
 0x326   :  { %v2198_v3 = vmax.f32 %v2196_v1, 0.0  ;;  %v2197_v4 = vmax.f32 %v2195_v2, 0.0 }
 0x328   :  { %v2200_v5 = vpack.c.bf16 %v2198_v3, %v2198_v3  ;;  %v2199_v6 = vpack.c.bf16 %v2197_v4, %v2197_v4 }
 0x32a   :  { %2361 = vmatprep.mubr.bf16.mxu0 %v2200_v5 }
 0x32b   :  { %2362 = vmatmul.mubr.bf16.vlgmr.msra.gmra.mxu0 %v2199_v6 }
 0x32c   :  { %6241 = shalt.err (!%p6238_p7)  }
 0x32d   :  { %178 = dma.hbm_to_vmem [thread:$0]  %s6760_s15, 2048, %s176_s30, [#allocation5] }
 0x32e   :  { %s6250_s25 = scalar_lea.vmem %s188_s1, 8192  ;;  %p6255_p9 = scmp.lt.s32.totalorder %s188_s1, %s188_s1 }
 0x32f   :  { %p6251_p8 = scmp.ne.s32.totalorder %s188_s1, %s6250_s25  ;;  %p6256_p10 = scmp.lt.s32.totalorder %s6250_s25, %s6250_s25 }
 0x331   :  { %p6257_p11 = por %p6256_p10, %p6255_p9 }
 0x333   :  { %p6258_p12 = pnand %p6257_p11, %p6251_p8 }
 0x335   :  { %6261 = shalt.err (!%p6258_p12)  }
 0x336   :  { %190 = dma.hbm_to_vmem [thread:$0]  %s6761_s16, 8192, %s188_s1, [#allocation5 + $0x1] }
 0x337   :  { %s6361_s27 = smov [#allocation4]  }
 0x338   :  { %s199_s28 = sshll.u32 %s6361_s27, 4  ;;  %s200_s28 = int_to_ptr.vmem [resolvable:$true] %s199_s28 }
 0x339   :  { %s6270_s0 = scalar_lea.vmem %s200_s28, 20480  ;;  %p6275_p0 = scmp.lt.s32.totalorder %s200_s28, %s200_s28 }
 0x33a   :  { %p6271_p13 = scmp.ne.s32.totalorder %s200_s28, %s6270_s0  ;;  %p6276_p1 = scmp.lt.s32.totalorder %s6270_s0, %s6270_s0 }
 0x33c   :  { %p6277_p2 = por %p6276_p1, %p6275_p0 }
 0x33e   :  { %p6278_p3 = pnand %p6277_p2, %p6271_p13 }
 0x340   :  { %6281 = shalt.err (!%p6278_p3)  }
 0x341   :  { %202 = dma.hbm_to_vmem [thread:$0]  %s6762_s17, 20480, %s200_s28, [#allocation5 + $0x2]  ;;  %v2369_v27 = vld [vmem:[%s6753_s8] sm:$0x1]  ;;  %v2370_v30 = vld [vmem:[#allocation18] sm:$0x1] }
 0x3eb   :  { %v5228_v49 = vpop.f32.mrf.mxu0 }
 0x3ed   :  { %v5229_v60 = vpop.f32.mrf.mxu0 }
 0x3ee   :  { %v5230_v7 = vadd.f32 %v5229_v60, %v5228_v49 }
 0x3ef   :  { %v5231_v10 = vpop.f32.mrf.mxu0 }
 0x3f0   :  { %v2371_v11 = vrot.slane %v5230_v7, 4  ;;  %v2378_v12 = vmul.f32 %v5230_v7, %v5230_v7 }
 0x3f1   :  { %v5232_v22 = vpop.f32.mrf.mxu0 }
 0x3f2   :  { %v2372_v8 = vadd.f32 %v5230_v7, %v2371_v11  ;;  %v2379_v13 = vrot.slane %v2378_v12, 4 }
 0x3f4   :  { %v2373_v59 = vrot.slane %v2372_v8, 2  ;;  %v2380_v53 = vadd.f32 %v2379_v13, %v2378_v12 }
 0x3f6   :  { %v2374_v14 = vadd.f32 %v2373_v59, %v2372_v8  ;;  %v2381_v15 = vrot.slane %v2380_v53, 2 }
 0x3f8   :  { %v2375_v16 = vrot.slane %v2374_v14, 1  ;;  %v2382_v17 = vadd.f32 %v2381_v15, %v2380_v53 }
 0x3fa   :  { %v2376_v19 = vadd.f32 %v2375_v16, %v2374_v14  ;;  %v2383_v20 = vrot.slane %v2382_v17, 1 }
 0x3fc   :  { %v2377_v21 = vmul.f32 0.125, %v2376_v19  ;;  %v2384_v23 = vadd.f32 %v2383_v20, %v2382_v17 }
 0x3fe   :  { %v2385_v24 = vmul.f32 0.125, %v2384_v23  ;;  %v2386_v25 = vmul.f32 %v2377_v21, %v2377_v21 }
 0x400   :  { %v2387_v44 = vsub.f32 %v2385_v24, %v2386_v25 }
 0x402   :  { %v2388_v26 = vmax.f32 %v2387_v44, 0.0 }
 0x404   :  { %v2389_v50 = vadd.f32 1e-05, %v2388_v26 }
 0x406   :  { %5664 = vrsqrt.f32 %v2389_v50 }
 0x413   :  { %v5665_v28 = vpop.eup %5664 }
 0x414   :  { %v2391_v29 = vmul.f32 %v5665_v28, %v2369_v27 }
 0x416   :  { %v2392_v31 = vmul.f32 %v2391_v29, %v2377_v21  ;;  %v2398_v32 = vrot.slane %v2391_v29, %v6568_v51 }
 0x418   :  { %v2393_v33 = vsub.f32 %v2370_v30, %v2392_v31  ;;  %v2400_v34 = vmul.f32 %v5230_v7, %v2398_v32 }
 0x41a   :  { %v2405_v35 = vrot.slane %v2393_v33, %v6568_v51 }
 0x41c   :  { %v2407_v36 = vadd.f32 %v2405_v35, %v2400_v34 }
 0x41e   :  { %2408 = vst [vmem:[#allocation21] sm:$0xff] %v2407_v36 }
 0x41f   :  { %6332 = dma.done.wait [#allocation5], 2048 }
 0x420   :  { %6333 = vsyncadd [#allocation5], 4294965248  ;;  %2542 = vmatprep.mubr.bf16.mxu1 %v6357_v18  ;;  %v5666_v37 = vld [vmem:[#allocation2 + $0x74] ss:$8 sps:$4 sm:$0xff]   ;;  %v5668_v38 = vld [vmem:[#allocation2 + $0x70] ss:$8 sps:$4 sm:$0xff]   ;;  %v2413_v0 = vpack.c.bf16 %v2407_v36, %v2407_v36 }
 0x421   :  { %2510 = vmatprep.subr.bf16.mxu1 %v5666_v37  ;;  %v5669_v40 = vld [vmem:[#allocation2 + $0x64] ss:$8 sps:$4 sm:$0xff]   ;;  %v5671_v42 = vld [vmem:[#allocation2 + $0x60] ss:$8 sps:$4 sm:$0xff]   ;;  %v5672_v45 = vld [vmem:[#allocation2 + $0x54] ss:$8 sps:$4 sm:$0xff]  }
 0x422   :  { %2511 = vmatpush1.bf16.msra.mxu1 %v5668_v38  ;;  %v5674_v46 = vld [vmem:[#allocation2 + $0x50] ss:$8 sps:$4 sm:$0xff]   ;;  %v5675_v47 = vld [vmem:[#allocation2 + $0x44] ss:$8 sps:$4 sm:$0xff]   ;;  %v5677_v48 = vld [vmem:[#allocation2 + $0x40] ss:$8 sps:$4 sm:$0xff]  }
 0x423   :  { %2512 = vmatprep.subr.bf16.mxu1 %v5669_v40  ;;  %v5678_v54 = vld [vmem:[#allocation2 + $0x34] ss:$8 sps:$4 sm:$0xff]   ;;  %v5680_v56 = vld [vmem:[#allocation2 + $0x30] ss:$8 sps:$4 sm:$0xff]   ;;  %v5681_v18 = vld [vmem:[#allocation2 + $0x24] ss:$8 sps:$4 sm:$0xff]  }
 0x424   :  { %v5683_v57 = vld [vmem:[#allocation2 + $0x20] ss:$8 sps:$4 sm:$0xff]   ;;  %v5684_v58 = vld [vmem:[#allocation2 + $0x14] ss:$8 sps:$4 sm:$0xff]   ;;  %v5686_v61 = vld [vmem:[#allocation2 + $0x10] ss:$8 sps:$4 sm:$0xff]  }
 0x425   :  { %v5687_v62 = vld [vmem:[#allocation2 + $0x4] ss:$8 sps:$4 sm:$0xff]   ;;  %v5689_v63 = vld [vmem:[#allocation2] ss:$8 sps:$4 sm:$0xff]  }
 0x426   :  { %2513 = vmatpush1.bf16.msra.mxu1 %v5671_v42 }
 0x427   :  { %2514 = vmatprep.subr.bf16.mxu1 %v5672_v45 }
 0x42a   :  { %2515 = vmatpush1.bf16.msra.mxu1 %v5674_v46  ;;  %v2551_v46 = vld [vmem:[#allocation20] sm:$0x3] }
 0x42b   :  { %2516 = vmatprep.subr.bf16.mxu1 %v5675_v47 }
 0x42e   :  { %2517 = vmatpush1.bf16.msra.mxu1 %v5677_v48 }
 0x42f   :  { %2518 = vmatprep.subr.bf16.mxu1 %v5678_v54 }
 0x432   :  { %2519 = vmatpush1.bf16.msra.mxu1 %v5680_v56 }
 0x433   :  { %2520 = vmatprep.subr.bf16.mxu1 %v5681_v18 }
 0x436   :  { %2521 = vmatpush1.bf16.msra.mxu1 %v5683_v57 }
 0x437   :  { %2522 = vmatprep.subr.bf16.mxu1 %v5684_v58 }
 0x43a   :  { %2523 = vmatpush1.bf16.msra.mxu1 %v5686_v61 }
 0x43b   :  { %2524 = vmatprep.subr.bf16.mxu1 %v5687_v62  ;;  %v2552_v62 = vld [vmem:[%s6756_s11] sm:$0x3] }
 0x43e   :  { %2525 = vmatpush1.bf16.msra.mxu1 %v5689_v63 }
 0x441   :  { %2543 = vmatmul.mubr.bf16.vlgmr.msra.gmra.mxu1 %v2413_v0 }
 0x501   :  { %v2544_v52 = vpop.f32.mrf.mxu1 }
 0x502   :  { %v2553_v1 = vrot.slane %v2544_v52, 4  ;;  %v2567_v2 = vmul.f32 %v2544_v52, %v2544_v52 }
 0x503   :  { %v2546_v3 = vpop.f32.mrf.mxu1 }
 0x504   :  { %v2554_v4 = vadd.f32 %v2553_v1, %v2544_v52  ;;  %v2569_v5 = vrot.slane %v2567_v2, 4  ;;  %v2559_v6 = vrot.slane %v2546_v3, 4  ;;  %v2568_v49 = vmul.f32 %v2546_v3, %v2546_v3 }
 0x505   :  { %v2548_v60 = vpop.f32.mrf.mxu1 }
 0x506   :  { %v2555_v7 = vrot.slane %v2554_v4, 2  ;;  %v2570_v10 = vadd.f32 %v2569_v5, %v2567_v2  ;;  %v2560_v11 = vadd.f32 %v2559_v6, %v2546_v3  ;;  %v2575_v12 = vrot.slane %v2568_v49, 4 }
 0x507   :  { %v2549_v22 = vpop.f32.mrf.mxu1 }
 0x508   :  { %v2556_v8 = vadd.f32 %v2555_v7, %v2554_v4  ;;  %v2571_v13 = vrot.slane %v2570_v10, 2  ;;  %v2561_v59 = vrot.slane %v2560_v11, 2  ;;  %v2576_v53 = vadd.f32 %v2575_v12, %v2568_v49 }
 0x50a   :  { %v2557_v14 = vrot.slane %v2556_v8, 1  ;;  %v2572_v15 = vadd.f32 %v2571_v13, %v2570_v10  ;;  %v2562_v16 = vadd.f32 %v2561_v59, %v2560_v11  ;;  %v2577_v17 = vrot.slane %v2576_v53, 2 }
 0x50c   :  { %v2558_v19 = vadd.f32 %v2557_v14, %v2556_v8  ;;  %v2573_v20 = vrot.slane %v2572_v15, 1  ;;  %v2563_v21 = vrot.slane %v2562_v16, 1  ;;  %v2578_v23 = vadd.f32 %v2577_v17, %v2576_v53 }
 0x50e   :  { %v2565_v24 = vmul.f32 0.125, %v2558_v19  ;;  %v2574_v25 = vadd.f32 %v2573_v20, %v2572_v15  ;;  %v2564_v44 = vadd.f32 %v2563_v21, %v2562_v16  ;;  %v2579_v26 = vrot.slane %v2578_v23, 1 }
 0x510   :  { %v2581_v50 = vmul.f32 0.125, %v2574_v25  ;;  %v2583_v27 = vmul.f32 %v2565_v24, %v2565_v24  ;;  %v2566_v28 = vmul.f32 0.125, %v2564_v44  ;;  %v2580_v29 = vadd.f32 %v2579_v26, %v2578_v23 }
 0x512   :  { %v2585_v30 = vsub.f32 %v2581_v50, %v2583_v27  ;;  %v2582_v31 = vmul.f32 0.125, %v2580_v29  ;;  %v2584_v32 = vmul.f32 %v2566_v28, %v2566_v28 }
 0x514   :  { %v2587_v33 = vmax.f32 %v2585_v30, 0.0  ;;  %v2586_v34 = vsub.f32 %v2582_v31, %v2584_v32 }
 0x516   :  { %v2589_v35 = vadd.f32 1e-05, %v2587_v33  ;;  %v2588_v36 = vmax.f32 %v2586_v34, 0.0 }
 0x518   :  { %v2590_v37 = vadd.f32 1e-05, %v2588_v36  ;;  %5690 = vrsqrt.f32 %v2589_v35 }
 0x51a   :  { %5692 = vrsqrt.f32 %v2590_v37 }
 0x525   :  { %v5691_v38 = vpop.eup %5690 }
 0x527   :  { %v5693_v40 = vpop.eup %5692 }
 0x528   :  { %v2595_v42 = vcombine.low %v5691_v38, %v5693_v40 }
 0x52a   :  { %v2602_v45 = vrot.slane %v2595_v42, %v6560_v41 }
 0x52c   :  { %v2609_v47 = vrot.slane %v2602_v45, %v6560_v41 }
 0x52e   :  { %v2611_v48 = vmul.f32 %v2609_v47, %v2551_v46 }
 0x530   :  { %v2616_v54 = vrot.slane %v2611_v48, %v6568_v51  ;;  %v2620_v56 = vrot.slane %v2611_v48, %v6572_v55 }
 0x532   :  { %v2623_v18 = vmul.f32 %v2616_v54, %v2565_v24  ;;  %v2624_v57 = vmul.f32 %v2620_v56, %v2566_v28  ;;  %v2644_v1 = vmul.f32 %v2616_v54, %v2544_v52  ;;  %v2645_v2 = vmul.f32 %v2620_v56, %v2546_v3 }
 0x534   :  { %v2627_v58 = vcombine.low %v2623_v18, %v2624_v57 }
 0x536   :  { %v2634_v61 = vrot.slane %v2627_v58, %v6560_v41 }
 0x538   :  { %v2641_v63 = vrot.slane %v2634_v61, %v6560_v41 }
 0x53a   :  { %v2643_v0 = vsub.f32 %v2552_v62, %v2641_v63 }
 0x53c   :  { %v2650_v4 = vrot.slane %v2643_v0, %v6568_v51  ;;  %v2654_v5 = vrot.slane %v2643_v0, %v6572_v55 }
 0x53e   :  { %v6638_v6 = vadd.f32 %v2650_v4, %v2644_v1  ;;  %v2658_v49 = vadd.f32 %v2654_v5, %v2645_v2 }
 0x540   :  { %v2659_v60 = vmax.f32 %v6638_v6, 0.0  ;;  %v2660_v7 = vmax.f32 %v2658_v49, 0.0 }
 0x541   :  { %6334 = dma.done.wait [#allocation5 + $0x1], 8192 }
 0x542   :  { %6335 = vsyncadd [#allocation5 + $0x1], 4294959104  ;;  %v2666_v10 = vpack.c.bf16 %v2660_v7, %v2660_v7  ;;  %v5694_v11 = vld [vmem:[#allocation3 + $0xe4] ss:$16 sps:$4 sm:$0xff]   ;;  %v5696_v12 = vld [vmem:[#allocation3 + $0xec] ss:$16 sps:$4 sm:$0xff]  }
 0x543   :  { %3051 = vmatprep.subr.bf16.mxu0 %v5694_v11  ;;  %v5698_v52 = vld [vmem:[#allocation3 + $0xe0] ss:$16 sps:$4 sm:$0xff]   ;;  %v5699_v3 = vld [vmem:[#allocation3 + $0xe8] ss:$16 sps:$4 sm:$0xff]   ;;  %3092 = vmatprep.subr.bf16.mxu1 %v5696_v12  ;;  %v5700_v22 = vld [vmem:[#allocation3 + $0xc4] ss:$16 sps:$4 sm:$0xff]  }
 0x544   :  { %3083 = vmatprep.mubr.bf16.mxu0 %v2666_v10  ;;  %3124 = vmatprep.mubr.bf16.mxu1 %v2666_v10  ;;  %v5702_v8 = vld [vmem:[#allocation3 + $0xcc] ss:$16 sps:$4 sm:$0xff]   ;;  %v5704_v13 = vld [vmem:[#allocation3 + $0xc0] ss:$16 sps:$4 sm:$0xff]   ;;  %v5705_v59 = vld [vmem:[#allocation3 + $0xc8] ss:$16 sps:$4 sm:$0xff]  }
 0x545   :  { %3052 = vmatpush1.bf16.msra.mxu0 %v5698_v52  ;;  %3093 = vmatpush1.bf16.msra.mxu1 %v5699_v3  ;;  %v5706_v53 = vld [vmem:[#allocation3 + $0xa4] ss:$16 sps:$4 sm:$0xff]   ;;  %v5708_v14 = vld [vmem:[#allocation3 + $0xac] ss:$16 sps:$4 sm:$0xff]   ;;  %v5710_v15 = vld [vmem:[#allocation3 + $0xa0] ss:$16 sps:$4 sm:$0xff]  }
 0x546   :  { %3053 = vmatprep.subr.bf16.mxu0 %v5700_v22  ;;  %3094 = vmatprep.subr.bf16.mxu1 %v5702_v8  ;;  %v5711_v16 = vld [vmem:[#allocation3 + $0xa8] ss:$16 sps:$4 sm:$0xff]   ;;  %v5712_v17 = vld [vmem:[#allocation3 + $0x84] ss:$16 sps:$4 sm:$0xff]   ;;  %v5714_v19 = vld [vmem:[#allocation3 + $0x8c] ss:$16 sps:$4 sm:$0xff]  }
 0x547   :  { %v5716_v20 = vld [vmem:[#allocation3 + $0x80] ss:$16 sps:$4 sm:$0xff]   ;;  %v5717_v21 = vld [vmem:[#allocation3 + $0x88] ss:$16 sps:$4 sm:$0xff]   ;;  %v5718_v23 = vld [vmem:[#allocation3 + $0x64] ss:$16 sps:$4 sm:$0xff]  }
 0x548   :  { %v5720_v24 = vld [vmem:[#allocation3 + $0x6c] ss:$16 sps:$4 sm:$0xff]   ;;  %v5722_v25 = vld [vmem:[#allocation3 + $0x60] ss:$16 sps:$4 sm:$0xff]   ;;  %v5723_v44 = vld [vmem:[#allocation3 + $0x68] ss:$16 sps:$4 sm:$0xff]  }
 0x549   :  { %3054 = vmatpush1.bf16.msra.mxu0 %v5704_v13  ;;  %3095 = vmatpush1.bf16.msra.mxu1 %v5705_v59  ;;  %v5724_v26 = vld [vmem:[#allocation3 + $0x44] ss:$16 sps:$4 sm:$0xff]   ;;  %v5726_v50 = vld [vmem:[#allocation3 + $0x4c] ss:$16 sps:$4 sm:$0xff]   ;;  %v5728_v27 = vld [vmem:[#allocation3 + $0x40] ss:$16 sps:$4 sm:$0xff]  }
 0x54a   :  { %3055 = vmatprep.subr.bf16.mxu0 %v5706_v53  ;;  %3096 = vmatprep.subr.bf16.mxu1 %v5708_v14  ;;  %v5729_v28 = vld [vmem:[#allocation3 + $0x48] ss:$16 sps:$4 sm:$0xff]   ;;  %v5730_v29 = vld [vmem:[#allocation3 + $0x24] ss:$16 sps:$4 sm:$0xff]   ;;  %v5732_v30 = vld [vmem:[#allocation3 + $0x2c] ss:$16 sps:$4 sm:$0xff]   ;;  %v2665_v53 = vpack.c.bf16 %v2659_v60, %v2659_v60 }
 0x54b   :  { %v5734_v31 = vld [vmem:[#allocation3 + $0x20] ss:$16 sps:$4 sm:$0xff]   ;;  %v5735_v32 = vld [vmem:[#allocation3 + $0x28] ss:$16 sps:$4 sm:$0xff]   ;;  %v5736_v33 = vld [vmem:[#allocation3 + $0x4] ss:$16 sps:$4 sm:$0xff]  }
 0x54c   :  { %v5738_v34 = vld [vmem:[#allocation3 + $0xc] ss:$16 sps:$4 sm:$0xff]   ;;  %v5740_v35 = vld [vmem:[#allocation3] ss:$16 sps:$4 sm:$0xff]   ;;  %v5741_v36 = vld [vmem:[#allocation3 + $0x8] ss:$16 sps:$4 sm:$0xff]  }
 0x54d   :  { %3056 = vmatpush1.bf16.msra.mxu0 %v5710_v15  ;;  %3097 = vmatpush1.bf16.msra.mxu1 %v5711_v16  ;;  %v5742_v37 = vld [vmem:[#allocation3 + $0x1e4] ss:$16 sps:$4 sm:$0xff]   ;;  %v5744_v38 = vld [vmem:[#allocation3 + $0x1ec] ss:$16 sps:$4 sm:$0xff]   ;;  %v5746_v40 = vld [vmem:[#allocation3 + $0x1e0] ss:$16 sps:$4 sm:$0xff]  }
 0x54e   :  { %3057 = vmatprep.subr.bf16.mxu0 %v5712_v17  ;;  %3098 = vmatprep.subr.bf16.mxu1 %v5714_v19  ;;  %v5747_v42 = vld [vmem:[#allocation3 + $0x1e8] ss:$16 sps:$4 sm:$0xff]   ;;  %v5748_v45 = vld [vmem:[#allocation3 + $0x1c4] ss:$16 sps:$4 sm:$0xff]   ;;  %v5750_v46 = vld [vmem:[#allocation3 + $0x1cc] ss:$16 sps:$4 sm:$0xff]  }
 0x54f   :  { %v5752_v47 = vld [vmem:[#allocation3 + $0x1c0] ss:$16 sps:$4 sm:$0xff]   ;;  %v5753_v48 = vld [vmem:[#allocation3 + $0x1c8] ss:$16 sps:$4 sm:$0xff]   ;;  %v5754_v54 = vld [vmem:[#allocation3 + $0x1a4] ss:$16 sps:$4 sm:$0xff]  }
 0x550   :  { %v5756_v56 = vld [vmem:[#allocation3 + $0x1ac] ss:$16 sps:$4 sm:$0xff]   ;;  %v5758_v18 = vld [vmem:[#allocation3 + $0x1a0] ss:$16 sps:$4 sm:$0xff]   ;;  %v5759_v57 = vld [vmem:[#allocation3 + $0x1a8] ss:$16 sps:$4 sm:$0xff]  }
 0x551   :  { %3058 = vmatpush1.bf16.msra.mxu0 %v5716_v20  ;;  %3099 = vmatpush1.bf16.msra.mxu1 %v5717_v21  ;;  %v5760_v58 = vld [vmem:[#allocation3 + $0x184] ss:$16 sps:$4 sm:$0xff]   ;;  %v5762_v61 = vld [vmem:[#allocation3 + $0x18c] ss:$16 sps:$4 sm:$0xff]   ;;  %v5764_v62 = vld [vmem:[#allocation3 + $0x180] ss:$16 sps:$4 sm:$0xff]  }
 0x552   :  { %3059 = vmatprep.subr.bf16.mxu0 %v5718_v23  ;;  %3100 = vmatprep.subr.bf16.mxu1 %v5720_v24  ;;  %v5765_v63 = vld [vmem:[#allocation3 + $0x188] ss:$16 sps:$4 sm:$0xff]   ;;  %v5766_v0 = vld [vmem:[#allocation3 + $0x164] ss:$16 sps:$4 sm:$0xff]   ;;  %v5768_v1 = vld [vmem:[#allocation3 + $0x16c] ss:$16 sps:$4 sm:$0xff]  }
 0x553   :  { %v5770_v2 = vld [vmem:[#allocation3 + $0x160] ss:$16 sps:$4 sm:$0xff]   ;;  %v5771_v4 = vld [vmem:[#allocation3 + $0x168] ss:$16 sps:$4 sm:$0xff]   ;;  %v5772_v5 = vld [vmem:[#allocation3 + $0x144] ss:$16 sps:$4 sm:$0xff]  }
 0x554   :  { %v5774_v49 = vld [vmem:[#allocation3 + $0x14c] ss:$16 sps:$4 sm:$0xff]   ;;  %v5776_v7 = vld [vmem:[#allocation3 + $0x140] ss:$16 sps:$4 sm:$0xff]   ;;  %v5777_v10 = vld [vmem:[#allocation3 + $0x148] ss:$16 sps:$4 sm:$0xff]  }
 0x555   :  { %3060 = vmatpush1.bf16.msra.mxu0 %v5722_v25  ;;  %3101 = vmatpush1.bf16.msra.mxu1 %v5723_v44  ;;  %v5778_v11 = vld [vmem:[#allocation3 + $0x124] ss:$16 sps:$4 sm:$0xff]   ;;  %v5780_v12 = vld [vmem:[#allocation3 + $0x12c] ss:$16 sps:$4 sm:$0xff]   ;;  %v5782_v52 = vld [vmem:[#allocation3 + $0x120] ss:$16 sps:$4 sm:$0xff]  }
 0x556   :  { %3061 = vmatprep.subr.bf16.mxu0 %v5724_v26  ;;  %3102 = vmatprep.subr.bf16.mxu1 %v5726_v50  ;;  %v5783_v3 = vld [vmem:[#allocation3 + $0x128] ss:$16 sps:$4 sm:$0xff]   ;;  %v5784_v22 = vld [vmem:[#allocation3 + $0x104] ss:$16 sps:$4 sm:$0xff]   ;;  %v5786_v8 = vld [vmem:[#allocation3 + $0x10c] ss:$16 sps:$4 sm:$0xff]  }
 0x557   :  { %v5788_v13 = vld [vmem:[#allocation3 + $0x100] ss:$16 sps:$4 sm:$0xff]   ;;  %v5789_v59 = vld [vmem:[#allocation3 + $0x108] ss:$16 sps:$4 sm:$0xff]  }
 0x559   :  { %3062 = vmatpush1.bf16.msra.mxu0 %v5728_v27  ;;  %3103 = vmatpush1.bf16.msra.mxu1 %v5729_v28 }
 0x55a   :  { %3063 = vmatprep.subr.bf16.mxu0 %v5730_v29  ;;  %3104 = vmatprep.subr.bf16.mxu1 %v5732_v30 }
 0x55d   :  { %3064 = vmatpush1.bf16.msra.mxu0 %v5734_v31  ;;  %3105 = vmatpush1.bf16.msra.mxu1 %v5735_v32 }
 0x55e   :  { %3065 = vmatprep.subr.bf16.mxu0 %v5736_v33  ;;  %3106 = vmatprep.subr.bf16.mxu1 %v5738_v34 }
 0x561   :  { %3066 = vmatpush1.bf16.msra.mxu0 %v5740_v35  ;;  %3107 = vmatpush1.bf16.msra.mxu1 %v5741_v36 }
 0x562   :  { %3067 = vmatprep.subr.bf16.mxu0 %v5742_v37  ;;  %3108 = vmatprep.subr.bf16.mxu1 %v5744_v38 }
 0x565   :  { %3068 = vmatpush2.bf16.msra.mxu0 %v5746_v40  ;;  %3109 = vmatpush2.bf16.msra.mxu1 %v5747_v42 }
 0x566   :  { %3069 = vmatprep.subr.bf16.mxu0 %v5748_v45  ;;  %3110 = vmatprep.subr.bf16.mxu1 %v5750_v46 }
 0x569   :  { %3070 = vmatpush2.bf16.msra.mxu0 %v5752_v47  ;;  %3111 = vmatpush2.bf16.msra.mxu1 %v5753_v48 }
 0x56a   :  { %3071 = vmatprep.subr.bf16.mxu0 %v5754_v54  ;;  %3112 = vmatprep.subr.bf16.mxu1 %v5756_v56 }
 0x56d   :  { %3072 = vmatpush2.bf16.msra.mxu0 %v5758_v18  ;;  %3113 = vmatpush2.bf16.msra.mxu1 %v5759_v57 }
 0x56e   :  { %3073 = vmatprep.subr.bf16.mxu0 %v5760_v58  ;;  %3114 = vmatprep.subr.bf16.mxu1 %v5762_v61 }
 0x571   :  { %3074 = vmatpush2.bf16.msra.mxu0 %v5764_v62  ;;  %3115 = vmatpush2.bf16.msra.mxu1 %v5765_v63 }
 0x572   :  { %3075 = vmatprep.subr.bf16.mxu0 %v5766_v0  ;;  %3116 = vmatprep.subr.bf16.mxu1 %v5768_v1 }
 0x575   :  { %3076 = vmatpush2.bf16.msra.mxu0 %v5770_v2  ;;  %3117 = vmatpush2.bf16.msra.mxu1 %v5771_v4 }
 0x576   :  { %3077 = vmatprep.subr.bf16.mxu0 %v5772_v5  ;;  %3118 = vmatprep.subr.bf16.mxu1 %v5774_v49 }
 0x579   :  { %3078 = vmatpush2.bf16.msra.mxu0 %v5776_v7  ;;  %3119 = vmatpush2.bf16.msra.mxu1 %v5777_v10 }
 0x57a   :  { %3079 = vmatprep.subr.bf16.mxu0 %v5778_v11  ;;  %3120 = vmatprep.subr.bf16.mxu1 %v5780_v12 }
 0x57d   :  { %3080 = vmatpush2.bf16.msra.mxu0 %v5782_v52  ;;  %3121 = vmatpush2.bf16.msra.mxu1 %v5783_v3 }
 0x57e   :  { %3081 = vmatprep.subr.bf16.mxu0 %v5784_v22  ;;  %3122 = vmatprep.subr.bf16.mxu1 %v5786_v8 }
 0x581   :  { %3082 = vmatpush2.bf16.msra.mxu0 %v5788_v13  ;;  %3123 = vmatpush2.bf16.msra.mxu1 %v5789_v59 }
 0x584   :  { %3084 = vmatmul.mubr.bf16.vlgmr.msra.gmra.mxu0 %v2665_v53  ;;  %3125 = vmatmul.mubr.bf16.vlgmr.msra.gmra.mxu1 %v2665_v53 }
 0x644   :  { %v6644_v14 = vpop.f32.mrf.mxu0  ;;  %v6646_v15 = vpop.f32.mrf.mxu1 }
 0x645   :  { %v3135_v16 = vrot.slane %v6644_v14, 4  ;;  %v3163_v17 = vmul.f32 %v6644_v14, %v6644_v14  ;;  %v3147_v19 = vrot.slane %v6646_v15, 4  ;;  %v3165_v6 = vmul.f32 %v6646_v15, %v6646_v15 }
 0x646   :  { %v6654_v20 = vpop.f32.mrf.mxu0  ;;  %v6656_v60 = vpop.f32.mrf.mxu1 }
 0x647   :  { %v3136_v21 = vadd.f32 %v3135_v16, %v6644_v14  ;;  %v3167_v23 = vrot.slane %v3163_v17, 4  ;;  %v3148_v24 = vadd.f32 %v3147_v19, %v6646_v15  ;;  %v3179_v25 = vrot.slane %v3165_v6, 4 }
 0x648   :  { %v3141_v44 = vrot.slane %v6654_v20, 4  ;;  %v3164_v26 = vmul.f32 %v6654_v20, %v6654_v20  ;;  %v3153_v50 = vrot.slane %v6656_v60, 4  ;;  %v3166_v27 = vmul.f32 %v6656_v60, %v6656_v60  ;;  %v3089_v28 = vpop.f32.mrf.mxu0  ;;  %v3130_v29 = vpop.f32.mrf.mxu1 }
 0x649   :  { %v3137_v30 = vrot.slane %v3136_v21, 2  ;;  %v3168_v31 = vadd.f32 %v3167_v23, %v3163_v17  ;;  %v3149_v32 = vrot.slane %v3148_v24, 2  ;;  %v3180_v33 = vadd.f32 %v3179_v25, %v3165_v6 }
 0x64a   :  { %v3142_v34 = vadd.f32 %v3141_v44, %v6654_v20  ;;  %v3173_v35 = vrot.slane %v3164_v26, 4  ;;  %v3154_v36 = vadd.f32 %v3153_v50, %v6656_v60  ;;  %v3185_v37 = vrot.slane %v3166_v27, 4  ;;  %v3090_v38 = vpop.f32.mrf.mxu0  ;;  %v3131_v40 = vpop.f32.mrf.mxu1 }
 0x64b   :  { %v3138_v42 = vadd.f32 %v3137_v30, %v3136_v21  ;;  %v3169_v45 = vrot.slane %v3168_v31, 2  ;;  %v3150_v46 = vadd.f32 %v3149_v32, %v3148_v24  ;;  %v3181_v47 = vrot.slane %v3180_v33, 2 }
 0x64c   :  { %v3143_v48 = vrot.slane %v3142_v34, 2  ;;  %v3174_v54 = vadd.f32 %v3173_v35, %v3164_v26  ;;  %v3155_v56 = vrot.slane %v3154_v36, 2  ;;  %v3186_v18 = vadd.f32 %v3185_v37, %v3166_v27 }
 0x64d   :  { %v3139_v57 = vrot.slane %v3138_v42, 1  ;;  %v3170_v58 = vadd.f32 %v3169_v45, %v3168_v31  ;;  %v3151_v61 = vrot.slane %v3150_v46, 1  ;;  %v3182_v62 = vadd.f32 %v3181_v47, %v3180_v33 }
 0x64e   :  { %v3144_v63 = vadd.f32 %v3143_v48, %v3142_v34  ;;  %v3175_v0 = vrot.slane %v3174_v54, 2  ;;  %v3156_v1 = vadd.f32 %v3155_v56, %v3154_v36  ;;  %v3187_v2 = vrot.slane %v3186_v18, 2 }
 0x64f   :  { %v3140_v4 = vadd.f32 %v3139_v57, %v3138_v42  ;;  %v3171_v5 = vrot.slane %v3170_v58, 1  ;;  %v3152_v49 = vadd.f32 %v3151_v61, %v3150_v46  ;;  %v3183_v7 = vrot.slane %v3182_v62, 1 }
 0x650   :  { %v3145_v10 = vrot.slane %v3144_v63, 1  ;;  %v3176_v11 = vadd.f32 %v3175_v0, %v3174_v54  ;;  %v3157_v12 = vrot.slane %v3156_v1, 1  ;;  %v3188_v52 = vadd.f32 %v3187_v2, %v3186_v18 }
 0x651   :  { %v3159_v3 = vmul.f32 0.125, %v3140_v4  ;;  %v3172_v22 = vadd.f32 %v3171_v5, %v3170_v58  ;;  %v3161_v8 = vmul.f32 0.125, %v3152_v49  ;;  %v3184_v13 = vadd.f32 %v3183_v7, %v3182_v62  ;;  %v3133_v62 = vld [vmem:[%s6757_s12] sm:$0xf] }
 0x652   :  { %v3146_v59 = vadd.f32 %v3145_v10, %v3144_v63  ;;  %v3177_v53 = vrot.slane %v3176_v11, 1  ;;  %v3158_v16 = vadd.f32 %v3157_v12, %v3156_v1  ;;  %v3189_v17 = vrot.slane %v3188_v52, 1 }
 0x653   :  { %v3191_v19 = vmul.f32 0.125, %v3172_v22  ;;  %v3195_v6 = vmul.f32 %v3159_v3, %v3159_v3  ;;  %v3193_v21 = vmul.f32 0.125, %v3184_v13  ;;  %v3197_v23 = vmul.f32 %v3161_v8, %v3161_v8 }
 0x654   :  { %v3160_v24 = vmul.f32 0.125, %v3146_v59  ;;  %v3178_v25 = vadd.f32 %v3177_v53, %v3176_v11  ;;  %v3162_v44 = vmul.f32 0.125, %v3158_v16  ;;  %v3190_v26 = vadd.f32 %v3189_v17, %v3188_v52  ;;  %v3134_v53 = vld [vmem:[%s6758_s13] sm:$0xf] }
 0x655   :  { %v3199_v50 = vsub.f32 %v3191_v19, %v3195_v6  ;;  %v3201_v27 = vsub.f32 %v3193_v21, %v3197_v23 }
 0x656   :  { %v3192_v28 = vmul.f32 0.125, %v3178_v25  ;;  %v3196_v29 = vmul.f32 %v3160_v24, %v3160_v24  ;;  %v3194_v30 = vmul.f32 0.125, %v3190_v26  ;;  %v3198_v31 = vmul.f32 %v3162_v44, %v3162_v44 }
 0x657   :  { %v3203_v32 = vmax.f32 %v3199_v50, 0.0  ;;  %v3205_v33 = vmax.f32 %v3201_v27, 0.0 }
 0x658   :  { %v3200_v34 = vsub.f32 %v3192_v28, %v3196_v29  ;;  %v3202_v35 = vsub.f32 %v3194_v30, %v3198_v31 }
 0x659   :  { %v3207_v36 = vadd.f32 1e-05, %v3203_v32  ;;  %v3209_v37 = vadd.f32 1e-05, %v3205_v33 }
 0x65a   :  { %v3204_v38 = vmax.f32 %v3200_v34, 0.0  ;;  %v3206_v40 = vmax.f32 %v3202_v35, 0.0 }
 0x65b   :  { %5790 = vrsqrt.f32 %v3207_v36 }
 0x65c   :  { %v3208_v42 = vadd.f32 1e-05, %v3204_v38  ;;  %v3210_v45 = vadd.f32 1e-05, %v3206_v40  ;;  %5792 = vrsqrt.f32 %v3209_v37 }
 0x65e   :  { %5794 = vrsqrt.f32 %v3208_v42 }
 0x65f   :  { %5796 = vrsqrt.f32 %v3210_v45 }
 0x668   :  { %v5791_v46 = vpop.eup %5790 }
 0x669   :  { %v5793_v47 = vpop.eup %5792 }
 0x66b   :  { %v5795_v48 = vpop.eup %5794 }
 0x66c   :  { %v5797_v54 = vpop.eup %5796  ;;  %v3219_v56 = vcombine.low %v5791_v46, %v5795_v48 }
 0x66d   :  { %v3220_v18 = vcombine.low %v5793_v47, %v5797_v54 }
 0x66e   :  { %v3227_v57 = vrot.slane %v3219_v56, %v6560_v41 }
 0x66f   :  { %v3234_v58 = vrot.slane %v3220_v18, %v6560_v41 }
 0x671   :  { %v3235_v61 = vcombine.low %v3227_v57, %v3234_v58 }
 0x673   :  { %v3242_v63 = vrot.slane %v3235_v61, %v6560_v41 }
 0x675   :  { %v3244_v0 = vmul.f32 %v3242_v63, %v3133_v62 }
 0x677   :  { %v3249_v1 = vrot.slane %v3244_v0, %v6568_v51  ;;  %v3253_v2 = vrot.slane %v3244_v0, %v6572_v55  ;;  %v3257_v4 = vrot.slane %v3244_v0, %v6575_v9  ;;  %v3261_v5 = vrot.slane %v3244_v0, %v6578_v43 }
 0x679   :  { %v3266_v49 = vmul.f32 %v3249_v1, %v3159_v3  ;;  %v3267_v7 = vmul.f32 %v3253_v2, %v3160_v24  ;;  %v3268_v10 = vmul.f32 %v3257_v4, %v3161_v8  ;;  %v3269_v11 = vmul.f32 %v3261_v5, %v3162_v44 }
 0x67a   :  { %v3300_v19 = vmul.f32 %v3249_v1, %v6644_v14  ;;  %v3301_v3 = vmul.f32 %v3253_v2, %v6654_v20  ;;  %v3302_v8 = vmul.f32 %v3257_v4, %v6646_v15  ;;  %v3303_v6 = vmul.f32 %v3261_v5, %v6656_v60 }
 0x67b   :  { %v3274_v12 = vcombine.low %v3266_v49, %v3267_v7  ;;  %v3275_v52 = vcombine.low %v3268_v10, %v3269_v11 }
 0x67d   :  { %v3282_v22 = vrot.slane %v3274_v12, %v6560_v41  ;;  %v3289_v13 = vrot.slane %v3275_v52, %v6560_v41 }
 0x67f   :  { %v3290_v59 = vcombine.low %v3282_v22, %v3289_v13 }
 0x681   :  { %v3297_v16 = vrot.slane %v3290_v59, %v6560_v41 }
 0x683   :  { %v3299_v17 = vsub.f32 %v3134_v53, %v3297_v16 }
 0x685   :  { %v3308_v21 = vrot.slane %v3299_v17, %v6568_v51  ;;  %v3312_v23 = vrot.slane %v3299_v17, %v6572_v55  ;;  %v3316_v24 = vrot.slane %v3299_v17, %v6575_v9  ;;  %v3320_v25 = vrot.slane %v3299_v17, %v6578_v43 }
 0x687   :  { %v6692_v44 = vadd.f32 %v3308_v21, %v3300_v19  ;;  %v3326_v41 = vadd.f32 %v3312_v23, %v3301_v3  ;;  %v6694_v26 = vadd.f32 %v3316_v24, %v3302_v8  ;;  %v3328_v14 = vadd.f32 %v3320_v25, %v3303_v6 }
 0x689   :  { %v3329_v20 = vmax.f32 %v6692_v44, 0.0  ;;  %v3330_v50 = vmax.f32 %v3326_v41, 0.0  ;;  %v3331_v15 = vmax.f32 %v6694_v26, 0.0  ;;  %v3332_v60 = vmax.f32 %v3328_v14, 0.0 }
 0x68a   :  { %6336 = dma.done.wait [#allocation5 + $0x2], 20480 }
 0x68b   :  { %6337 = vsyncadd [#allocation5 + $0x2], 4294946816  ;;  %v6698_v27 = vpack.c.bf16 %v3330_v50, %v3330_v50  ;;  %v6700_v28 = vpack.c.bf16 %v3332_v60, %v3332_v60  ;;  %v5798_v29 = vld [vmem:[#allocation4 + $0x11c] ss:$20 sps:$4 sm:$0xff]   ;;  %v5802_v31 = vld [vmem:[#allocation4 + $0x118] ss:$20 sps:$4 sm:$0xff]  }
 0x68c   :  { %v5800_v30 = vld [vmem:[#allocation4 + $0x39c] ss:$20 sps:$4 sm:$0xff]   ;;  %4392 = vmatprep.subr.bf16.mxu0 %v5798_v29  ;;  %v5803_v32 = vld [vmem:[#allocation4 + $0x398] ss:$20 sps:$4 sm:$0xff]   ;;  %v5804_v33 = vld [vmem:[#allocation4 + $0xf4] ss:$20 sps:$4 sm:$0xff]  }
 0x68d   :  { %4424 = vmatprep.mubr.bf16.mxu0 %v6698_v27  ;;  %4465 = vmatprep.mubr.bf16.mxu1 %v6700_v28  ;;  %v5806_v34 = vld [vmem:[#allocation4 + $0x374] ss:$20 sps:$4 sm:$0xff]   ;;  %v5808_v35 = vld [vmem:[#allocation4 + $0xf0] ss:$20 sps:$4 sm:$0xff]   ;;  %v5810_v37 = vld [vmem:[#allocation4 + $0xcc] ss:$20 sps:$4 sm:$0xff]  }
 0x68e   :  { %4433 = vmatprep.subr.bf16.mxu1 %v5800_v30  ;;  %4393 = vmatpush1.bf16.msra.mxu0 %v5802_v31  ;;  %v5809_v36 = vld [vmem:[#allocation4 + $0x370] ss:$20 sps:$4 sm:$0xff]   ;;  %v5812_v38 = vld [vmem:[#allocation4 + $0x34c] ss:$20 sps:$4 sm:$0xff]   ;;  %v5814_v40 = vld [vmem:[#allocation4 + $0xc8] ss:$20 sps:$4 sm:$0xff]  }
 0x68f   :  { %4434 = vmatpush1.bf16.msra.mxu1 %v5803_v32  ;;  %4394 = vmatprep.subr.bf16.mxu0 %v5804_v33  ;;  %v5815_v42 = vld [vmem:[#allocation4 + $0x348] ss:$20 sps:$4 sm:$0xff]   ;;  %v5816_v45 = vld [vmem:[#allocation4 + $0xa4] ss:$20 sps:$4 sm:$0xff]   ;;  %v5820_v47 = vld [vmem:[#allocation4 + $0xa0] ss:$20 sps:$4 sm:$0xff]  }
 0x690   :  { %4435 = vmatprep.subr.bf16.mxu1 %v5806_v34  ;;  %v5818_v46 = vld [vmem:[#allocation4 + $0x324] ss:$20 sps:$4 sm:$0xff]   ;;  %v5821_v48 = vld [vmem:[#allocation4 + $0x320] ss:$20 sps:$4 sm:$0xff]   ;;  %v5822_v54 = vld [vmem:[#allocation4 + $0x7c] ss:$20 sps:$4 sm:$0xff]  }
 0x691   :  { %v5824_v56 = vld [vmem:[#allocation4 + $0x2fc] ss:$20 sps:$4 sm:$0xff]   ;;  %v5826_v18 = vld [vmem:[#allocation4 + $0x78] ss:$20 sps:$4 sm:$0xff]   ;;  %v5828_v58 = vld [vmem:[#allocation4 + $0x54] ss:$20 sps:$4 sm:$0xff]  }
 0x692   :  { %4395 = vmatpush1.bf16.msra.mxu0 %v5808_v35  ;;  %v5827_v57 = vld [vmem:[#allocation4 + $0x2f8] ss:$20 sps:$4 sm:$0xff]   ;;  %v5830_v61 = vld [vmem:[#allocation4 + $0x2d4] ss:$20 sps:$4 sm:$0xff]   ;;  %v5832_v62 = vld [vmem:[#allocation4 + $0x50] ss:$20 sps:$4 sm:$0xff]  }
 0x693   :  { %4436 = vmatpush1.bf16.msra.mxu1 %v5809_v36  ;;  %4396 = vmatprep.subr.bf16.mxu0 %v5810_v37  ;;  %v5833_v63 = vld [vmem:[#allocation4 + $0x2d0] ss:$20 sps:$4 sm:$0xff]   ;;  %v5834_v0 = vld [vmem:[#allocation4 + $0x2c] ss:$20 sps:$4 sm:$0xff]   ;;  %v5838_v2 = vld [vmem:[#allocation4 + $0x28] ss:$20 sps:$4 sm:$0xff]  }
 0x694   :  { %4437 = vmatprep.subr.bf16.mxu1 %v5812_v38  ;;  %v5836_v1 = vld [vmem:[#allocation4 + $0x2ac] ss:$20 sps:$4 sm:$0xff]   ;;  %v5839_v4 = vld [vmem:[#allocation4 + $0x2a8] ss:$20 sps:$4 sm:$0xff]   ;;  %v5840_v5 = vld [vmem:[#allocation4 + $0x4] ss:$20 sps:$4 sm:$0xff]  }
 0x695   :  { %v5842_v49 = vld [vmem:[#allocation4 + $0x284] ss:$20 sps:$4 sm:$0xff]   ;;  %v5844_v7 = vld [vmem:[#allocation4] ss:$20 sps:$4 sm:$0xff]   ;;  %v5846_v11 = vld [vmem:[#allocation4 + $0x25c] ss:$20 sps:$4 sm:$0xff]  }
 0x696   :  { %4397 = vmatpush1.bf16.msra.mxu0 %v5814_v40  ;;  %v5845_v10 = vld [vmem:[#allocation4 + $0x280] ss:$20 sps:$4 sm:$0xff]   ;;  %v5848_v12 = vld [vmem:[#allocation4 + $0x4dc] ss:$20 sps:$4 sm:$0xff]   ;;  %v5850_v52 = vld [vmem:[#allocation4 + $0x258] ss:$20 sps:$4 sm:$0xff]  }
 0x697   :  { %4438 = vmatpush1.bf16.msra.mxu1 %v5815_v42  ;;  %4398 = vmatprep.subr.bf16.mxu0 %v5816_v45  ;;  %v5851_v22 = vld [vmem:[#allocation4 + $0x4d8] ss:$20 sps:$4 sm:$0xff]   ;;  %v5852_v13 = vld [vmem:[#allocation4 + $0x234] ss:$20 sps:$4 sm:$0xff]   ;;  %v5856_v53 = vld [vmem:[#allocation4 + $0x230] ss:$20 sps:$4 sm:$0xff]  }
 0x698   :  { %4439 = vmatprep.subr.bf16.mxu1 %v5818_v46  ;;  %v5854_v59 = vld [vmem:[#allocation4 + $0x4b4] ss:$20 sps:$4 sm:$0xff]   ;;  %v5857_v16 = vld [vmem:[#allocation4 + $0x4b0] ss:$20 sps:$4 sm:$0xff]   ;;  %v5858_v17 = vld [vmem:[#allocation4 + $0x20c] ss:$20 sps:$4 sm:$0xff]   ;;  %v6707_v46 = vpack.c.bf16 %v3329_v20, %v3329_v20 }
 0x699   :  { %v5860_v19 = vld [vmem:[#allocation4 + $0x48c] ss:$20 sps:$4 sm:$0xff]   ;;  %v5862_v3 = vld [vmem:[#allocation4 + $0x208] ss:$20 sps:$4 sm:$0xff]   ;;  %v5864_v6 = vld [vmem:[#allocation4 + $0x1e4] ss:$20 sps:$4 sm:$0xff]  }
 0x69a   :  { %4399 = vmatpush1.bf16.msra.mxu0 %v5820_v47  ;;  %v5863_v8 = vld [vmem:[#allocation4 + $0x488] ss:$20 sps:$4 sm:$0xff]   ;;  %v5866_v21 = vld [vmem:[#allocation4 + $0x464] ss:$20 sps:$4 sm:$0xff]   ;;  %v5868_v23 = vld [vmem:[#allocation4 + $0x1e0] ss:$20 sps:$4 sm:$0xff]   ;;  %v6712_v47 = vpack.c.bf16 %v3331_v15, %v3331_v15 }
 0x69b   :  { %4440 = vmatpush1.bf16.msra.mxu1 %v5821_v48  ;;  %4400 = vmatprep.subr.bf16.mxu0 %v5822_v54  ;;  %v5869_v24 = vld [vmem:[#allocation4 + $0x460] ss:$20 sps:$4 sm:$0xff]   ;;  %v5870_v25 = vld [vmem:[#allocation4 + $0x1bc] ss:$20 sps:$4 sm:$0xff]   ;;  %v5874_v14 = vld [vmem:[#allocation4 + $0x1b8] ss:$20 sps:$4 sm:$0xff]  }
 0x69c   :  { %4441 = vmatprep.subr.bf16.mxu1 %v5824_v56  ;;  %v5872_v41 = vld [vmem:[#allocation4 + $0x43c] ss:$20 sps:$4 sm:$0xff]   ;;  %v5875_v50 = vld [vmem:[#allocation4 + $0x438] ss:$20 sps:$4 sm:$0xff]   ;;  %v5876_v60 = vld [vmem:[#allocation4 + $0x194] ss:$20 sps:$4 sm:$0xff]  }
 0x69d   :  { %v5878_v29 = vld [vmem:[#allocation4 + $0x414] ss:$20 sps:$4 sm:$0xff]   ;;  %v5880_v30 = vld [vmem:[#allocation4 + $0x190] ss:$20 sps:$4 sm:$0xff]   ;;  %v5882_v32 = vld [vmem:[#allocation4 + $0x16c] ss:$20 sps:$4 sm:$0xff]  }
 0x69e   :  { %4401 = vmatpush1.bf16.msra.mxu0 %v5826_v18  ;;  %v5881_v31 = vld [vmem:[#allocation4 + $0x410] ss:$20 sps:$4 sm:$0xff]   ;;  %v5884_v33 = vld [vmem:[#allocation4 + $0x3ec] ss:$20 sps:$4 sm:$0xff]   ;;  %v5886_v34 = vld [vmem:[#allocation4 + $0x168] ss:$20 sps:$4 sm:$0xff]  }
 0x69f   :  { %4442 = vmatpush1.bf16.msra.mxu1 %v5827_v57  ;;  %4402 = vmatprep.subr.bf16.mxu0 %v5828_v58  ;;  %v5887_v35 = vld [vmem:[#allocation4 + $0x3e8] ss:$20 sps:$4 sm:$0xff]   ;;  %v5888_v36 = vld [vmem:[#allocation4 + $0x144] ss:$20 sps:$4 sm:$0xff]   ;;  %v5892_v38 = vld [vmem:[#allocation4 + $0x140] ss:$20 sps:$4 sm:$0xff]  }
 0x6a0   :  { %4443 = vmatprep.subr.bf16.mxu1 %v5830_v61  ;;  %v5890_v37 = vld [vmem:[#allocation4 + $0x3c4] ss:$20 sps:$4 sm:$0xff]   ;;  %v5893_v40 = vld [vmem:[#allocation4 + $0x3c0] ss:$20 sps:$4 sm:$0xff]   ;;  %v5902_v56 = vld [vmem:[#allocation4 + $0xfc] ss:$20 sps:$4 sm:$0xff]  }
 0x6a1   :  { %v5896_v42 = vld [vmem:[#allocation4 + $0x124] ss:$20 sps:$4 sm:$0xff]   ;;  %v5894_v48 = vld [vmem:[#allocation4 + $0x120] ss:$20 sps:$4 sm:$0xff]   ;;  %v5905_v18 = vld [vmem:[#allocation4 + $0x37c] ss:$20 sps:$4 sm:$0xff]  }
 0x6a2   :  { %4403 = vmatpush1.bf16.msra.mxu0 %v5832_v62  ;;  %v5899_v45 = vld [vmem:[#allocation4 + $0x3a4] ss:$20 sps:$4 sm:$0xff]   ;;  %v5897_v54 = vld [vmem:[#allocation4 + $0x3a0] ss:$20 sps:$4 sm:$0xff]  }
 0x6a3   :  { %4444 = vmatpush1.bf16.msra.mxu1 %v5833_v63  ;;  %4404 = vmatprep.subr.bf16.mxu0 %v5834_v0  ;;  %v5900_v44 = vld [vmem:[#allocation4 + $0xf8] ss:$20 sps:$4 sm:$0xff]   ;;  %v5908_v26 = vld [vmem:[#allocation4 + $0xd4] ss:$20 sps:$4 sm:$0xff]   ;;  %v5906_v57 = vld [vmem:[#allocation4 + $0xd0] ss:$20 sps:$4 sm:$0xff]  }
 0x6a4   :  { %4445 = vmatprep.subr.bf16.mxu1 %v5836_v1  ;;  %v5903_v20 = vld [vmem:[#allocation4 + $0x378] ss:$20 sps:$4 sm:$0xff]   ;;  %v5911_v15 = vld [vmem:[#allocation4 + $0x354] ss:$20 sps:$4 sm:$0xff]   ;;  %v5909_v58 = vld [vmem:[#allocation4 + $0x350] ss:$20 sps:$4 sm:$0xff]  }
 0x6a5   :  { %v5914_v61 = vld [vmem:[#allocation4 + $0xac] ss:$20 sps:$4 sm:$0xff]   ;;  %v5912_v63 = vld [vmem:[#allocation4 + $0xa8] ss:$20 sps:$4 sm:$0xff]   ;;  %v5920_v1 = vld [vmem:[#allocation4 + $0x84] ss:$20 sps:$4 sm:$0xff]  }
 0x6a6   :  { %4405 = vmatpush1.bf16.msra.mxu0 %v5838_v2  ;;  %v5917_v62 = vld [vmem:[#allocation4 + $0x32c] ss:$20 sps:$4 sm:$0xff]   ;;  %v5915_v0 = vld [vmem:[#allocation4 + $0x328] ss:$20 sps:$4 sm:$0xff]   ;;  %v5923_v2 = vld [vmem:[#allocation4 + $0x304] ss:$20 sps:$4 sm:$0xff]  }
 0x6a7   :  { %4446 = vmatpush1.bf16.msra.mxu1 %v5839_v4  ;;  %4406 = vmatprep.subr.bf16.mxu0 %v5840_v5  ;;  %v5918_v4 = vld [vmem:[#allocation4 + $0x80] ss:$20 sps:$4 sm:$0xff]  }
 0x6a8   :  { %4447 = vmatprep.subr.bf16.mxu1 %v5842_v49  ;;  %v5921_v5 = vld [vmem:[#allocation4 + $0x300] ss:$20 sps:$4 sm:$0xff]   ;;  %v5926_v49 = vld [vmem:[#allocation4 + $0x5c] ss:$20 sps:$4 sm:$0xff]  }
 0x6aa   :  { %4407 = vmatpush1.bf16.msra.mxu0 %v5844_v7  ;;  %v5929_v7 = vld [vmem:[#allocation4 + $0x2dc] ss:$20 sps:$4 sm:$0xff]  }
 0x6ab   :  { %4448 = vmatpush1.bf16.msra.mxu1 %v5845_v10  ;;  %4408 = vmatprep.subr.bf16.mxu0 %v5846_v11  ;;  %v5924_v10 = vld [vmem:[#allocation4 + $0x58] ss:$20 sps:$4 sm:$0xff]  }
 0x6ac   :  { %4449 = vmatprep.subr.bf16.mxu1 %v5848_v12  ;;  %v5927_v11 = vld [vmem:[#allocation4 + $0x2d8] ss:$20 sps:$4 sm:$0xff]   ;;  %v5932_v12 = vld [vmem:[#allocation4 + $0x34] ss:$20 sps:$4 sm:$0xff]  }
 0x6ae   :  { %4409 = vmatpush2.bf16.msra.mxu0 %v5850_v52  ;;  %v5935_v52 = vld [vmem:[#allocation4 + $0x2b4] ss:$20 sps:$4 sm:$0xff]  }
 0x6af   :  { %4450 = vmatpush2.bf16.msra.mxu1 %v5851_v22  ;;  %4410 = vmatprep.subr.bf16.mxu0 %v5852_v13  ;;  %v5930_v22 = vld [vmem:[#allocation4 + $0x30] ss:$20 sps:$4 sm:$0xff]  }
 0x6b0   :  { %4451 = vmatprep.subr.bf16.mxu1 %v5854_v59  ;;  %v5933_v13 = vld [vmem:[#allocation4 + $0x2b0] ss:$20 sps:$4 sm:$0xff]   ;;  %v5938_v59 = vld [vmem:[#allocation4 + $0xc] ss:$20 sps:$4 sm:$0xff]  }
 0x6b2   :  { %4411 = vmatpush2.bf16.msra.mxu0 %v5856_v53  ;;  %v5941_v53 = vld [vmem:[#allocation4 + $0x28c] ss:$20 sps:$4 sm:$0xff]  }
 0x6b3   :  { %4452 = vmatpush2.bf16.msra.mxu1 %v5857_v16  ;;  %4412 = vmatprep.subr.bf16.mxu0 %v5858_v17  ;;  %v5936_v16 = vld [vmem:[#allocation4 + $0x8] ss:$20 sps:$4 sm:$0xff]  }
 0x6b4   :  { %4453 = vmatprep.subr.bf16.mxu1 %v5860_v19  ;;  %v5939_v17 = vld [vmem:[#allocation4 + $0x288] ss:$20 sps:$4 sm:$0xff]   ;;  %v5944_v19 = vld [vmem:[#allocation4 + $0x264] ss:$20 sps:$4 sm:$0xff]  }
 0x6b6   :  { %4413 = vmatpush2.bf16.msra.mxu0 %v5862_v3  ;;  %v5947_v3 = vld [vmem:[#allocation4 + $0x4e4] ss:$20 sps:$4 sm:$0xff]  }
 0x6b7   :  { %4454 = vmatpush2.bf16.msra.mxu1 %v5863_v8  ;;  %4414 = vmatprep.subr.bf16.mxu0 %v5864_v6  ;;  %v5942_v8 = vld [vmem:[#allocation4 + $0x260] ss:$20 sps:$4 sm:$0xff]  }
 0x6b8   :  { %4455 = vmatprep.subr.bf16.mxu1 %v5866_v21  ;;  %v5945_v6 = vld [vmem:[#allocation4 + $0x4e0] ss:$20 sps:$4 sm:$0xff]   ;;  %v5950_v21 = vld [vmem:[#allocation4 + $0x23c] ss:$20 sps:$4 sm:$0xff]  }
 0x6ba   :  { %4415 = vmatpush2.bf16.msra.mxu0 %v5868_v23  ;;  %v5953_v23 = vld [vmem:[#allocation4 + $0x4bc] ss:$20 sps:$4 sm:$0xff]  }
 0x6bb   :  { %4456 = vmatpush2.bf16.msra.mxu1 %v5869_v24  ;;  %4416 = vmatprep.subr.bf16.mxu0 %v5870_v25  ;;  %v5948_v24 = vld [vmem:[#allocation4 + $0x238] ss:$20 sps:$4 sm:$0xff]  }
 0x6bc   :  { %4457 = vmatprep.subr.bf16.mxu1 %v5872_v41  ;;  %v5951_v25 = vld [vmem:[#allocation4 + $0x4b8] ss:$20 sps:$4 sm:$0xff]   ;;  %v5956_v41 = vld [vmem:[#allocation4 + $0x214] ss:$20 sps:$4 sm:$0xff]  }
 0x6be   :  { %4417 = vmatpush2.bf16.msra.mxu0 %v5874_v14  ;;  %v5959_v14 = vld [vmem:[#allocation4 + $0x494] ss:$20 sps:$4 sm:$0xff]  }
 0x6bf   :  { %4458 = vmatpush2.bf16.msra.mxu1 %v5875_v50  ;;  %4418 = vmatprep.subr.bf16.mxu0 %v5876_v60  ;;  %v5954_v50 = vld [vmem:[#allocation4 + $0x210] ss:$20 sps:$4 sm:$0xff]  }
 0x6c0   :  { %4459 = vmatprep.subr.bf16.mxu1 %v5878_v29  ;;  %v5957_v60 = vld [vmem:[#allocation4 + $0x490] ss:$20 sps:$4 sm:$0xff]   ;;  %v5962_v29 = vld [vmem:[#allocation4 + $0x1ec] ss:$20 sps:$4 sm:$0xff]  }
 0x6c2   :  { %4419 = vmatpush2.bf16.msra.mxu0 %v5880_v30  ;;  %v5965_v30 = vld [vmem:[#allocation4 + $0x46c] ss:$20 sps:$4 sm:$0xff]  }
 0x6c3   :  { %4460 = vmatpush2.bf16.msra.mxu1 %v5881_v31  ;;  %4420 = vmatprep.subr.bf16.mxu0 %v5882_v32  ;;  %v5960_v31 = vld [vmem:[#allocation4 + $0x1e8] ss:$20 sps:$4 sm:$0xff]  }
 0x6c4   :  { %4461 = vmatprep.subr.bf16.mxu1 %v5884_v33  ;;  %v5963_v32 = vld [vmem:[#allocation4 + $0x468] ss:$20 sps:$4 sm:$0xff]   ;;  %v5968_v33 = vld [vmem:[#allocation4 + $0x1c4] ss:$20 sps:$4 sm:$0xff]  }
 0x6c6   :  { %4421 = vmatpush2.bf16.msra.mxu0 %v5886_v34  ;;  %v5971_v34 = vld [vmem:[#allocation4 + $0x444] ss:$20 sps:$4 sm:$0xff]  }
 0x6c7   :  { %4462 = vmatpush2.bf16.msra.mxu1 %v5887_v35  ;;  %4422 = vmatprep.subr.bf16.mxu0 %v5888_v36  ;;  %v5966_v35 = vld [vmem:[#allocation4 + $0x1c0] ss:$20 sps:$4 sm:$0xff]  }
 0x6c8   :  { %4463 = vmatprep.subr.bf16.mxu1 %v5890_v37  ;;  %v5969_v36 = vld [vmem:[#allocation4 + $0x440] ss:$20 sps:$4 sm:$0xff]   ;;  %v5974_v37 = vld [vmem:[#allocation4 + $0x19c] ss:$20 sps:$4 sm:$0xff]  }
 0x6ca   :  { %4423 = vmatpush2.bf16.msra.mxu0 %v5892_v38  ;;  %v5977_v38 = vld [vmem:[#allocation4 + $0x41c] ss:$20 sps:$4 sm:$0xff]  }
 0x6cb   :  { %4464 = vmatpush2.bf16.msra.mxu1 %v5893_v40  ;;  %4474 = vmatprep.subr.bf16.mxu0 %v5896_v42  ;;  %v5972_v40 = vld [vmem:[#allocation4 + $0x198] ss:$20 sps:$4 sm:$0xff]  }
 0x6cc   :  { %4515 = vmatprep.subr.bf16.mxu1 %v5899_v45  ;;  %v5975_v42 = vld [vmem:[#allocation4 + $0x418] ss:$20 sps:$4 sm:$0xff]   ;;  %v5980_v45 = vld [vmem:[#allocation4 + $0x174] ss:$20 sps:$4 sm:$0xff]  }
 0x6cd   :  { %4425 = vmatmul.mubr.bf16.vlgmr.msra.gmra.mxu0 %v6707_v46 }
 0x6ce   :  { %4466 = vmatmul.mubr.bf16.vlgmr.msra.gmra.mxu1 %v6712_v47  ;;  %4475 = vmatpush1.bf16.msra.mxu0 %v5894_v48  ;;  %v5983_v48 = vld [vmem:[#allocation4 + $0x3f4] ss:$20 sps:$4 sm:$0xff]  }
 0x6cf   :  { %4516 = vmatpush1.bf16.msra.mxu1 %v5897_v54  ;;  %4476 = vmatprep.subr.bf16.mxu0 %v5902_v56  ;;  %v5978_v54 = vld [vmem:[#allocation4 + $0x170] ss:$20 sps:$4 sm:$0xff]  }
 0x6d0   :  { %4517 = vmatprep.subr.bf16.mxu1 %v5905_v18  ;;  %4506 = vmatprep.mubr.bf16.mxu0 %v6698_v27  ;;  %v5981_v56 = vld [vmem:[#allocation4 + $0x3f0] ss:$20 sps:$4 sm:$0xff]   ;;  %v5986_v18 = vld [vmem:[#allocation4 + $0x14c] ss:$20 sps:$4 sm:$0xff]  }
 0x6d1   :  { %4547 = vmatprep.mubr.bf16.mxu1 %v6700_v28 }
 0x6d2   :  { %4477 = vmatpush1.bf16.msra.mxu0 %v5900_v44  ;;  %v5989_v44 = vld [vmem:[#allocation4 + $0x3cc] ss:$20 sps:$4 sm:$0xff]  }
 0x6d3   :  { %4518 = vmatpush1.bf16.msra.mxu1 %v5903_v20  ;;  %4478 = vmatprep.subr.bf16.mxu0 %v5908_v26  ;;  %v5984_v20 = vld [vmem:[#allocation4 + $0x148] ss:$20 sps:$4 sm:$0xff]  }
 0x6d4   :  { %4519 = vmatprep.subr.bf16.mxu1 %v5911_v15  ;;  %v5987_v26 = vld [vmem:[#allocation4 + $0x3c8] ss:$20 sps:$4 sm:$0xff]  }
 0x6d5   :  { %v5990_v15 = vld [vmem:[#allocation4 + $0x268] ss:$20 sps:$4 sm:$0xff]  }
 0x6d6   :  { %4479 = vmatpush1.bf16.msra.mxu0 %v5906_v57  ;;  %v5991_v57 = vld [vmem:[#allocation4 + $0x4e8] ss:$20 sps:$4 sm:$0xff]  }
 0x6d7   :  { %4520 = vmatpush1.bf16.msra.mxu1 %v5909_v58  ;;  %4480 = vmatprep.subr.bf16.mxu0 %v5914_v61  ;;  %v5992_v58 = vld [vmem:[#allocation4 + $0x128] ss:$20 sps:$4 sm:$0xff]  }
 0x6d8   :  { %4521 = vmatprep.subr.bf16.mxu1 %v5917_v62  ;;  %v5993_v61 = vld [vmem:[#allocation4 + $0x3a8] ss:$20 sps:$4 sm:$0xff]   ;;  %v5994_v62 = vld [vmem:[#allocation4 + $0x240] ss:$20 sps:$4 sm:$0xff]  }
 0x6da   :  { %4481 = vmatpush1.bf16.msra.mxu0 %v5912_v63  ;;  %v5995_v63 = vld [vmem:[#allocation4 + $0x4c0] ss:$20 sps:$4 sm:$0xff]  }
 0x6db   :  { %4522 = vmatpush1.bf16.msra.mxu1 %v5915_v0  ;;  %4482 = vmatprep.subr.bf16.mxu0 %v5920_v1  ;;  %v5996_v0 = vld [vmem:[#allocation4 + $0x100] ss:$20 sps:$4 sm:$0xff]  }
 0x6dc   :  { %4523 = vmatprep.subr.bf16.mxu1 %v5923_v2  ;;  %v5997_v1 = vld [vmem:[#allocation4 + $0x380] ss:$20 sps:$4 sm:$0xff]   ;;  %v5998_v2 = vld [vmem:[#allocation4 + $0x218] ss:$20 sps:$4 sm:$0xff]  }
 0x6de   :  { %4483 = vmatpush1.bf16.msra.mxu0 %v5918_v4  ;;  %v5999_v4 = vld [vmem:[#allocation4 + $0x498] ss:$20 sps:$4 sm:$0xff]  }
 0x6df   :  { %4524 = vmatpush1.bf16.msra.mxu1 %v5921_v5  ;;  %4484 = vmatprep.subr.bf16.mxu0 %v5926_v49  ;;  %v6000_v5 = vld [vmem:[#allocation4 + $0xd8] ss:$20 sps:$4 sm:$0xff]  }
 0x6e0   :  { %4525 = vmatprep.subr.bf16.mxu1 %v5929_v7  ;;  %v6001_v49 = vld [vmem:[#allocation4 + $0x358] ss:$20 sps:$4 sm:$0xff]   ;;  %v6002_v7 = vld [vmem:[#allocation4 + $0x1f0] ss:$20 sps:$4 sm:$0xff]  }
 0x6e2   :  { %4485 = vmatpush1.bf16.msra.mxu0 %v5924_v10  ;;  %v6003_v10 = vld [vmem:[#allocation4 + $0x470] ss:$20 sps:$4 sm:$0xff]  }
 0x6e3   :  { %4526 = vmatpush1.bf16.msra.mxu1 %v5927_v11  ;;  %4486 = vmatprep.subr.bf16.mxu0 %v5932_v12  ;;  %v6004_v11 = vld [vmem:[#allocation4 + $0xb0] ss:$20 sps:$4 sm:$0xff]  }
 0x6e4   :  { %4527 = vmatprep.subr.bf16.mxu1 %v5935_v52  ;;  %v6005_v12 = vld [vmem:[#allocation4 + $0x330] ss:$20 sps:$4 sm:$0xff]   ;;  %v6006_v52 = vld [vmem:[#allocation4 + $0x1c8] ss:$20 sps:$4 sm:$0xff]  }
 0x6e6   :  { %4487 = vmatpush1.bf16.msra.mxu0 %v5930_v22  ;;  %v6007_v22 = vld [vmem:[#allocation4 + $0x448] ss:$20 sps:$4 sm:$0xff]  }
 0x6e7   :  { %4528 = vmatpush1.bf16.msra.mxu1 %v5933_v13  ;;  %4488 = vmatprep.subr.bf16.mxu0 %v5938_v59  ;;  %v6010_v13 = vld [vmem:[#allocation4 + $0x1a0] ss:$20 sps:$4 sm:$0xff]  }
 0x6e8   :  { %4529 = vmatprep.subr.bf16.mxu1 %v5941_v53  ;;  %v6011_v59 = vld [vmem:[#allocation4 + $0x420] ss:$20 sps:$4 sm:$0xff]  }
 0x6e9   :  { %v6012_v53 = vld [vmem:[#allocation4 + $0x60] ss:$20 sps:$4 sm:$0xff]  }
 0x6ea   :  { %4489 = vmatpush1.bf16.msra.mxu0 %v5936_v16  ;;  %v6013_v16 = vld [vmem:[#allocation4 + $0x2e0] ss:$20 sps:$4 sm:$0xff]  }
 0x6eb   :  { %4530 = vmatpush1.bf16.msra.mxu1 %v5939_v17  ;;  %4490 = vmatprep.subr.bf16.mxu0 %v5944_v19  ;;  %v6014_v17 = vld [vmem:[#allocation4 + $0x178] ss:$20 sps:$4 sm:$0xff]  }
 0x6ec   :  { %4531 = vmatprep.subr.bf16.mxu1 %v5947_v3  ;;  %v6015_v19 = vld [vmem:[#allocation4 + $0x3f8] ss:$20 sps:$4 sm:$0xff]  }
 0x6ed   :  { %v6016_v3 = vld [vmem:[#allocation4 + $0x38] ss:$20 sps:$4 sm:$0xff]  }
 0x6ee   :  { %4491 = vmatpush2.bf16.msra.mxu0 %v5942_v8  ;;  %v6017_v8 = vld [vmem:[#allocation4 + $0x2b8] ss:$20 sps:$4 sm:$0xff]  }
 0x6ef   :  { %4532 = vmatpush2.bf16.msra.mxu1 %v5945_v6  ;;  %4492 = vmatprep.subr.bf16.mxu0 %v5950_v21  ;;  %v6018_v6 = vld [vmem:[#allocation4 + $0x150] ss:$20 sps:$4 sm:$0xff]  }
 0x6f0   :  { %4533 = vmatprep.subr.bf16.mxu1 %v5953_v23  ;;  %v6019_v21 = vld [vmem:[#allocation4 + $0x3d0] ss:$20 sps:$4 sm:$0xff]  }
 0x6f1   :  { %v6020_v23 = vld [vmem:[#allocation4 + $0x10] ss:$20 sps:$4 sm:$0xff]  }
 0x6f2   :  { %4493 = vmatpush2.bf16.msra.mxu0 %v5948_v24  ;;  %v6021_v24 = vld [vmem:[#allocation4 + $0x290] ss:$20 sps:$4 sm:$0xff]  }
 0x6f3   :  { %4534 = vmatpush2.bf16.msra.mxu1 %v5951_v25  ;;  %4494 = vmatprep.subr.bf16.mxu0 %v5956_v41  ;;  %v6727_v25 = vld [vmem:[%s6759_s14] sm:$0x1f]  ;;  %s6362_s14 = smov [#allocation21]  }
 0x6f4   :  { %4535 = vmatprep.subr.bf16.mxu1 %v5959_v14  ;;  %v3538_v41 = vrot.slane %v6727_v25, %v6568_v51  ;;  %v3542_v14 = vrot.slane %v6727_v25, %v6572_v55  ;;  %s4677_s5 = sshll.u32 %s6362_s14, 4  ;;  %s4678_s5 = int_to_ptr.vmem [resolvable:$true] %s4677_s5 }
 0x6f5   :  { %s6282_s9 = scalar_lea.vmem %s4678_s5, 128  ;;  %p6287_p5 = scmp.lt.s32.totalorder %s4678_s5, %s4678_s5 }
 0x6f6   :  { %4495 = vmatpush2.bf16.msra.mxu0 %v5954_v50  ;;  %p6283_p4 = scmp.ne.s32.totalorder %s4678_s5, %s6282_s9  ;;  %p6288_p6 = scmp.lt.s32.totalorder %s6282_s9, %s6282_s9 }
 0x6f7   :  { %4536 = vmatpush2.bf16.msra.mxu1 %v5957_v60  ;;  %4496 = vmatprep.subr.bf16.mxu0 %v5962_v29 }
 0x6f8   :  { %4537 = vmatprep.subr.bf16.mxu1 %v5965_v30  ;;  %p6289_p7 = por %p6288_p6, %p6287_p5 }
 0x6fa   :  { %4497 = vmatpush2.bf16.msra.mxu0 %v5960_v31  ;;  %p6290_p8 = pnand %p6289_p7, %p6283_p4 }
 0x6fb   :  { %4538 = vmatpush2.bf16.msra.mxu1 %v5963_v32  ;;  %4498 = vmatprep.subr.bf16.mxu0 %v5968_v33 }
 0x6fc   :  { %4539 = vmatprep.subr.bf16.mxu1 %v5971_v34 }
 0x6fe   :  { %4499 = vmatpush2.bf16.msra.mxu0 %v5966_v35 }
 0x6ff   :  { %4540 = vmatpush2.bf16.msra.mxu1 %v5969_v36  ;;  %4500 = vmatprep.subr.bf16.mxu0 %v5974_v37 }
 0x700   :  { %4541 = vmatprep.subr.bf16.mxu1 %v5977_v38 }
 0x702   :  { %4501 = vmatpush2.bf16.msra.mxu0 %v5972_v40 }
 0x703   :  { %4542 = vmatpush2.bf16.msra.mxu1 %v5975_v42  ;;  %4502 = vmatprep.subr.bf16.mxu0 %v5980_v45 }
 0x704   :  { %4543 = vmatprep.subr.bf16.mxu1 %v5983_v48 }
 0x706   :  { %4503 = vmatpush2.bf16.msra.mxu0 %v5978_v54 }
 0x707   :  { %4544 = vmatpush2.bf16.msra.mxu1 %v5981_v56  ;;  %4504 = vmatprep.subr.bf16.mxu0 %v5986_v18 }
 0x708   :  { %4545 = vmatprep.subr.bf16.mxu1 %v5989_v44 }
 0x70a   :  { %4505 = vmatpush2.bf16.msra.mxu0 %v5984_v20 }
 0x70b   :  { %4546 = vmatpush2.bf16.msra.mxu1 %v5987_v26  ;;  %5234 = vmatprep.subr.bf16.mxu0 %v5990_v15 }
 0x70c   :  { %5256 = vmatprep.subr.bf16.mxu1 %v5991_v57 }
 0x70d   :  { %4507 = vmatmul.mubr.bf16.vlgmr.msra.gmra.mxu0 %v6707_v46 }
 0x70e   :  { %4548 = vmatmul.mubr.bf16.vlgmr.msra.gmra.mxu1 %v6712_v47  ;;  %5235 = vmatpush3.bf16.msra.mxu0 %v5992_v58 }
 0x70f   :  { %5257 = vmatpush3.bf16.msra.mxu1 %v5993_v61  ;;  %5236 = vmatprep.subr.bf16.mxu0 %v5994_v62 }
 0x710   :  { %5258 = vmatprep.subr.bf16.mxu1 %v5995_v63  ;;  %4588 = vmatprep.mubr.bf16.mxu0 %v6698_v27  ;;  %v6008_v27 = vld [vmem:[#allocation4 + $0x88] ss:$20 sps:$4 sm:$0xff]  }
 0x711   :  { %4628 = vmatprep.mubr.bf16.mxu1 %v6700_v28  ;;  %v6009_v28 = vld [vmem:[#allocation4 + $0x308] ss:$20 sps:$4 sm:$0xff]  }
 0x712   :  { %5237 = vmatpush3.bf16.msra.mxu0 %v5996_v0 }
 0x713   :  { %5259 = vmatpush3.bf16.msra.mxu1 %v5997_v1  ;;  %5238 = vmatprep.subr.bf16.mxu0 %v5998_v2 }
 0x714   :  { %5260 = vmatprep.subr.bf16.mxu1 %v5999_v4 }
 0x716   :  { %5239 = vmatpush3.bf16.msra.mxu0 %v6000_v5 }
 0x717   :  { %5261 = vmatpush3.bf16.msra.mxu1 %v6001_v49  ;;  %5240 = vmatprep.subr.bf16.mxu0 %v6002_v7 }
 0x718   :  { %5262 = vmatprep.subr.bf16.mxu1 %v6003_v10 }
 0x71a   :  { %5241 = vmatpush3.bf16.msra.mxu0 %v6004_v11 }
 0x71b   :  { %5263 = vmatpush3.bf16.msra.mxu1 %v6005_v12  ;;  %5242 = vmatprep.subr.bf16.mxu0 %v6006_v52 }
 0x71c   :  { %5264 = vmatprep.subr.bf16.mxu1 %v6007_v22 }
 0x71e   :  { %5243 = vmatpush3.bf16.msra.mxu0 %v6008_v27 }
 0x71f   :  { %5265 = vmatpush3.bf16.msra.mxu1 %v6009_v28  ;;  %5244 = vmatprep.subr.bf16.mxu0 %v6010_v13 }
 0x720   :  { %5266 = vmatprep.subr.bf16.mxu1 %v6011_v59 }
 0x722   :  { %5245 = vmatpush3.bf16.msra.mxu0 %v6012_v53 }
 0x723   :  { %5267 = vmatpush3.bf16.msra.mxu1 %v6013_v16  ;;  %5246 = vmatprep.subr.bf16.mxu0 %v6014_v17 }
 0x724   :  { %5268 = vmatprep.subr.bf16.mxu1 %v6015_v19 }
 0x726   :  { %5247 = vmatpush3.bf16.msra.mxu0 %v6016_v3 }
 0x727   :  { %5269 = vmatpush3.bf16.msra.mxu1 %v6017_v8  ;;  %5248 = vmatprep.subr.bf16.mxu0 %v6018_v6 }
 0x728   :  { %5270 = vmatprep.subr.bf16.mxu1 %v6019_v21 }
 0x72a   :  { %5249 = vmatpush3.bf16.msra.mxu0 %v6020_v23 }
 0x72b   :  { %5271 = vmatpush3.bf16.msra.mxu1 %v6021_v24 }
 0x72d   :  { %4589 = vmatmul.mubr.bf16.vlgmr.msra.gmra.mxu0 %v6707_v46 }
 0x72e   :  { %4629 = vmatmul.mubr.bf16.vlgmr.msra.gmra.mxu1 %v6712_v47 }
 0x78d   :  { %v4426_v50 = vpop.f32.mrf.mxu0 }
 0x78e   :  { %v4467_v60 = vpop.f32.mrf.mxu1  ;;  %v4427_v29 = vadd.f32 %v4426_v50, %v3538_v41 }
 0x78f   :  { %v4428_v30 = vpop.f32.mrf.mxu0 }
 0x790   :  { %v4469_v31 = vpop.f32.mrf.mxu1  ;;  %v4468_v32 = vadd.f32 %v4467_v60, %v4427_v29  ;;  %v4429_v46 = vadd.f32 %v4428_v30, %v3542_v14 }
 0x791   :  { %v4430_v33 = vpop.f32.mrf.mxu0 }
 0x792   :  { %v4471_v47 = vpop.f32.mrf.mxu1  ;;  %v5204_v34 = vmul.f32 -1.442695, %v4468_v32  ;;  %v4470_v35 = vadd.f32 %v4469_v31, %v4429_v46 }
 0x793   :  { %v4431_v36 = vpop.f32.mrf.mxu0 }
 0x794   :  { %v4472_v37 = vpop.f32.mrf.mxu1  ;;  %6022 = vpow2.f32 %v5204_v34  ;;  %v5205_v38 = vmul.f32 -1.442695, %v4470_v35 }
 0x796   :  { %6024 = vpow2.f32 %v5205_v38 }
 0x797   :  { %6293 = shalt.err (!%p6290_p8)
}
 0x798   :  { %4680 = dma.vmem_to_hbm [thread:$0]  %s4678_s5, 128, %s6763_s18, [#allocation8]   ;;  %v3546_v54 = vrot.slane %v6727_v25, %v6575_v9  ;;  %v3550_v56 = vrot.slane %v6727_v25, %v6578_v43  ;;  %v3553_v7 = vsub.s32 4, %v6557_v39 }
 0x799   :  { %s6363_s18 = smov [#allocation22]  }
 0x79a   :  { %v3554_v12 = vrot.slane %v6727_v25, %v3553_v7  ;;  %s4687_s4 = sshll.u32 %s6363_s18, 4  ;;  %s4688_s4 = int_to_ptr.vmem [resolvable:$true] %s4687_s4 }
 0x79b   :  { %s6302_s30 = scalar_lea.vmem %s4688_s4, 640  ;;  %p6307_p10 = scmp.lt.s32.totalorder %s4688_s4, %s4688_s4 }
 0x79c   :  { %p6303_p9 = scmp.ne.s32.totalorder %s4688_s4, %s6302_s30  ;;  %p6308_p11 = scmp.lt.s32.totalorder %s6302_s30, %s6302_s30 }
 0x79e   :  { %p6309_p12 = por %p6308_p11, %p6307_p10 }
 0x7a0   :  { %p6310_p13 = pnand %p6309_p12, %p6303_p9 }
 0x7a1   :  { %v6023_v51 = vpop.eup %6022 }
 0x7a2   :  { %v4651_v55 = vadd.f32 1.0, %v6023_v51 }
 0x7a3   :  { %v6025_v40 = vpop.eup %6024 }
 0x7a4   :  { %6026 = vrcp.f32 %v4651_v55  ;;  %v4652_v42 = vadd.f32 1.0, %v6025_v40 }
 0x7a6   :  { %6028 = vrcp.f32 %v4652_v42 }
 0x7b1   :  { %v6027_v45 = vpop.eup %6026 }
 0x7b2   :  { %4666 = vst [vmem:[#allocation22] sm:$0xff] %v6027_v45 }
 0x7b3   :  { %v6029_v48 = vpop.eup %6028 }
 0x7b4   :  { %4667 = vst [vmem:[#allocation22 + $0x8] sm:$0xff] %v6029_v48 }
 0x7cd   :  { %v4508_v18 = vpop.f32.mrf.mxu0 }
 0x7ce   :  { %v4549_v44 = vpop.f32.mrf.mxu1  ;;  %v4509_v20 = vadd.f32 %v4508_v18, %v3546_v54 }
 0x7cf   :  { %v4510_v26 = vpop.f32.mrf.mxu0 }
 0x7d0   :  { %v4551_v15 = vpop.f32.mrf.mxu1  ;;  %v4550_v57 = vadd.f32 %v4549_v44, %v4509_v20  ;;  %v4511_v58 = vadd.f32 %v4510_v26, %v3550_v56 }
 0x7d1   :  { %v4512_v61 = vpop.f32.mrf.mxu0 }
 0x7d2   :  { %v4553_v62 = vpop.f32.mrf.mxu1  ;;  %v5206_v63 = vmul.f32 -1.442695, %v4550_v57  ;;  %v4552_v0 = vadd.f32 %v4551_v15, %v4511_v58 }
 0x7d3   :  { %v4513_v1 = vpop.f32.mrf.mxu0 }
 0x7d4   :  { %v4554_v2 = vpop.f32.mrf.mxu1  ;;  %6030 = vpow2.f32 %v5206_v63  ;;  %v5207_v4 = vmul.f32 -1.442695, %v4552_v0 }
 0x7d6   :  { %6032 = vpow2.f32 %v5207_v4 }
 0x7e1   :  { %v6031_v9 = vpop.eup %6030 }
 0x7e2   :  { %v4653_v5 = vadd.f32 1.0, %v6031_v9 }
 0x7e3   :  { %v6033_v49 = vpop.eup %6032 }
 0x7e4   :  { %6034 = vrcp.f32 %v4653_v5  ;;  %v4654_v43 = vadd.f32 1.0, %v6033_v49 }
 0x7e6   :  { %6036 = vrcp.f32 %v4654_v43 }
 0x7ed   :  { %v5250_v10 = vpop.f32.mrf.mxu0 }
 0x7ee   :  { %v5272_v11 = vpop.f32.mrf.mxu1 }
 0x7ef   :  { %v5251_v52 = vpop.f32.mrf.mxu0 }
 0x7f0   :  { %v5273_v22 = vpop.f32.mrf.mxu1  ;;  %v5252_v27 = vadd.f32 %v5251_v52, %v5250_v10 }
 0x7f1   :  { %v6035_v28 = vpop.eup %6034  ;;  %v5253_v13 = vpop.f32.mrf.mxu0  ;;  %v5274_v16 = vadd.f32 %v5273_v22, %v5272_v11 }
 0x7f2   :  { %v5275_v59 = vpop.f32.mrf.mxu1  ;;  %4668 = vst [vmem:[#allocation22 + $0x10] sm:$0xff] %v6035_v28  ;;  %v4591_v53 = vadd.f32 %v5252_v27, %v3554_v12 }
 0x7f3   :  { %v6037_v17 = vpop.eup %6036  ;;  %v5254_v19 = vpop.f32.mrf.mxu0 }
 0x7f4   :  { %v5276_v3 = vpop.f32.mrf.mxu1  ;;  %4669 = vst [vmem:[#allocation22 + $0x18] sm:$0xff] %v6037_v17  ;;  %v4631_v8 = vadd.f32 %v5274_v16, %v4591_v53 }
 0x7f6   :  { %v5208_v6 = vmul.f32 -1.442695, %v4631_v8 }
 0x7f8   :  { %6038 = vpow2.f32 %v5208_v6 }
 0x805   :  { %v6039_v39 = vpop.eup %6038 }
 0x806   :  { %v4655_v21 = vadd.f32 1.0, %v6039_v39 }
 0x808   :  { %6040 = vrcp.f32 %v4655_v21 }
 0x815   :  { %v6041_v23 = vpop.eup %6040 }
 0x816   :  { %4670 = vst [vmem:[#allocation22 + $0x20] sm:$0xff] %v6041_v23 }
 0x817   :  { %6313 = shalt.err (!%p6310_p13)
}
 0x818   :  { %s6774_s2 = sld [smem:[#allocation46_spill]] }
 0x81e   :  { %4690 = dma.vmem_to_hbm [thread:$0]  %s4688_s4, 640, %s6774_s2, [#allocation23]  }
 0x81f   :  { %6338 = dma.done.wait [#allocation8], 128  }
 0x820   :  { %6339 = vsyncadd [#allocation8], 4294967168 }
 0x821   :  { %6340 = dma.done.wait [#allocation23], 640  }
 0x822   :  { %6341 = vsyncadd [#allocation23], 4294966656 }
 0x823   :  { %4697 = vsyncpa [#allocation7], 1 }
 0x824   :  { %4698 = vsyncpa [#allocation10], 1 }
 0x825   :  { %4699 = vsyncpa [#allocation13], 1 }
 0x826   :  { %4700 = vsyncpa [#allocation16], 1 }
 0x827   :  { %4701 = vsyncpa [#allocation19], 1 }
 0x828   :  { %4702 = vsyncpa [#allocation8], 1 }
 0x829   :  { %4703 = vsyncpa [#allocation23], 1 }
 0x82a   :  { %4704 = vsyncmov [#allocation5] }
 0x82d   :  { %s4705_s23 = vpop.sfrf %4704 }
 0x82e   :  { %p5209_p0 = scmp.ne.s32.totalorder %s4705_s23, 0 }
 0x830   :  { %4709 = shalt.err (%p5209_p0)  }
 0x831   :  { %4711 = vsyncmov [#allocation5 + $0x1] }
 0x834   :  { %s4712_s24 = vpop.sfrf %4711 }
 0x835   :  { %p5210_p1 = scmp.ne.s32.totalorder %s4712_s24, 0 }
 0x837   :  { %4716 = shalt.err (%p5210_p1)  }
 0x838   :  { %4718 = vsyncmov [#allocation5 + $0x2] }
 0x83b   :  { %s4719_s25 = vpop.sfrf %4718 }
 0x83c   :  { %p5211_p2 = scmp.ne.s32.totalorder %s4719_s25, 0 }
 0x83e   :  { %4723 = shalt.err (%p5211_p2)  }

</bundles_post_ra>
